<compile_context>
chip_gen: v5e
topology: v5e:2x2
jax: 0.10.0
libtpu: 0.0.40
codegen_flags: <defaults>
</compile_context>

<pallas_src>
import jax
import jax.numpy as jnp
from jax.experimental import pallas as pl
from jax.experimental.pallas import tpu as pltpu


_TARGET_TILE_BYTES = 1 << 20      # ~1 MiB per buffer per direction per step
_MAX_SINGLE_SLAB_BYTES = 3 << 20  # cap for an untiled per-batch slab (<=12 MiB
                                  # total with in+out double buffering)


def _prod(xs):
    p = 1
    for v in xs:
        p *= int(v)
    return p


def _largest_divisor_leq(n, cap):
    cap = max(1, min(n, cap))
    for d in range(cap, 0, -1):
        if n % d == 0:
            return d
    return 1


def _rotation_split(dims):
    """If dims == (0..p-1, s..n-1, p..s-1) return (p, s); else None."""
    n = len(dims)
    p = 0
    while p < n and dims[p] == p:
        p += 1
    if p >= n:
        return None  # identity (handled by caller)
    s = dims[p]
    if s <= p or s >= n:
        return None
    expected = tuple(range(s, n)) + tuple(range(p, s))
    if tuple(dims[p:]) == expected:
        return p, s
    return None


def _choose_tiling(bflat, m, n, itemsize):
    """Return (tb, tn, tr, n2) or None if no VMEM-friendly tiling exists.

    tb: batches per grid step, tn: out-rows (= input columns) per step,
    tr: output-block sublane rows, n2: row-group packed into the lane dim
    (tn == tr * n2, output lane width == n2 * m).
    """
    slab = m * n * itemsize
    if slab == 0:
        return None
    lane_dense_m = (m % 128 == 0)

    if slab <= _TARGET_TILE_BYTES:
        # Whole per-batch slab(s) per step; group batches up to the target so
        # small tensors become a single grid step.
        cap = min(bflat, max(1, _TARGET_TILE_BYTES // slab), 1024)
        tb = _largest_divisor_leq(bflat, cap)
        if lane_dense_m:
            return tb, n, n, 1        # natural (n, m) output layout
        return tb, n, 1, n            # packed (1, n*m) output layout

    # Tile the per-batch slab along N: input block last dim must be a multiple
    # of 128 lanes; output block sublane dim a multiple of the sublane tile.
    sub = max(8, 32 // itemsize)      # 8 for f32, 16 for bf16, 32 for i8
    max_tn = _TARGET_TILE_BYTES // max(1, m * itemsize)
    best = None
    tn = 128
    limit = min(n, max_tn)
    while tn <= limit:
        if n % tn == 0:
            best = tn
        tn += 128
    if best is not None:
        if lane_dense_m:
            return 1, best, best, 1   # natural layout, lane dim = m (>=128)
        if best % sub == 0:
            return 1, best, sub, best // sub
    if slab <= _MAX_SINGLE_SLAB_BYTES:
        if lane_dense_m:
            return 1, n, n, 1
        return 1, n, 1, n
    return None


def _permute_rotation_kernel(x_ref, o_ref):
    # x_ref: (tb, M, tn) ; o_ref: (tb, tr, n2*M) with tn == tr * n2.
    # Clean minor-dim transpose (XLU) then pack the (tn, M) result into the
    # lane-dense (tr, n2*M) output layout so stores are full-lane vst ops.
    y = jnp.swapaxes(x_ref[...], 1, 2)     # (tb, tn, M)
    o_ref[...] = y.reshape(o_ref.shape)


def permute_pallas(x, dims):
    """Pallas equivalent of torch.Tensor.permute(*dims)."""
    ndim = x.ndim
    dims = tuple(int(d) for d in dims)
    if len(dims) != ndim:
        raise ValueError(f"permute dims {dims} do not match rank {ndim}")
    if ndim == 0:
        return x
    dims = tuple(d % ndim for d in dims)
    if sorted(dims) != list(range(ndim)):
        raise ValueError(f"invalid permutation {dims}")
    if dims == tuple(range(ndim)):
        return x

    out_shape = tuple(x.shape[d] for d in dims)

    split = _rotation_split(dims)
    if split is None or x.size == 0:
        # TODO(synk): non-cyclic permutations (and empty tensors) use XLA's
        # transpose; no efficient BlockSpec-expressible tiling for them here.
        return jnp.transpose(x, dims)

    p, s = split
    bflat = _prod(x.shape[:p])
    m = _prod(x.shape[p:s])
    n = _prod(x.shape[s:])

    tiling = _choose_tiling(bflat, m, n, x.dtype.itemsize)
    if tiling is None:
        # TODO(synk): huge slabs with no 128-aligned N tiling fall back to XLA.
        return jnp.transpose(x, dims)

    tb, tn, tr, n2 = tiling
    r = n // n2
    lane = n2 * m
    grid = (bflat // tb, n // tn)

    x3 = x.reshape(bflat, m, n)            # metadata-only reshape

    out3 = pl.pallas_call(
        _permute_rotation_kernel,
        out_shape=jax.ShapeDtypeStruct((bflat, r, lane), x.dtype),
        grid_spec=pltpu.PrefetchScalarGridSpec(
            num_scalar_prefetch=0,
            grid=grid,
            in_specs=[pl.BlockSpec((tb, m, tn), lambda bi, ni: (bi, 0, ni))],
            out_specs=pl.BlockSpec((tb, tr, lane), lambda bi, ni: (bi, ni, 0)),
        ),
        compiler_params=pltpu.CompilerParams(
            dimension_semantics=("parallel", "parallel"),
        ),
    )(x3)

    return out3.reshape(out_shape)


class PermutationLayer:
    """JAX/Pallas port of the PyTorch PermutationLayer."""

    def __init__(self, *dims):
        self.dims = dims

    def __call__(self, x):
        return permute_pallas(x, self.dims)


if __name__ == "__main__":
    key = jax.random.PRNGKey(0)
    k0, k1, k2, k3 = jax.random.split(key, 4)

    # 1) NCHW -> NHWC on a small activation: single grid step, whole tensor in
    #    one lane-dense packed block (2, 1, 1024).
    x = jax.random.normal(k0, (2, 4, 16, 16), dtype=jnp.float32)
    layer = PermutationLayer(0, 2, 3, 1)
    out = jax.block_until_ready(layer(x))
    ref = jnp.transpose(x, (0, 2, 3, 1))
    assert out.shape == ref.shape, (out.shape, ref.shape)
    assert out.dtype == ref.dtype
    assert bool(jnp.array_equal(out, ref))

    # 2) Larger NCHW -> NHWC activation: exercises the tiled packed path
    #    (~1 MiB input + ~1 MiB output tile per grid step).
    xb = jax.random.normal(k1, (2, 32, 128, 128), dtype=jnp.float32)
    outb = jax.block_until_ready(layer(xb))
    refb = jnp.transpose(xb, (0, 2, 3, 1))
    assert outb.shape == refb.shape
    assert bool(jnp.array_equal(outb, refb))

    # 3) NHWC -> NCHW: M = H*W = 256 is already lane-dense (multiple of 128),
    #    so the kernel stores the natural (N, M) layout (n2 == 1 path).
    xc = jax.random.normal(k2, (2, 16, 16, 4), dtype=jnp.float32)
    layer_nchw = PermutationLayer(0, 3, 1, 2)
    outc = jax.block_until_ready(layer_nchw(xc))
    refc = jnp.transpose(xc, (0, 3, 1, 2))
    assert outc.shape == refc.shape
    assert bool(jnp.array_equal(outc, refc))

    # 4) Permutation that also moves the leading axis (full cyclic rotation):
    #    still the Pallas 2-D transpose path, Bflat == 1.
    y = jax.random.normal(k3, (2, 8, 32), dtype=jnp.float32)
    layer2 = PermutationLayer(2, 0, 1)
    out2 = jax.block_until_ready(layer2(y))
    assert bool(jnp.array_equal(out2, jnp.transpose(y, (2, 0, 1))))

    # 5) bf16 coverage of the packed path (sublane tile = 16).
    xh = jax.random.normal(k0, (2, 4, 16, 16), dtype=jnp.bfloat16)
    outh = jax.block_until_ready(layer(xh))
    assert bool(jnp.array_equal(outh, jnp.transpose(xh, (0, 2, 3, 1))))

    # 6) Non-cyclic permutation: XLA-transpose fallback, same semantics.
    layer3 = PermutationLayer(0, 2, 1, 3)
    out3 = jax.block_until_ready(layer3(x))
    assert bool(jnp.array_equal(out3, jnp.transpose(x, (0, 2, 1, 3))))

    print("KERNEL_OK")
</pallas_src>

<mosaic_0001>
module attributes {stable_mosaic.version = 11 : i64} {
  func.func @_permute_rotation_kernel(%arg0: i32, %arg1: i32, %arg2: memref<2x4x256xf32, #tpu.memory_space<vmem>>, %arg3: memref<2x1x1024xf32, #tpu.memory_space<vmem>>) attributes {dimension_semantics = [#tpu.dimension_semantics<parallel>, #tpu.dimension_semantics<parallel>], iteration_bounds = array<i64: 1, 1>, scalar_prefetch = 0 : i64, scratch_operands = 0 : i64, tpu.core_type = #tpu.core_type<tc>, window_params = [{transform_indices = @transform_0, window_bounds = array<i64: 2, 4, 256>}, {transform_indices = @transform_1, window_bounds = array<i64: 2, 1, 1024>}]} {
    %c0 = arith.constant 0 : index
    %c0_0 = arith.constant 0 : index
    %c0_1 = arith.constant 0 : index
    %0 = vector.load %arg2[%c0, %c0_0, %c0_1] : memref<2x4x256xf32, #tpu.memory_space<vmem>>, vector<2x4x256xf32>
    %1 = tpu.transpose %0, [0, 2, 1] : vector<2x4x256xf32> -> vector<2x256x4xf32>
    %2 = vector.shape_cast %1 : vector<2x256x4xf32> to vector<2x1x1024xf32>
    %c0_2 = arith.constant 0 : index
    %c0_3 = arith.constant 0 : index
    %c0_4 = arith.constant 0 : index
    %3 = vector.load %arg3[%c0_2, %c0_3, %c0_4] : memref<2x1x1024xf32, #tpu.memory_space<vmem>>, vector<2x1x1024xf32>
    tpu.vector_store %arg3[%c0_2, %c0_3, %c0_4], %2 {strides = array<i32>} : memref<2x1x1024xf32, #tpu.memory_space<vmem>>, vector<2x1x1024xf32>,
    return
  }
  func.func @transform_0(%arg0: i32, %arg1: i32) -> (i32, i32, i32) {
    %c0_i32 = arith.constant 0 : i32
    %c0_i32_0 = arith.constant 0 : i32
    return %arg0, %c0_i32, %arg1 : i32, i32, i32
  }
  func.func @transform_1(%arg0: i32, %arg1: i32) -> (i32, i32, i32) {
    %c0_i32 = arith.constant 0 : i32
    %c0_i32_0 = arith.constant 0 : i32
    return %arg0, %arg1, %c0_i32 : i32, i32, i32
  }
}

</mosaic_0001>

<bundles_post_ra>
// kernel: tpu_custom_call.1
= control target key start
LH: loop header
LB: loop body
LE: loop exit
PB: predicated region body
PF: predicated region fallthrough
CT: control target
= control target key end

     0   :  { %6 = vsyncpa [#allocation3], 0  ;;  %s9407_s0 = inlined_call_operand.hbm [shape: f32[2,4,256], index: 0, kind: input, shape index: {}]   ;;  %s9408_s1 = inlined_call_operand.hbm [shape: f32[2,1,1024], index: 1, kind: output, shape index: {}]  }
   0x1   :  { %7 = vsyncpa [#allocation4], 0  ;;  %s12_s8 = sshll.u32 %s9407_s0, 4  ;;  %s5275_s9 = smov [#allocation2]   ;;  %s13_s8 = int_to_ptr.hbm [resolvable:$true] %s12_s8 }
   0x2   :  { %s14_s10 = sshll.u32 %s5275_s9, 4  ;;  %s9436_s11 = smov 128   ;;  %s15_s10 = int_to_ptr.vmem [resolvable:$true] %s14_s10 }
   0x3   :  { %s5277_s12 = smov 8  }
   0x4   :  { %20 = dma.hbm_to_vmem [thread:$0]  %s13_s8, 256, %s15_s10, [#allocation3], %s9436_s11, %s9436_s11, %s5277_s12  }
   0x5   :  { %5271 = dma.done.wait [#allocation3], 256  }
   0x6   :  { %5272 = vsyncadd [#allocation3], 4294967040  ;;  %v25_v0 = vld [vmem:[#allocation2] sm:$0xff]  ;;  %v26_v1 = vld [vmem:[#allocation2 + $0x8] sm:$0xff]  ;;  %v5278_v6 = vmov 1983009808  }
   0x7   :  { %29 = vst [vmem:[#allocation1] ss:$2 sm:$0xff] %v25_v0  ;;  %v172_v7 = vunpack.c.l.s4 %v5278_v6  ;;  %v5279_v8 = vmov 1934713408   ;;  %vm169_vm0 = vcmask 1047556   ;;  %s5280_s0 = smov 4  }
   0x8   :  { %33 = vst [vmem:[#allocation1 + $0x10] ss:$2 sm:$0xff] %v26_v1  ;;  %v182_v9 = vunpack.c.l.s4 %v5279_v8  ;;  %s5281_s13 = smov 16   ;;  %s5282_s14 = smov 12   ;;  %vm4585_vm1 = vcmask 31744   ;;  %vm4588_vm2 = vcmask 64512  }
   0x9   :  { %v5327_v10 = vunpack.c.0.s8 %v172_v7  ;;  %s5283_s15 = smov 20   ;;  %s5284_s16 = smov 24   ;;  %vm4591_vm3 = vcmask 97280   ;;  %vm4594_vm4 = vcmask 130048   ;;  %vm4597_vm5 = vcmask 162816  }
   0xa   :  { %v5329_v11 = vunpack.c.0.s8 %v182_v9  ;;  %s9453_s17 = smov 28   ;;  %s5286_s18 = smov 32   ;;  %vm9495_vm6 = vcmask 195584   ;;  %vm9494_vm7 = vcmask 228352   ;;  %vm9492_vm8 = vcmask 261120  }
   0xb   :  { %s5287_s19 = smov 36   ;;  %s9447_s20 = smov 40   ;;  %vm9490_vm9 = vcmask 293888   ;;  %vm9491_vm10 = vcmask 326656   ;;  %vm9493_vm11 = vcmask 359424   ;;  %vm9471_vm12 = vcmask 392192  }
   0xc   :  { %s5289_s21 = smov 44   ;;  %s9444_s22 = smov 48   ;;  %vm9470_vm13 = vcmask 424960   ;;  %vm9472_vm14 = vcmask 457728   ;;  %vm9474_vm15 = vcmask 490496  }
   0xd   :  { %s5291_s23 = smov 96   ;;  %s5292_s24 = smov 52  }
   0xe   :  { %v30_v2 = vld.sshfl [vmem:[#allocation1] sm:$0xff pattern:$0x75316420]  ;;  %v31_v4 = vld.sshfl [vmem:[#allocation1 + $0x8] sm:$0xff pattern:$0x75316420] }
   0xf   :  { %v34_v3 = vld.sshfl [vmem:[#allocation1 + $0x10] sm:$0xff pattern:$0x75316420]  ;;  %40 = vxpose.xlu0.b32.start.end [1/1] (short) %v30_v2, 128  ;;  %v35_v5 = vld.sshfl [vmem:[#allocation1 + $0x18] sm:$0xff pattern:$0x75316420] }
  0x10   :  { %104 = vxpose.xlu1.b32.start.end [1/1] (short) %v34_v3, 128  ;;  %s5293_s25 = smov 100   ;;  %s5294_s26 = smov 104  }
  0x11   :  { %s5295_s27 = smov 56   ;;  %s5296_s28 = smov 108  }
  0x12   :  { %s5297_s29 = smov 112   ;;  %s5298_s30 = smov 116  }
  0x13   :  { %s9441_s2 = smov 60   ;;  %s5300_s3 = smov 120  }
  0x14   :  { %s5301_s4 = smov 124   ;;  %s5302_s5 = smov 64  }
  0x15   :  { %s9439_s6 = smov 68   ;;  %s5304_s7 = smov 72  }
  0x16   :  { %s5305_s8 = smov 76   ;;  %s9437_s9 = smov 80  }
  0x17   :  { %s5307_s10 = smov 84   ;;  %s5308_s11 = smov 88  }
  0x8f   :  { %72 = vxpose.xlu0.b32.start.end [1/1] (short) %v31_v4, 128 }
  0x90   :  { %136 = vxpose.xlu1.b32.start.end [1/1] (short) %v35_v5, 128 }
  0xb3   :  { %v56_v12 = vpop.trf.xlu0 }
  0xb4   :  { %v174_v13 = vperm.slane %v56_v12, %v5327_v10  ;;  %v120_v14 = vpop.trf.xlu1  ;;  %v168_v30 = vrot.slane %v56_v12, 4 }
  0xb5   :  { %v1390_v15 = vperm.slane %v120_v14, %v5327_v10  ;;  %v1385_v37 = vrot.slane %v120_v14, 4 }
  0xb6   :  { %v5334_v16 = vperm.slane %v174_v13, %v5329_v11  ;;  %v179_v23 = vrot.slane %v174_v13, 4  ;;  %v170_v33 = vsel %vm169_vm0, 0.0, %v168_v30 }
  0xb7   :  { %v5337_v17 = vperm.slane %v1390_v15, %v5329_v11  ;;  %v1395_v27 = vrot.slane %v1390_v15, 4  ;;  %v178_v36 = vperm.slane %v170_v33, %v5327_v10  ;;  %v1386_v39 = vsel %vm169_vm0, 0.0, %v1385_v37 }
  0xb8   :  { %9497 = vst [vmem:[#allocation8_spill] sm:$0xff] %v5334_v16  ;;  %v199_v18 = vrot.slane %v5334_v16, 4  ;;  %v180_v25 = vsel %vm169_vm0, 0.0, %v179_v23  ;;  %v1394_v42 = vperm.slane %v1386_v39, %v5327_v10 }
  0xb9   :  { %9498 = vst [vmem:[#allocation9_spill] sm:$0xff] %v5337_v17  ;;  %v1415_v20 = vrot.slane %v5337_v17, 4  ;;  %v188_v26 = vperm.slane %v180_v25, %v5329_v11  ;;  %v1396_v31 = vsel %vm169_vm0, 0.0, %v1395_v27  ;;  %v194_v38 = vperm.slane %v178_v36, %v5329_v11 }
  0xba   :  { %v200_v19 = vsel %vm169_vm0, 0.0, %v199_v18  ;;  %v1404_v32 = vperm.slane %v1396_v31, %v5329_v11  ;;  %v1410_v43 = vperm.slane %v1394_v42, %v5329_v11  ;;  %v189_v60 = vrot.slane %v178_v36, 4 }
  0xbb   :  { %2603 = vrot.lane.b32.xlu2 %v200_v19, %s5280_s0  ;;  %v1416_v22 = vsel %vm169_vm0, 0.0, %v1415_v20  ;;  %v5352_v28 = vpop.trf.xlu0  ;;  %v201_v46 = vrot.slane %v188_v26, 4  ;;  %v203_v53 = vrot.slane %v194_v38, 4  ;;  %v1405_v1 = vrot.slane %v1394_v42, 4 }
  0xbc   :  { %v5343_v21 = vpop.trf.xlu1  ;;  %v1417_v50 = vrot.slane %v1404_v32, 4  ;;  %v1419_v57 = vrot.slane %v1410_v43, 4  ;;  %v190_v62 = vsel %vm169_vm0, 0.0, %v189_v60  ;;  %v212_v20 = vperm.slane %v5352_v28, %v5327_v10 }
  0xbd   :  { %v202_v47 = vsel %vm169_vm0, 0.0, %v201_v46  ;;  %v204_v55 = vsel %vm169_vm0, 0.0, %v203_v53  ;;  %v198_v0 = vperm.slane %v190_v62, %v5329_v11  ;;  %v1406_v3 = vsel %vm169_vm0, 0.0, %v1405_v1 }
  0xbe   :  { %v1418_v51 = vsel %vm169_vm0, 0.0, %v1417_v50  ;;  %v1420_v59 = vsel %vm169_vm0, 0.0, %v1419_v57  ;;  %v1414_v5 = vperm.slane %v1406_v3, %v5329_v11  ;;  %v1428_v27 = vperm.slane %v5343_v21, %v5327_v10 }
  0xbf   :  { %v205_v8 = vrot.slane %v198_v0, 4  ;;  %v217_v46 = vrot.slane %v212_v20, 4 }
  0xc0   :  { %v1421_v15 = vrot.slane %v1414_v5, 4  ;;  %v5448_v33 = vperm.slane %v1428_v27, %v5329_v11  ;;  %v1433_v42 = vrot.slane %v1428_v27, 4 }
  0xc1   :  { %v206_v12 = vsel %vm169_vm0, 0.0, %v205_v8  ;;  %v207_v8 = vrot.slane %v5352_v28, 4 }
  0xc2   :  { %v1422_v19 = vsel %vm169_vm0, 0.0, %v1421_v15  ;;  %v1434_v50 = vsel %vm169_vm0, 0.0, %v1433_v42  ;;  %v1423_v42 = vrot.slane %v5343_v21, 4 }
  0xc3   :  { %2605 = vrot.lane.b32.xlu2 %v1416_v22, %s5280_s0  ;;  %v5360_v34 = vpop.trf.xlu0  ;;  %v1442_v57 = vperm.slane %v1434_v50, %v5329_v11 }
  0xc4   :  { %v5347_v24 = vpop.trf.xlu1  ;;  %v1424_v28 = vsel %vm169_vm0, 0.0, %v1423_v42 }
  0xcb   :  { %2611 = vrot.lane.b32.xlu2 %v188_v26, %s5277_s12  ;;  %v5368_v40 = vpop.trf.xlu0  ;;  %v222_v26 = vperm.slane %v212_v20, %v5329_v11 }
  0xcc   :  { %v5354_v29 = vpop.trf.xlu1  ;;  %v288_v21 = vperm.slane %v5368_v40, %v5327_v10 }
  0xd3   :  { %2613 = vrot.lane.b32.xlu2 %v1404_v32, %s5277_s12  ;;  %v5375_v44 = vpop.trf.xlu0 }
  0xd4   :  { %v5362_v35 = vpop.trf.xlu1 }
  0xdb   :  { %2627 = vrot.lane.b32.xlu2 %v194_v38, %s5281_s13  ;;  %v5383_v49 = vpop.trf.xlu0  ;;  %v237_v38 = vrot.slane %v222_v26, 4 }
  0xdc   :  { %v5370_v41 = vpop.trf.xlu1 }
  0xe3   :  { %2629 = vrot.lane.b32.xlu2 %v1410_v43, %s5281_s13  ;;  %v5389_v54 = vpop.trf.xlu0  ;;  %v238_v43 = vsel %vm169_vm0, 0.0, %v237_v38 }
  0xe4   :  { %v5377_v45 = vpop.trf.xlu1 }
  0xeb   :  { %2619 = vrot.lane.b32.xlu2 %v202_v47, %s5282_s14  ;;  %v5395_v58 = vpop.trf.xlu0 }
  0xec   :  { %v5381_v48 = vpop.trf.xlu1 }
  0xf3   :  { %2621 = vrot.lane.b32.xlu2 %v1418_v51, %s5282_s14  ;;  %v5402_v63 = vpop.trf.xlu0 }
  0xf4   :  { %v5387_v52 = vpop.trf.xlu1 }
  0xfb   :  { %2635 = vrot.lane.b32.xlu2 %v204_v55, %s5283_s15  ;;  %v5409_v4 = vpop.trf.xlu0  ;;  %v218_v55 = vsel %vm169_vm0, 0.0, %v217_v46 }
  0xfc   :  { %v5393_v56 = vpop.trf.xlu1 }
 0x103   :  { %2637 = vrot.lane.b32.xlu2 %v1420_v59, %s5283_s15  ;;  %v5417_v9 = vpop.trf.xlu0  ;;  %v226_v59 = vperm.slane %v218_v55, %v5329_v11 }
 0x104   :  { %v5399_v61 = vpop.trf.xlu1 }
 0x105   :  { %v239_v62 = vrot.slane %v226_v59, 4 }
 0x107   :  { %v240_v3 = vsel %vm169_vm0, 0.0, %v239_v62 }
 0x10b   :  { %2643 = vrot.lane.b32.xlu2 %v198_v0, %s5284_s16  ;;  %v5425_v18 = vpop.trf.xlu0 }
 0x10c   :  { %v5406_v2 = vpop.trf.xlu1 }
 0x113   :  { %2645 = vrot.lane.b32.xlu2 %v1414_v5, %s5284_s16  ;;  %v5435_v25 = vpop.trf.xlu0 }
 0x114   :  { %v5413_v6 = vpop.trf.xlu1 }
 0x115   :  { %v5415_v7 = vpop.permute.xlu2 %2603 }
 0x116   :  { %9499 = vst [vmem:[#allocation10_spill] sm:$0xff] %v5415_v7  ;;  %v5618_v7 = vperm.slane %v5360_v34, %v5327_v10 }
 0x11b   :  { %2651 = vrot.lane.b32.xlu2 %v206_v12, %s9453_s17  ;;  %v5445_v32 = vpop.trf.xlu0  ;;  %v1455_v12 = vrot.slane %v1442_v57, 4 }
 0x11c   :  { %v5421_v13 = vpop.trf.xlu1 }
 0x11d   :  { %v5423_v14 = vpop.permute.xlu2 %2605  ;;  %v1456_v20 = vsel %vm169_vm0, 0.0, %v1455_v12  ;;  %v298_v12 = vperm.slane %v288_v21, %v5329_v11 }
 0x11e   :  { %9500 = vst [vmem:[#allocation11_spill] sm:$0xff] %v5423_v14  ;;  %v260_v14 = vperm.slane %v5618_v7, %v5329_v11 }
 0x123   :  { %2653 = vrot.lane.b32.xlu2 %v1422_v19, %s9453_s17  ;;  %v5456_v39 = vpop.trf.xlu0  ;;  %v208_v19 = vsel %vm169_vm0, 0.0, %v207_v8 }
 0x124   :  { %v5431_v22 = vpop.trf.xlu1  ;;  %v216_v38 = vperm.slane %v208_v19, %v5327_v10 }
 0x125   :  { %v5433_v23 = vpop.permute.xlu2 %2611 }
 0x126   :  { %9501 = vst [vmem:[#allocation12_spill] sm:$0xff] %v5433_v23 }
 0x12b   :  { %2659 = vrot.lane.b32.xlu2 %v222_v26, %s5286_s18  ;;  %v5465_v53 = vpop.trf.xlu0 }
 0x12c   :  { %v5441_v30 = vpop.trf.xlu1 }
 0x12d   :  { %v5443_v31 = vpop.permute.xlu2 %2613 }
 0x12e   :  { %9502 = vst [vmem:[#allocation13_spill] sm:$0xff] %v5443_v31 }
 0x133   :  { %2661 = vrot.lane.b32.xlu2 %v5448_v33, %s5286_s18  ;;  %v5473_v0 = vpop.trf.xlu0 }
 0x134   :  { %v5452_v36 = vpop.trf.xlu1 }
 0x135   :  { %v5454_v37 = vpop.permute.xlu2 %2627 }
 0x136   :  { %9503 = vst [vmem:[#allocation14_spill] sm:$0xff] %v5454_v37 }
 0x13b   :  { %2667 = vrot.lane.b32.xlu2 %v238_v43, %s5287_s19  ;;  %v5482_v15 = vpop.trf.xlu0  ;;  %v232_v43 = vperm.slane %v216_v38, %v5329_v11 }
 0x13c   :  { %v5463_v51 = vpop.trf.xlu1 }
 0x13d   :  { %v5460_v47 = vpop.permute.xlu2 %2629  ;;  %v241_v19 = vrot.slane %v232_v43, 4 }
 0x13e   :  { %9504 = vst [vmem:[#allocation15_spill] sm:$0xff] %v5460_v47 }
 0x13f   :  { %v242_v42 = vsel %vm169_vm0, 0.0, %v241_v19  ;;  %v1453_v19 = vrot.slane %v5448_v33, 4 }
 0x143   :  { %2677 = vrot.lane.b32.xlu2 %v1442_v57, %s9447_s20  ;;  %v5496_v46 = vpop.trf.xlu0  ;;  %v1432_v57 = vperm.slane %v1424_v28, %v5327_v10  ;;  %v5520_v28 = vperm.slane %v5354_v29, %v5327_v10 }
 0x144   :  { %v5475_v1 = vpop.trf.xlu1 }
 0x145   :  { %v5471_v60 = vpop.permute.xlu2 %2619  ;;  %v1448_v62 = vperm.slane %v1432_v57, %v5329_v11  ;;  %v1509_v47 = vrot.slane %v5520_v28, 4 }
 0x146   :  { %9505 = vst [vmem:[#allocation16_spill] sm:$0xff] %v5471_v60 }
 0x14b   :  { %2683 = vrot.lane.b32.xlu2 %v240_v3, %s5289_s21  ;;  %v5510_v8 = vpop.trf.xlu0 }
 0x14c   :  { %v5486_v26 = vpop.trf.xlu1 }
 0x14d   :  { %v5479_v5 = vpop.permute.xlu2 %2621 }
 0x14e   :  { %9506 = vst [vmem:[#allocation17_spill] sm:$0xff] %v5479_v5 }
 0x153   :  { %2685 = vrot.lane.b32.xlu2 %v1456_v20, %s5289_s21  ;;  %v5525_v37 = vpop.trf.xlu0 }
 0x154   :  { %v5498_v50 = vpop.trf.xlu1  ;;  %9512 = vst [vmem:[#allocation23_spill] sm:$0xff] %v5525_v37 }
 0x155   :  { %v5489_v27 = vpop.permute.xlu2 %2635 }
 0x156   :  { %9507 = vst [vmem:[#allocation18_spill] sm:$0xff] %v5489_v27  ;;  %v1457_v27 = vrot.slane %v1448_v62, 4 }
 0x15b   :  { %2691 = vrot.lane.b32.xlu2 %v232_v43, %s9444_s22 }
 0x15c   :  { %v5513_v20 = vpop.trf.xlu1 }
 0x15d   :  { %v5500_v55 = vpop.permute.xlu2 %2637  ;;  %9510 = vst [vmem:[#allocation21_spill] sm:$0xff] %v5513_v20 }
 0x15e   :  { %9508 = vst [vmem:[#allocation19_spill] sm:$0xff] %v5500_v55  ;;  %v293_v55 = vrot.slane %v288_v21, 4  ;;  %v283_v21 = vrot.slane %v5368_v40, 4 }
 0x162   :  { %2675 = vrot.lane.b32.xlu1 %v226_v59, %s9447_s20  ;;  %v313_v59 = vrot.slane %v298_v12, 4 }
 0x163   :  { %2693 = vrot.lane.b32.xlu2 %v1448_v62, %s9444_s22  ;;  %v294_v62 = vsel %vm169_vm0, 0.0, %v293_v55  ;;  %v1499_v55 = vrot.slane %v5354_v29, 4 }
 0x164   :  { %v314_v43 = vsel %vm169_vm0, 0.0, %v313_v59  ;;  %v5529_v60 = vpop.trf.xlu1  ;;  %v1454_v59 = vsel %vm169_vm0, 0.0, %v1453_v19  ;;  %v5542_v5 = vperm.slane %v294_v62, %v5329_v11  ;;  %v5549_v19 = vpop.trf.xlu0 }
 0x165   :  { %v5508_v3 = vpop.permute.xlu2 %2643  ;;  %9513 = vst [vmem:[#allocation24_spill] sm:$0xff] %v5529_v60  ;;  %v1500_v62 = vsel %vm169_vm0, 0.0, %v1499_v55 }
 0x166   :  { %9509 = vst [vmem:[#allocation20_spill] sm:$0xff] %v5508_v3 }
 0x167   :  { %9515 = vst [vmem:[#allocation26_spill] sm:$0xff] %v5549_v19 }
 0x16a   :  { %2787 = vrot.lane.b32.xlu1 %v298_v12, %s5291_s23  ;;  %v1458_v12 = vsel %vm169_vm0, 0.0, %v1457_v27 }
 0x16b   :  { %2699 = vrot.lane.b32.xlu2 %v242_v42, %s5292_s24  ;;  %v227_v42 = vrot.slane %v216_v38, 4 }
 0x16d   :  { %v5522_v3 = vpop.permute.xlu2 %2645  ;;  %v228_v27 = vsel %vm169_vm0, 0.0, %v227_v42 }
 0x16e   :  { %9511 = vst [vmem:[#allocation22_spill] sm:$0xff] %v5522_v3  ;;  %v1510_v3 = vsel %vm169_vm0, 0.0, %v1509_v47  ;;  %v236_v40 = vperm.slane %v228_v27, %v5329_v11  ;;  %v1443_v47 = vrot.slane %v1432_v57, 4  ;;  %v1508_v27 = vperm.slane %v1500_v62, %v5327_v10 }
 0x16f   :  { %v1518_v38 = vperm.slane %v1510_v3, %v5329_v11 }
 0x170   :  { %v243_v62 = vrot.slane %v236_v40, 4  ;;  %v1519_v23 = vrot.slane %v1508_v27, 4 }
 0x171   :  { %v1531_v42 = vrot.slane %v1518_v38, 4 }
 0x172   :  { %2795 = vrot.lane.b32.xlu1 %v314_v43, %s5293_s25  ;;  %v284_v43 = vsel %vm169_vm0, 0.0, %v283_v21  ;;  %v1444_v21 = vsel %vm169_vm0, 0.0, %v1443_v47  ;;  %v244_v31 = vsel %vm169_vm0, 0.0, %v243_v62 }
 0x173   :  { %2701 = vrot.lane.b32.xlu2 %v1458_v12, %s5292_s24  ;;  %v5553_v12 = vpop.trf.xlu1  ;;  %v292_v3 = vperm.slane %v284_v43, %v5327_v10 }
 0x174   :  { %9516 = vst [vmem:[#allocation27_spill] sm:$0xff] %v5553_v12 }
 0x175   :  { %2669 = vrot.lane.b32.xlu0 %v1454_v59, %s5287_s19  ;;  %v5539_v33 = vpop.permute.xlu2 %2651  ;;  %v1532_v59 = vsel %vm169_vm0, 0.0, %v1531_v42  ;;  %v308_v57 = vperm.slane %v292_v3, %v5329_v11  ;;  %v303_v43 = vrot.slane %v292_v3, 4 }
 0x176   :  { %9514 = vst [vmem:[#allocation25_spill] sm:$0xff] %v5539_v33  ;;  %v1452_v33 = vperm.slane %v1444_v21, %v5329_v11 }
 0x177   :  { %v317_v55 = vrot.slane %v308_v57, 4 }
 0x179   :  { %v318_v21 = vsel %vm169_vm0, 0.0, %v317_v55  ;;  %v1459_v55 = vrot.slane %v1452_v33, 4 }
 0x17a   :  { %2803 = vrot.lane.b32.xlu1 %v5542_v5, %s5294_s26 }
 0x17b   :  { %2707 = vrot.lane.b32.xlu2 %v236_v40, %s5295_s27  ;;  %v5573_v47 = vpop.trf.xlu1 }
 0x17c   :  { %9519 = vst [vmem:[#allocation30_spill] sm:$0xff] %v5573_v47 }
 0x17d   :  { %2805 = vrot.lane.b32.xlu0 %v1518_v38, %s5294_s26  ;;  %v5559_v29 = vpop.permute.xlu2 %2653  ;;  %v5568_v38 = vpop.trf.xlu0 }
 0x17e   :  { %9517 = vst [vmem:[#allocation28_spill] sm:$0xff] %v5559_v29  ;;  %v5571_v29 = vperm.slane %v1508_v27, %v5329_v11  ;;  %v1520_v27 = vsel %vm169_vm0, 0.0, %v1519_v23  ;;  %v1460_v23 = vsel %vm169_vm0, 0.0, %v1459_v55 }
 0x17f   :  { %9518 = vst [vmem:[#allocation29_spill] sm:$0xff] %v5568_v38 }
 0x180   :  { %v1533_v3 = vrot.slane %v5571_v29, 4 }
 0x182   :  { %2813 = vrot.lane.b32.xlu1 %v1532_v59, %s5296_s28  ;;  %v304_v59 = vsel %vm169_vm0, 0.0, %v303_v43  ;;  %v1534_v40 = vsel %vm169_vm0, 0.0, %v1533_v3  ;;  %v5605_v3 = vperm.slane %v1520_v27, %v5329_v11 }
 0x183   :  { %2709 = vrot.lane.b32.xlu2 %v1452_v33, %s5295_s27  ;;  %v5584_v16 = vperm.slane %v304_v59, %v5329_v11 }
 0x185   :  { %v5575_v42 = vpop.permute.xlu2 %2659  ;;  %2819 = vrot.lane.b32.xlu0 %v308_v57, %s5297_s29  ;;  %v5594_v43 = vpop.trf.xlu0  ;;  %v319_v62 = vrot.slane %v5584_v16, 4 }
 0x186   :  { %9520 = vst [vmem:[#allocation31_spill] sm:$0xff] %v5575_v42  ;;  %v326_v42 = vperm.slane %v5375_v44, %v5327_v10 }
 0x187   :  { %9522 = vst [vmem:[#allocation33_spill] sm:$0xff] %v5594_v43  ;;  %v320_v33 = vsel %vm169_vm0, 0.0, %v319_v62 }
 0x188   :  { %v5600_v59 = vperm.slane %v326_v42, %v5329_v11  ;;  %v331_v27 = vrot.slane %v326_v42, 4 }
 0x18a   :  { %2827 = vrot.lane.b32.xlu1 %v318_v21, %s5298_s30  ;;  %v5597_v21 = vpop.trf.xlu1  ;;  %9524 = vst [vmem:[#allocation35_spill] sm:$0xff] %v5600_v59  ;;  %v332_v47 = vsel %vm169_vm0, 0.0, %v331_v27  ;;  %v1537_v27 = vrot.slane %v5362_v35, 4 }
 0x18b   :  { %2715 = vrot.lane.b32.xlu2 %v244_v31, %s9441_s2  ;;  %9523 = vst [vmem:[#allocation34_spill] sm:$0xff] %v5597_v21  ;;  %v1542_v31 = vperm.slane %v5362_v35, %v5327_v10 }
 0x18d   :  { %v5590_v57 = vpop.permute.xlu2 %2661  ;;  %2829 = vrot.lane.b32.xlu0 %v1534_v40, %s5298_s30  ;;  %v351_v40 = vrot.slane %v5600_v59, 4  ;;  %v5624_v62 = vpop.trf.xlu0  ;;  %v1547_v21 = vrot.slane %v1542_v31, 4 }
 0x18e   :  { %9521 = vst [vmem:[#allocation32_spill] sm:$0xff] %v5590_v57  ;;  %v5614_v57 = vperm.slane %v1542_v31, %v5329_v11 }
 0x18f   :  { %v352_v55 = vsel %vm169_vm0, 0.0, %v351_v40  ;;  %9527 = vst [vmem:[#allocation38_spill] sm:$0xff] %v5624_v62  ;;  %v5640_v40 = vperm.slane %v5347_v24, %v5327_v10  ;;  %v1548_v31 = vsel %vm169_vm0, 0.0, %v1547_v21 }
 0x190   :  { %9525 = vst [vmem:[#allocation36_spill] sm:$0xff] %v5614_v57 }
 0x192   :  { %2837 = vrot.lane.b32.xlu1 %v5605_v3, %s5300_s3  ;;  %v5627_v59 = vpop.trf.xlu1 }
 0x193   :  { %2717 = vrot.lane.b32.xlu2 %v1460_v23, %s9441_s2  ;;  %v1567_v23 = vrot.slane %v5614_v57, 4  ;;  %9528 = vst [vmem:[#allocation39_spill] sm:$0xff] %v5627_v59  ;;  %v321_v57 = vrot.slane %v5375_v44, 4  ;;  %v1476_v59 = vperm.slane %v5640_v40, %v5329_v11  ;;  %v1538_v44 = vsel %vm169_vm0, 0.0, %v1537_v27 }
 0x195   :  { %v5620_v17 = vpop.permute.xlu2 %2667  ;;  %2843 = vrot.lane.b32.xlu0 %v320_v33, %s5301_s4  ;;  %v1568_v42 = vsel %vm169_vm0, 0.0, %v1567_v23  ;;  %v5636_v33 = vperm.slane %v332_v47, %v5329_v11  ;;  %v322_v23 = vsel %vm169_vm0, 0.0, %v321_v57  ;;  %v5655_v62 = vpop.trf.xlu0  ;;  %v1546_v57 = vperm.slane %v1538_v44, %v5327_v10 }
 0x196   :  { %9526 = vst [vmem:[#allocation37_spill] sm:$0xff] %v5620_v17  ;;  %v1491_v12 = vrot.slane %v1476_v59, 4 }
 0x197   :  { %v353_v47 = vrot.slane %v5636_v33, 4  ;;  %9530 = vst [vmem:[#allocation41_spill] sm:$0xff] %v5655_v62  ;;  %v1562_v62 = vperm.slane %v1546_v57, %v5329_v11 }
 0x199   :  { %v354_v35 = vsel %vm169_vm0, 0.0, %v353_v47 }
 0x19a   :  { %2851 = vrot.lane.b32.xlu1 %v352_v55, %s5280_s0  ;;  %v5649_v55 = vperm.slane %v1548_v31, %v5329_v11  ;;  %v5660_v21 = vpop.trf.xlu1 }
 0x19b   :  { %2723 = vrot.lane.b32.xlu2 %v260_v14, %s5302_s5  ;;  %9531 = vst [vmem:[#allocation42_spill] sm:$0xff] %v5660_v21 }
 0x19d   :  { %v5643_v17 = vpop.permute.xlu2 %2677  ;;  %2853 = vrot.lane.b32.xlu0 %v1568_v42, %s5280_s0  ;;  %v330_v42 = vperm.slane %v322_v23, %v5327_v10  ;;  %v5677_v23 = vpop.trf.xlu0 }
 0x19e   :  { %9529 = vst [vmem:[#allocation40_spill] sm:$0xff] %v5643_v17  ;;  %v275_v17 = vrot.slane %v260_v14, 4  ;;  %v1557_v14 = vrot.slane %v1546_v57, 4 }
 0x19f   :  { %v5670_v27 = vperm.slane %v330_v42, %v5329_v11  ;;  %v341_v47 = vrot.slane %v330_v42, 4  ;;  %9533 = vst [vmem:[#allocation44_spill] sm:$0xff] %v5677_v23 }
 0x1a0   :  { %v276_v21 = vsel %vm169_vm0, 0.0, %v275_v17  ;;  %v1558_v42 = vsel %vm169_vm0, 0.0, %v1557_v14  ;;  %v1471_v14 = vrot.slane %v5640_v40, 4 }
 0x1a1   :  { %v342_v43 = vsel %vm169_vm0, 0.0, %v341_v47  ;;  %v5693_v57 = vperm.slane %v1558_v42, %v5329_v11 }
 0x1a2   :  { %2861 = vrot.lane.b32.xlu1 %v5649_v55, %s5277_s12  ;;  %v350_v17 = vperm.slane %v342_v43, %v5329_v11 }
 0x1a3   :  { %2725 = vrot.lane.b32.xlu2 %v1476_v59, %s5302_s5 }
 0x1a5   :  { %v5665_v31 = vpop.permute.xlu2 %2683  ;;  %2867 = vrot.lane.b32.xlu0 %v354_v35, %s5282_s14  ;;  %v5679_v35 = vpop.trf.xlu1 }
 0x1a6   :  { %9532 = vst [vmem:[#allocation43_spill] sm:$0xff] %v5665_v31  ;;  %v1571_v31 = vrot.slane %v1562_v62, 4 }
 0x1a7   :  { %9534 = vst [vmem:[#allocation45_spill] sm:$0xff] %v5679_v35  ;;  %v1492_v35 = vsel %vm169_vm0, 0.0, %v1491_v12  ;;  %v1573_v12 = vrot.slane %v5693_v57, 4 }
 0x1a8   :  { %v1572_v60 = vsel %vm169_vm0, 0.0, %v1571_v31  ;;  %v5698_v31 = vpop.trf.xlu0 }
 0x1a9   :  { %9537 = vst [vmem:[#allocation48_spill] sm:$0xff] %v5698_v31 }
 0x1aa   :  { %2875 = vrot.lane.b32.xlu1 %v5670_v27, %s5281_s13 }
 0x1ab   :  { %2731 = vrot.lane.b32.xlu2 %v276_v21, %s9439_s6  ;;  %v255_v21 = vrot.slane %v5618_v7, 4 }
 0x1ad   :  { %v5681_v44 = vpop.permute.xlu2 %2685  ;;  %2877 = vrot.lane.b32.xlu0 %v1562_v62, %s5281_s13  ;;  %v357_v62 = vrot.slane %v350_v17, 4  ;;  %v5700_v43 = vpop.trf.xlu1  ;;  %v256_v7 = vsel %vm169_vm0, 0.0, %v255_v21  ;;  %v1574_v21 = vsel %vm169_vm0, 0.0, %v1573_v12 }
 0x1ae   :  { %9535 = vst [vmem:[#allocation46_spill] sm:$0xff] %v5681_v44 }
 0x1af   :  { %9538 = vst [vmem:[#allocation49_spill] sm:$0xff] %v5700_v43  ;;  %v358_v47 = vsel %vm169_vm0, 0.0, %v357_v62  ;;  %v1472_v62 = vsel %vm169_vm0, 0.0, %v1471_v14 }
 0x1b0   :  { %v5721_v40 = vpop.trf.xlu0  ;;  %v1480_v31 = vperm.slane %v1472_v62, %v5329_v11  ;;  %v1575_v62 = vrot.slane %v5370_v41, 4 }
 0x1b1   :  { %9540 = vst [vmem:[#allocation51_spill] sm:$0xff] %v5721_v40 }
 0x1b2   :  { %2885 = vrot.lane.b32.xlu1 %v1572_v60, %s5283_s15  ;;  %v364_v60 = vperm.slane %v5383_v49, %v5327_v10 }
 0x1b3   :  { %2733 = vrot.lane.b32.xlu2 %v1492_v35, %s9439_s6  ;;  %v264_v35 = vperm.slane %v256_v7, %v5329_v11 }
 0x1b4   :  { %v5714_v42 = vperm.slane %v364_v60, %v5329_v11  ;;  %v369_v43 = vrot.slane %v364_v60, 4 }
 0x1b5   :  { %v5695_v59 = vpop.permute.xlu2 %2691  ;;  %2891 = vrot.lane.b32.xlu0 %v350_v17, %s5284_s16  ;;  %v1580_v17 = vperm.slane %v5370_v41, %v5327_v10 }
 0x1b6   :  { %9536 = vst [vmem:[#allocation47_spill] sm:$0xff] %v5695_v59  ;;  %v389_v44 = vrot.slane %v5714_v42, 4 }
 0x1b7   :  { %v5724_v7 = vperm.slane %v1580_v17, %v5329_v11  ;;  %v1585_v23 = vrot.slane %v1580_v17, 4 }
 0x1b8   :  { %v390_v12 = vsel %vm169_vm0, 0.0, %v389_v44  ;;  %v5745_v38 = vpop.trf.xlu0 }
 0x1b9   :  { %v1586_v60 = vsel %vm169_vm0, 0.0, %v1585_v23  ;;  %9543 = vst [vmem:[#allocation54_spill] sm:$0xff] %v5745_v38  ;;  %v1576_v23 = vsel %vm169_vm0, 0.0, %v1575_v62 }
 0x1ba   :  { %2899 = vrot.lane.b32.xlu1 %v358_v47, %s9453_s17  ;;  %v5726_v47 = vpop.trf.xlu1  ;;  %v1594_v40 = vperm.slane %v1586_v60, %v5329_v11  ;;  %v1584_v60 = vperm.slane %v1576_v23, %v5327_v10 }
 0x1bb   :  { %2739 = vrot.lane.b32.xlu2 %v264_v35, %s5304_s7  ;;  %9541 = vst [vmem:[#allocation52_spill] sm:$0xff] %v5726_v47  ;;  %v277_v47 = vrot.slane %v264_v35, 4 }
 0x1bc   :  { %v1607_v41 = vrot.slane %v1594_v40, 4 }
 0x1bd   :  { %v5717_v59 = vpop.permute.xlu2 %2693  ;;  %2901 = vrot.lane.b32.xlu0 %v1574_v21, %s9453_s17  ;;  %v370_v21 = vsel %vm169_vm0, 0.0, %v369_v43 }
 0x1be   :  { %9539 = vst [vmem:[#allocation50_spill] sm:$0xff] %v5717_v59  ;;  %v359_v59 = vrot.slane %v5383_v49, 4  ;;  %v5741_v17 = vperm.slane %v370_v21, %v5329_v11  ;;  %v278_v49 = vsel %vm169_vm0, 0.0, %v277_v47  ;;  %v1493_v21 = vrot.slane %v1480_v31, 4 }
 0x1c0   :  { %v360_v44 = vsel %vm169_vm0, 0.0, %v359_v59  ;;  %v245_v59 = vrot.slane %v5360_v34, 4  ;;  %v1494_v62 = vsel %vm169_vm0, 0.0, %v1493_v21  ;;  %v5772_v34 = vperm.slane %v1584_v60, %v5329_v11 }
 0x1c2   :  { %2909 = vrot.lane.b32.xlu1 %v5724_v7, %s5286_s18  ;;  %v5750_v43 = vpop.trf.xlu1  ;;  %v1609_v21 = vrot.slane %v5772_v34, 4 }
 0x1c3   :  { %2741 = vrot.lane.b32.xlu2 %v1480_v31, %s5304_s7  ;;  %9544 = vst [vmem:[#allocation55_spill] sm:$0xff] %v5750_v43 }
 0x1c5   :  { %v5734_v14 = vpop.permute.xlu2 %2699  ;;  %2915 = vrot.lane.b32.xlu0 %v390_v12, %s5287_s19  ;;  %v368_v12 = vperm.slane %v360_v44, %v5327_v10 }
 0x1c6   :  { %9542 = vst [vmem:[#allocation53_spill] sm:$0xff] %v5734_v14  ;;  %v1608_v14 = vsel %vm169_vm0, 0.0, %v1607_v41 }
 0x1c7   :  { %v384_v47 = vperm.slane %v368_v12, %v5329_v11  ;;  %v379_v23 = vrot.slane %v368_v12, 4 }
 0x1c9   :  { %v393_v41 = vrot.slane %v384_v47, 4  ;;  %v380_v43 = vsel %vm169_vm0, 0.0, %v379_v23 }
 0x1ca   :  { %2923 = vrot.lane.b32.xlu1 %v5741_v17, %s9447_s20 }
 0x1cb   :  { %2747 = vrot.lane.b32.xlu2 %v278_v49, %s5305_s8  ;;  %v246_v49 = vsel %vm169_vm0, 0.0, %v245_v59 }
 0x1cc   :  { %v5778_v59 = vperm.slane %v246_v49, %v5327_v10 }
 0x1cd   :  { %v5755_v35 = vpop.permute.xlu2 %2701  ;;  %2925 = vrot.lane.b32.xlu0 %v1594_v40, %s9447_s20  ;;  %v5767_v40 = vpop.trf.xlu0 }
 0x1ce   :  { %9545 = vst [vmem:[#allocation56_spill] sm:$0xff] %v5755_v35  ;;  %v270_v35 = vperm.slane %v5778_v59, %v5329_v11 }
 0x1cf   :  { %9546 = vst [vmem:[#allocation57_spill] sm:$0xff] %v5767_v40 }
 0x1d2   :  { %2933 = vrot.lane.b32.xlu1 %v1608_v14, %s5289_s21  ;;  %v1461_v14 = vrot.slane %v5347_v24, 4  ;;  %v1610_v24 = vsel %vm169_vm0, 0.0, %v1609_v21 }
 0x1d3   :  { %2749 = vrot.lane.b32.xlu2 %v1494_v62, %s5305_s8  ;;  %v394_v62 = vsel %vm169_vm0, 0.0, %v393_v41 }
 0x1d4   :  { %v5769_v44 = vpop.permute.xlu1 %2675 }
 0x1d5   :  { %9547 = vst [vmem:[#allocation58_spill] sm:$0xff] %v5769_v44  ;;  %v5774_v31 = vpop.permute.xlu2 %2707  ;;  %2939 = vrot.lane.b32.xlu0 %v384_v47, %s9444_s22  ;;  %v1595_v44 = vrot.slane %v1584_v60, 4  ;;  %v5793_v47 = vperm.slane %v380_v43, %v5329_v11  ;;  %v5798_v60 = vpop.trf.xlu0  ;;  %v402_v43 = vperm.slane %v5389_v54, %v5327_v10 }
 0x1d6   :  { %9548 = vst [vmem:[#allocation59_spill] sm:$0xff] %v5774_v31  ;;  %v1462_v31 = vsel %vm169_vm0, 0.0, %v1461_v14 }
 0x1d7   :  { %9551 = vst [vmem:[#allocation62_spill] sm:$0xff] %v5798_v60  ;;  %v1596_v23 = vsel %vm169_vm0, 0.0, %v1595_v44  ;;  %v1470_v41 = vperm.slane %v1462_v31, %v5327_v10  ;;  %v1618_v31 = vperm.slane %v5377_v45, %v5327_v10  ;;  %v5823_v60 = vperm.slane %v402_v43, %v5329_v11 }
 0x1d8   :  { %v5803_v14 = vperm.slane %v1596_v23, %v5329_v11  ;;  %v407_v38 = vrot.slane %v402_v43, 4 }
 0x1d9   :  { %v1486_v21 = vperm.slane %v1470_v41, %v5329_v11  ;;  %v1628_v40 = vperm.slane %v1618_v31, %v5329_v11 }
 0x1da   :  { %2947 = vrot.lane.b32.xlu1 %v394_v62, %s5292_s24  ;;  %v395_v62 = vrot.slane %v5793_v47, 4  ;;  %v408_v20 = vsel %vm169_vm0, 0.0, %v407_v38 }
 0x1db   :  { %2755 = vrot.lane.b32.xlu2 %v270_v35, %s9437_s9 }
 0x1dc   :  { %v5789_v12 = vpop.permute.xlu1 %2787  ;;  %v396_v44 = vsel %vm169_vm0, 0.0, %v395_v62 }
 0x1dd   :  { %9549 = vst [vmem:[#allocation60_spill] sm:$0xff] %v5789_v12  ;;  %v5795_v49 = vpop.permute.xlu2 %2709  ;;  %2949 = vrot.lane.b32.xlu0 %v1610_v24, %s5292_s24  ;;  %v279_v12 = vrot.slane %v270_v35, 4 }
 0x1de   :  { %9550 = vst [vmem:[#allocation61_spill] sm:$0xff] %v5795_v49 }
 0x1df   :  { %v280_v62 = vsel %vm169_vm0, 0.0, %v279_v12  ;;  %v397_v12 = vrot.slane %v5389_v54, 4 }
 0x1e1   :  { %v398_v54 = vsel %vm169_vm0, 0.0, %v397_v12  ;;  %v1481_v12 = vrot.slane %v1470_v41, 4 }
 0x1e2   :  { %2957 = vrot.lane.b32.xlu1 %v5803_v14, %s5295_s27 }
 0x1e3   :  { %2757 = vrot.lane.b32.xlu2 %v1486_v21, %s9437_s9 }
 0x1e4   :  { %v5812_v24 = vpop.permute.xlu1 %2795 }
 0x1e5   :  { %9552 = vst [vmem:[#allocation63_spill] sm:$0xff] %v5812_v24  ;;  %v5817_v23 = vpop.permute.xlu2 %2715  ;;  %2963 = vrot.lane.b32.xlu0 %v396_v44, %s9441_s2  ;;  %v1623_v44 = vrot.slane %v1618_v31, 4 }
 0x1e6   :  { %9553 = vst [vmem:[#allocation64_spill] sm:$0xff] %v5817_v23  ;;  %v1643_v23 = vrot.slane %v1628_v40, 4 }
 0x1e7   :  { %v5820_v49 = vpop.permute.xlu0 %2669  ;;  %v1624_v19 = vsel %vm169_vm0, 0.0, %v1623_v44 }
 0x1e8   :  { %9554 = vst [vmem:[#allocation65_spill] sm:$0xff] %v5820_v49  ;;  %v1495_v49 = vrot.slane %v1486_v21, 4  ;;  %v1644_v37 = vsel %vm169_vm0, 0.0, %v1643_v23  ;;  %v5849_v38 = vperm.slane %v1624_v19, %v5329_v11  ;;  %v1613_v21 = vrot.slane %v5377_v45, 4 }
 0x1ea   :  { %2971 = vrot.lane.b32.xlu1 %v5823_v60, %s5302_s5  ;;  %v1496_v31 = vsel %vm169_vm0, 0.0, %v1495_v49  ;;  %v1645_v44 = vrot.slane %v5849_v38, 4  ;;  %v1614_v19 = vsel %vm169_vm0, 0.0, %v1613_v21 }
 0x1eb   :  { %2763 = vrot.lane.b32.xlu2 %v280_v62, %s5307_s10  ;;  %v416_v62 = vperm.slane %v408_v20, %v5329_v11 }
 0x1ec   :  { %v5830_v24 = vpop.permute.xlu1 %2803 }
 0x1ed   :  { %9555 = vst [vmem:[#allocation66_spill] sm:$0xff] %v5830_v24  ;;  %v5832_v35 = vpop.permute.xlu2 %2717  ;;  %2973 = vrot.lane.b32.xlu0 %v1628_v40, %s5302_s5  ;;  %v265_v24 = vrot.slane %v5778_v59, 4  ;;  %v406_v59 = vperm.slane %v398_v54, %v5327_v10  ;;  %v1646_v54 = vsel %vm169_vm0, 0.0, %v1645_v44 }
 0x1ee   :  { %9556 = vst [vmem:[#allocation67_spill] sm:$0xff] %v5832_v35 }
 0x1ef   :  { %v5836_v43 = vpop.permute.xlu0 %2805  ;;  %v266_v20 = vsel %vm169_vm0, 0.0, %v265_v24  ;;  %v1622_v24 = vperm.slane %v1614_v19, %v5327_v10 }
 0x1f0   :  { %9557 = vst [vmem:[#allocation68_spill] sm:$0xff] %v5836_v43  ;;  %v274_v45 = vperm.slane %v266_v20, %v5329_v11 }
 0x1f1   :  { %v5880_v41 = vperm.slane %v1622_v24, %v5329_v11  ;;  %v1633_v44 = vrot.slane %v1622_v24, 4 }
 0x1f2   :  { %2981 = vrot.lane.b32.xlu1 %v1644_v37, %s9439_s6  ;;  %v429_v37 = vrot.slane %v416_v62, 4  ;;  %v281_v43 = vrot.slane %v274_v45, 4 }
 0x1f3   :  { %2765 = vrot.lane.b32.xlu2 %v1496_v31, %s5307_s10 }
 0x1f4   :  { %v5846_v40 = vpop.permute.xlu1 %2813  ;;  %v430_v31 = vsel %vm169_vm0, 0.0, %v429_v37  ;;  %v1482_v37 = vsel %vm169_vm0, 0.0, %v1481_v12 }
 0x1f5   :  { %9558 = vst [vmem:[#allocation69_spill] sm:$0xff] %v5846_v40  ;;  %v5853_v23 = vpop.permute.xlu2 %2723  ;;  %2987 = vrot.lane.b32.xlu0 %v416_v62, %s5304_s7  ;;  %v5871_v40 = vperm.slane %v406_v59, %v5329_v11 }
 0x1f6   :  { %9559 = vst [vmem:[#allocation70_spill] sm:$0xff] %v5853_v23 }
 0x1f7   :  { %v5857_v49 = vpop.permute.xlu0 %2819  ;;  %v431_v19 = vrot.slane %v5871_v40, 4 }
 0x1f8   :  { %9560 = vst [vmem:[#allocation71_spill] sm:$0xff] %v5857_v49 }
 0x1f9   :  { %v432_v12 = vsel %vm169_vm0, 0.0, %v431_v19  ;;  %v282_v19 = vsel %vm169_vm0, 0.0, %v281_v43 }
 0x1fa   :  { %2995 = vrot.lane.b32.xlu1 %v430_v31, %s5305_s8  ;;  %v417_v31 = vrot.slane %v406_v59, 4  ;;  %v1634_v59 = vsel %vm169_vm0, 0.0, %v1633_v44 }
 0x1fb   :  { %2771 = vrot.lane.b32.xlu2 %v274_v45, %s5308_s11  ;;  %v440_v45 = vperm.slane %v5395_v58, %v5327_v10 }
 0x1fc   :  { %v5867_v62 = vpop.permute.xlu1 %2827 }
 0x1fd   :  { %9561 = vst [vmem:[#allocation72_spill] sm:$0xff] %v5867_v62  ;;  %v5873_v21 = vpop.permute.xlu2 %2725  ;;  %2997 = vrot.lane.b32.xlu0 %v1646_v54, %s5305_s8  ;;  %v1490_v62 = vperm.slane %v1482_v37, %v5329_v11  ;;  %v450_v43 = vperm.slane %v440_v45, %v5329_v11 }
 0x1fe   :  { %9562 = vst [vmem:[#allocation73_spill] sm:$0xff] %v5873_v21  ;;  %v1642_v21 = vperm.slane %v1634_v59, %v5329_v11 }
 0x1ff   :  { %v5877_v20 = vpop.permute.xlu0 %2829  ;;  %v1497_v44 = vrot.slane %v1490_v62, 4  ;;  %v465_v23 = vrot.slane %v450_v43, 4 }
 0x200   :  { %9563 = vst [vmem:[#allocation74_spill] sm:$0xff] %v5877_v20  ;;  %v418_v20 = vsel %vm169_vm0, 0.0, %v417_v31 }
 0x201   :  { %v5898_v24 = vperm.slane %v418_v20, %v5329_v11  ;;  %v1649_v20 = vrot.slane %v1642_v21, 4 }
 0x202   :  { %3005 = vrot.lane.b32.xlu1 %v5880_v41, %s9437_s9  ;;  %s5309_s9 = smov 92  }
 0x203   :  { %2773 = vrot.lane.b32.xlu2 %v1490_v62, %s5308_s11  ;;  %v445_v62 = vrot.slane %v440_v45, 4 }
 0x204   :  { %v5887_v49 = vpop.permute.xlu1 %2837 }
 0x205   :  { %9564 = vst [vmem:[#allocation75_spill] sm:$0xff] %v5887_v49  ;;  %v5890_v54 = vpop.permute.xlu2 %2731  ;;  %3011 = vrot.lane.b32.xlu0 %v432_v12, %s5307_s10  ;;  %v1656_v49 = vperm.slane %v5381_v48, %v5327_v10 }
 0x206   :  { %9565 = vst [vmem:[#allocation76_spill] sm:$0xff] %v5890_v54 }
 0x207   :  { %v5895_v37 = vpop.permute.xlu0 %2843 }
 0x208   :  { %9566 = vst [vmem:[#allocation77_spill] sm:$0xff] %v5895_v37  ;;  %v1498_v37 = vsel %vm169_vm0, 0.0, %v1497_v44  ;;  %v446_v44 = vsel %vm169_vm0, 0.0, %v445_v62  ;;  %v435_v62 = vrot.slane %v5395_v58, 4 }
 0x20a   :  { %3019 = vrot.lane.b32.xlu1 %v5898_v24, %s5308_s11 }
 0x20b   :  { %2779 = vrot.lane.b32.xlu2 %v282_v19, %s5309_s9  ;;  %v1650_v19 = vsel %vm169_vm0, 0.0, %v1649_v20 }
 0x20c   :  { %v5905_v12 = vpop.permute.xlu1 %2851 }
 0x20d   :  { %9567 = vst [vmem:[#allocation78_spill] sm:$0xff] %v5905_v12  ;;  %v5909_v31 = vpop.permute.xlu2 %2733  ;;  %3021 = vrot.lane.b32.xlu0 %v1642_v21, %s5308_s11 }
 0x20e   :  { %9568 = vst [vmem:[#allocation79_spill] sm:$0xff] %v5909_v31  ;;  %v5922_v31 = vperm.slane %v1656_v49, %v5329_v11 }
 0x20f   :  { %v5912_v59 = vpop.permute.xlu0 %2853 }
 0x210   :  { %9569 = vst [vmem:[#allocation80_spill] sm:$0xff] %v5912_v59  ;;  %v1681_v20 = vrot.slane %v5922_v31, 4  ;;  %v1514_v59 = vperm.slane %v5520_v28, %v5329_v11  ;;  %v1651_v28 = vrot.slane %v5381_v48, 4 }
 0x212   :  { %3029 = vrot.lane.b32.xlu1 %v1650_v19, %s5309_s9  ;;  %v1661_v19 = vrot.slane %v1656_v49, 4 }
 0x213   :  { %2781 = vrot.lane.b32.xlu2 %v1498_v37, %s5309_s9  ;;  %v466_v37 = vsel %vm169_vm0, 0.0, %v465_v23  ;;  %v1529_v23 = vrot.slane %v1514_v59, 4 }
 0x214   :  { %v5924_v21 = vpop.permute.xlu1 %2861  ;;  %v1662_v49 = vsel %vm169_vm0, 0.0, %v1661_v19  ;;  %v1652_v19 = vsel %vm169_vm0, 0.0, %v1651_v28 }
 0x215   :  { %9570 = vst [vmem:[#allocation81_spill] sm:$0xff] %v5924_v21  ;;  %v5926_v54 = vpop.permute.xlu2 %2739  ;;  %3035 = vrot.lane.b32.xlu0 %v450_v43, %s5291_s23  ;;  %v1682_v43 = vsel %vm169_vm0, 0.0, %v1681_v20  ;;  %v1530_v58 = vsel %vm169_vm0, 0.0, %v1529_v23 }
 0x216   :  { %9571 = vst [vmem:[#allocation82_spill] sm:$0xff] %v5926_v54  ;;  %v5942_v54 = vperm.slane %v446_v44, %v5329_v11  ;;  %v436_v44 = vsel %vm169_vm0, 0.0, %v435_v62  ;;  %v315_v62 = vrot.slane %v5542_v5, 4 }
 0x217   :  { %v5929_v35 = vpop.permute.xlu0 %2867  ;;  %v444_v48 = vperm.slane %v436_v44, %v5327_v10 }
 0x218   :  { %9572 = vst [vmem:[#allocation83_spill] sm:$0xff] %v5929_v35  ;;  %v467_v20 = vrot.slane %v5942_v54, 4 }
 0x219   :  { %v5974_v23 = vperm.slane %v444_v48, %v5329_v11  ;;  %v455_v44 = vrot.slane %v444_v48, 4 }
 0x21a   :  { %3043 = vrot.lane.b32.xlu1 %v466_v37, %s5293_s25 }
 0x21b   :  { %2789 = vrot.lane.b32.xlu2 %v1514_v59, %s5291_s23 }
 0x21c   :  { %v5938_v45 = vpop.permute.xlu1 %2875 }
 0x21d   :  { %9573 = vst [vmem:[#allocation84_spill] sm:$0xff] %v5938_v45  ;;  %v5946_v21 = vpop.permute.xlu2 %2741  ;;  %3045 = vrot.lane.b32.xlu0 %v1682_v43, %s5293_s25  ;;  %v5953_v45 = vperm.slane %v1662_v49, %v5329_v11  ;;  %v468_v43 = vsel %vm169_vm0, 0.0, %v467_v20  ;;  %v1660_v49 = vperm.slane %v1652_v19, %v5327_v10  ;;  %v316_v20 = vsel %vm169_vm0, 0.0, %v315_v62 }
 0x21e   :  { %9574 = vst [vmem:[#allocation85_spill] sm:$0xff] %v5946_v21 }
 0x21f   :  { %v5950_v37 = vpop.permute.xlu0 %2877 }
 0x220   :  { %9575 = vst [vmem:[#allocation86_spill] sm:$0xff] %v5950_v37 }
 0x222   :  { %3053 = vrot.lane.b32.xlu1 %v5953_v45, %s5294_s26 }
 0x223   :  { %2797 = vrot.lane.b32.xlu2 %v1530_v58, %s5293_s25  ;;  %v1676_v58 = vperm.slane %v1660_v49, %v5329_v11 }
 0x224   :  { %v5963_v59 = vpop.permute.xlu1 %2885 }
 0x225   :  { %9576 = vst [vmem:[#allocation87_spill] sm:$0xff] %v5963_v59  ;;  %v5967_v21 = vpop.permute.xlu2 %2747  ;;  %3059 = vrot.lane.b32.xlu0 %v468_v43, %s5296_s28  ;;  %v1671_v43 = vrot.slane %v1660_v49, 4  ;;  %v1685_v5 = vrot.slane %v1676_v58, 4  ;;  %v456_v59 = vsel %vm169_vm0, 0.0, %v455_v44 }
 0x226   :  { %9577 = vst [vmem:[#allocation88_spill] sm:$0xff] %v5967_v21  ;;  %v464_v37 = vperm.slane %v456_v59, %v5329_v11 }
 0x227   :  { %v5971_v28 = vpop.permute.xlu0 %2891  ;;  %v1686_v48 = vsel %vm169_vm0, 0.0, %v1685_v5  ;;  %v1672_v62 = vsel %vm169_vm0, 0.0, %v1671_v43  ;;  %v6007_v43 = vperm.slane %v5402_v63, %v5327_v10 }
 0x228   :  { %9578 = vst [vmem:[#allocation89_spill] sm:$0xff] %v5971_v28  ;;  %v471_v59 = vrot.slane %v464_v37, 4 }
 0x22a   :  { %3067 = vrot.lane.b32.xlu1 %v5974_v23, %s5297_s29 }
 0x22b   :  { %2811 = vrot.lane.b32.xlu2 %v316_v20, %s5296_s28  ;;  %v5998_v20 = vperm.slane %v1672_v62, %v5329_v11  ;;  %v472_v62 = vsel %vm169_vm0, 0.0, %v471_v59  ;;  %v1535_v59 = vrot.slane %v5605_v3, 4 }
 0x22c   :  { %v5981_v19 = vpop.permute.xlu1 %2899 }
 0x22d   :  { %9579 = vst [vmem:[#allocation90_spill] sm:$0xff] %v5981_v19  ;;  %v5983_v21 = vpop.permute.xlu2 %2749  ;;  %3069 = vrot.lane.b32.xlu0 %v1676_v58, %s5297_s29  ;;  %v1694_v58 = vperm.slane %v5387_v52, %v5327_v10 }
 0x22e   :  { %9580 = vst [vmem:[#allocation91_spill] sm:$0xff] %v5983_v21  ;;  %v483_v21 = vrot.slane %v6007_v43, 4 }
 0x22f   :  { %v5987_v28 = vpop.permute.xlu0 %2901 }
 0x230   :  { %9581 = vst [vmem:[#allocation92_spill] sm:$0xff] %v5987_v28  ;;  %v484_v19 = vsel %vm169_vm0, 0.0, %v483_v21  ;;  %v1689_v21 = vrot.slane %v5387_v52, 4 }
 0x232   :  { %3077 = vrot.lane.b32.xlu1 %v1686_v48, %s5298_s30  ;;  %v6013_v48 = vperm.slane %v1694_v58, %v5329_v11 }
 0x233   :  { %2821 = vrot.lane.b32.xlu2 %v5571_v29, %s5297_s29  ;;  %v1687_v29 = vrot.slane %v5998_v20, 4 }
 0x234   :  { %v5995_v49 = vpop.permute.xlu1 %2909  ;;  %9585 = vst [vmem:[#allocation96_spill] sm:$0xff] %v6013_v48  ;;  %v1719_v28 = vrot.slane %v6013_v48, 4 }
 0x235   :  { %9582 = vst [vmem:[#allocation93_spill] sm:$0xff] %v5995_v49  ;;  %v6002_v44 = vpop.permute.xlu2 %2755  ;;  %3083 = vrot.lane.b32.xlu0 %v464_v37, %s5300_s3  ;;  %v1699_v49 = vrot.slane %v1694_v58, 4  ;;  %v492_v58 = vperm.slane %v484_v19, %v5329_v11 }
 0x236   :  { %9583 = vst [vmem:[#allocation94_spill] sm:$0xff] %v6002_v44  ;;  %v1688_v44 = vsel %vm169_vm0, 0.0, %v1687_v29 }
 0x237   :  { %v6009_v5 = vpop.permute.xlu0 %2915 }
 0x238   :  { %9584 = vst [vmem:[#allocation95_spill] sm:$0xff] %v6009_v5 }
 0x23a   :  { %3091 = vrot.lane.b32.xlu1 %v472_v62, %s5301_s4  ;;  %v1700_v62 = vsel %vm169_vm0, 0.0, %v1699_v49 }
 0x23b   :  { %2835 = vrot.lane.b32.xlu2 %v5584_v16, %s5300_s3  ;;  %v473_v16 = vrot.slane %v5402_v63, 4  ;;  %v6041_v3 = vperm.slane %v1700_v62, %v5329_v11 }
 0x23c   :  { %v6020_v37 = vpop.permute.xlu1 %2923 }
 0x23d   :  { %9586 = vst [vmem:[#allocation97_spill] sm:$0xff] %v6020_v37  ;;  %v6023_v5 = vpop.permute.xlu2 %2757  ;;  %3093 = vrot.lane.b32.xlu0 %v1688_v44, %s5301_s4  ;;  %v1720_v37 = vsel %vm169_vm0, 0.0, %v1719_v28  ;;  %v1536_v44 = vsel %vm169_vm0, 0.0, %v1535_v59  ;;  %v474_v49 = vsel %vm169_vm0, 0.0, %v473_v16  ;;  %v505_v28 = vrot.slane %v492_v58, 4 }
 0x23e   :  { %9587 = vst [vmem:[#allocation98_spill] sm:$0xff] %v6023_v5  ;;  %v1721_v59 = vrot.slane %v6041_v3, 4 }
 0x23f   :  { %v6029_v35 = vpop.permute.xlu0 %2925  ;;  %v506_v62 = vsel %vm169_vm0, 0.0, %v505_v28 }
 0x240   :  { %9588 = vst [vmem:[#allocation99_spill] sm:$0xff] %v6029_v35 }
 0x242   :  { %3101 = vrot.lane.b32.xlu1 %v1720_v37, %s5280_s0  ;;  %v482_v37 = vperm.slane %v474_v49, %v5327_v10 }
 0x243   :  { %2845 = vrot.lane.b32.xlu2 %v1536_v44, %s5301_s4  ;;  %v1690_v44 = vsel %vm169_vm0, 0.0, %v1689_v21  ;;  %v1569_v21 = vrot.slane %v5649_v55, 4 }
 0x244   :  { %v6038_v29 = vpop.permute.xlu1 %2933  ;;  %v1698_v52 = vperm.slane %v1690_v44, %v5327_v10  ;;  %v6062_v5 = vperm.slane %v482_v37, %v5329_v11  ;;  %v493_v44 = vrot.slane %v482_v37, 4  ;;  %v355_v37 = vrot.slane %v5670_v27, 4 }
 0x245   :  { %9589 = vst [vmem:[#allocation100_spill] sm:$0xff] %v6038_v29  ;;  %v6045_v63 = vpop.permute.xlu2 %2763  ;;  %3107 = vrot.lane.b32.xlu0 %v492_v58, %s5277_s12  ;;  %v1722_v58 = vsel %vm169_vm0, 0.0, %v1721_v59  ;;  %v1570_v59 = vsel %vm169_vm0, 0.0, %v1569_v21  ;;  %v516_v27 = vperm.slane %v5409_v4, %v5327_v10 }
 0x246   :  { %9590 = vst [vmem:[#allocation101_spill] sm:$0xff] %v6045_v63  ;;  %v1709_v63 = vrot.slane %v1698_v52, 4 }
 0x247   :  { %v6048_v19 = vpop.permute.xlu0 %2939 }
 0x248   :  { %9591 = vst [vmem:[#allocation102_spill] sm:$0xff] %v6048_v19  ;;  %v587_v19 = vrot.slane %v5425_v18, 4 }
 0x24a   :  { %3115 = vrot.lane.b32.xlu1 %v506_v62, %s5282_s14  ;;  %v6071_v62 = vperm.slane %v1698_v52, %v5329_v11  ;;  %v1710_v52 = vsel %vm169_vm0, 0.0, %v1709_v63 }
 0x24b   :  { %2859 = vrot.lane.b32.xlu2 %v5636_v33, %s5277_s12  ;;  %v507_v33 = vrot.slane %v6062_v5, 4 }
 0x24c   :  { %v6058_v16 = vpop.permute.xlu1 %2947 }
 0x24d   :  { %9592 = vst [vmem:[#allocation103_spill] sm:$0xff] %v6058_v16  ;;  %v6064_v49 = vpop.permute.xlu2 %2765  ;;  %3117 = vrot.lane.b32.xlu0 %v1722_v58, %s5282_s14  ;;  %v508_v55 = vsel %vm169_vm0, 0.0, %v507_v33  ;;  %v356_v33 = vsel %vm169_vm0, 0.0, %v355_v37 }
 0x24e   :  { %9593 = vst [vmem:[#allocation104_spill] sm:$0xff] %v6064_v49 }
 0x24f   :  { %v6068_v28 = vpop.permute.xlu0 %2949 }
 0x250   :  { %9594 = vst [vmem:[#allocation105_spill] sm:$0xff] %v6068_v28  ;;  %v494_v28 = vsel %vm169_vm0, 0.0, %v493_v44 }
 0x251   :  { %v6090_v21 = vperm.slane %v494_v28, %v5329_v11 }
 0x252   :  { %3125 = vrot.lane.b32.xlu1 %v6071_v62, %s5281_s13 }
 0x253   :  { %2869 = vrot.lane.b32.xlu2 %v1570_v59, %s5282_s14  ;;  %v1718_v59 = vperm.slane %v1710_v52, %v5329_v11  ;;  %v1732_v52 = vperm.slane %v5393_v56, %v5327_v10 }
 0x254   :  { %v6078_v49 = vpop.permute.xlu1 %2957 }
 0x255   :  { %9595 = vst [vmem:[#allocation106_spill] sm:$0xff] %v6078_v49  ;;  %v6081_v58 = vpop.permute.xlu2 %2771  ;;  %3131 = vrot.lane.b32.xlu0 %v508_v55, %s5283_s15  ;;  %v1725_v28 = vrot.slane %v1718_v59, 4  ;;  %v526_v49 = vperm.slane %v516_v27, %v5329_v11 }
 0x256   :  { %9596 = vst [vmem:[#allocation107_spill] sm:$0xff] %v6081_v58 }
 0x257   :  { %v6087_v16 = vpop.permute.xlu0 %2963  ;;  %v1726_v37 = vsel %vm169_vm0, 0.0, %v1725_v28 }
 0x258   :  { %9597 = vst [vmem:[#allocation108_spill] sm:$0xff] %v6087_v16  ;;  %v1737_v16 = vrot.slane %v1732_v52, 4 }
 0x25a   :  { %3139 = vrot.lane.b32.xlu1 %v6090_v21, %s5284_s16 }
 0x25b   :  { %2883 = vrot.lane.b32.xlu2 %v356_v33, %s5283_s15  ;;  %v6114_v33 = vperm.slane %v1732_v52, %v5329_v11  ;;  %v511_v52 = vrot.slane %v5409_v4, 4 }
 0x25c   :  { %v6097_v55 = vpop.permute.xlu1 %2971 }
 0x25d   :  { %9598 = vst [vmem:[#allocation109_spill] sm:$0xff] %v6097_v55  ;;  %v6101_v63 = vpop.permute.xlu2 %2773  ;;  %3141 = vrot.lane.b32.xlu0 %v1718_v59, %s5284_s16  ;;  %v521_v59 = vrot.slane %v516_v27, 4  ;;  %v1757_v28 = vrot.slane %v6114_v33, 4 }
 0x25e   :  { %9599 = vst [vmem:[#allocation110_spill] sm:$0xff] %v6101_v63 }
 0x25f   :  { %v6104_v44 = vpop.permute.xlu0 %2973 }
 0x260   :  { %9600 = vst [vmem:[#allocation111_spill] sm:$0xff] %v6104_v44  ;;  %v541_v44 = vrot.slane %v526_v49, 4 }
 0x262   :  { %3149 = vrot.lane.b32.xlu1 %v1726_v37, %s9453_s17  ;;  %v522_v37 = vsel %vm169_vm0, 0.0, %v521_v59  ;;  %v1605_v59 = vrot.slane %v5724_v7, 4 }
 0x263   :  { %2893 = vrot.lane.b32.xlu2 %v5693_v57, %s5284_s16  ;;  %v542_v57 = vsel %vm169_vm0, 0.0, %v541_v44  ;;  %v1727_v44 = vrot.slane %v5393_v56, 4 }
 0x264   :  { %v6116_v63 = vpop.permute.xlu1 %2981  ;;  %v1606_v4 = vsel %vm169_vm0, 0.0, %v1605_v59 }
 0x265   :  { %9601 = vst [vmem:[#allocation112_spill] sm:$0xff] %v6116_v63  ;;  %v6118_v55 = vpop.permute.xlu2 %2779  ;;  %3155 = vrot.lane.b32.xlu0 %v526_v49, %s5286_s18  ;;  %v1758_v63 = vsel %vm169_vm0, 0.0, %v1757_v28  ;;  %v6133_v49 = vperm.slane %v522_v37, %v5329_v11  ;;  %v512_v37 = vsel %vm169_vm0, 0.0, %v511_v52  ;;  %v391_v52 = vrot.slane %v5741_v17, 4 }
 0x266   :  { %9602 = vst [vmem:[#allocation113_spill] sm:$0xff] %v6118_v55  ;;  %v520_v56 = vperm.slane %v512_v37, %v5327_v10 }
 0x267   :  { %v6121_v58 = vpop.permute.xlu0 %2987  ;;  %v543_v28 = vrot.slane %v6133_v49, 4 }
 0x268   :  { %9603 = vst [vmem:[#allocation114_spill] sm:$0xff] %v6121_v58  ;;  %v1738_v58 = vsel %vm169_vm0, 0.0, %v1737_v16  ;;  %v1728_v16 = vsel %vm169_vm0, 0.0, %v1727_v44  ;;  %v6166_v59 = vperm.slane %v520_v56, %v5329_v11  ;;  %v531_v37 = vrot.slane %v520_v56, 4 }
 0x26a   :  { %3163 = vrot.lane.b32.xlu1 %v542_v57, %s5287_s19  ;;  %v6145_v57 = vperm.slane %v1738_v58, %v5329_v11  ;;  %v544_v58 = vsel %vm169_vm0, 0.0, %v543_v28  ;;  %v392_v28 = vsel %vm169_vm0, 0.0, %v391_v52 }
 0x26b   :  { %2907 = vrot.lane.b32.xlu2 %v5714_v42, %s5286_s18 }
 0x26c   :  { %v6129_v27 = vpop.permute.xlu1 %2995 }
 0x26d   :  { %9604 = vst [vmem:[#allocation115_spill] sm:$0xff] %v6129_v27  ;;  %v6137_v55 = vpop.permute.xlu2 %2781  ;;  %3165 = vrot.lane.b32.xlu0 %v1758_v63, %s5287_s19  ;;  %v1736_v63 = vperm.slane %v1728_v16, %v5327_v10 }
 0x26e   :  { %9605 = vst [vmem:[#allocation116_spill] sm:$0xff] %v6137_v55 }
 0x26f   :  { %v6142_v42 = vpop.permute.xlu0 %2997 }
 0x270   :  { %9606 = vst [vmem:[#allocation117_spill] sm:$0xff] %v6142_v42 }
 0x272   :  { %3173 = vrot.lane.b32.xlu1 %v6145_v57, %s9447_s20 }
 0x273   :  { %2917 = vrot.lane.b32.xlu2 %v1606_v4, %s5287_s19  ;;  %v1752_v4 = vperm.slane %v1736_v63, %v5329_v11 }
 0x274   :  { %v6155_v7 = vpop.permute.xlu1 %3005 }
 0x275   :  { %9607 = vst [vmem:[#allocation118_spill] sm:$0xff] %v6155_v7  ;;  %v6159_v55 = vpop.permute.xlu2 %2789  ;;  %3179 = vrot.lane.b32.xlu0 %v544_v58, %s5289_s21  ;;  %v1747_v58 = vrot.slane %v1736_v63, 4  ;;  %v1761_v17 = vrot.slane %v1752_v4, 4 }
 0x276   :  { %9608 = vst [vmem:[#allocation119_spill] sm:$0xff] %v6159_v55  ;;  %v532_v55 = vsel %vm169_vm0, 0.0, %v531_v37 }
 0x277   :  { %v6163_v44 = vpop.permute.xlu0 %3011  ;;  %v1762_v56 = vsel %vm169_vm0, 0.0, %v1761_v17  ;;  %v540_v42 = vperm.slane %v532_v55, %v5329_v11  ;;  %v1748_v52 = vsel %vm169_vm0, 0.0, %v1747_v58  ;;  %v554_v55 = vperm.slane %v5417_v9, %v5327_v10 }
 0x278   :  { %9609 = vst [vmem:[#allocation120_spill] sm:$0xff] %v6163_v44 }
 0x279   :  { %v547_v37 = vrot.slane %v540_v42, 4 }
 0x27a   :  { %3187 = vrot.lane.b32.xlu1 %v6166_v59, %s9444_s22 }
 0x27b   :  { %2931 = vrot.lane.b32.xlu2 %v392_v28, %s5289_s21  ;;  %v6190_v28 = vperm.slane %v1748_v52, %v5329_v11  ;;  %v6207_v52 = vperm.slane %v554_v55, %v5329_v11 }
 0x27c   :  { %v6173_v16 = vpop.permute.xlu1 %3019 }
 0x27d   :  { %9610 = vst [vmem:[#allocation121_spill] sm:$0xff] %v6173_v16  ;;  %v6175_v7 = vpop.permute.xlu2 %2797  ;;  %3189 = vrot.lane.b32.xlu0 %v1752_v4, %s9444_s22  ;;  %v1763_v58 = vrot.slane %v6190_v28, 4 }
 0x27e   :  { %9611 = vst [vmem:[#allocation122_spill] sm:$0xff] %v6175_v7 }
 0x27f   :  { %v6179_v44 = vpop.permute.xlu0 %3021 }
 0x280   :  { %9612 = vst [vmem:[#allocation123_spill] sm:$0xff] %v6179_v44  ;;  %v559_v44 = vrot.slane %v554_v55, 4 }
 0x282   :  { %3197 = vrot.lane.b32.xlu1 %v1762_v56, %s5292_s24  ;;  %v548_v56 = vsel %vm169_vm0, 0.0, %v547_v37  ;;  %v1611_v37 = vrot.slane %v5803_v14, 4 }
 0x283   :  { %2941 = vrot.lane.b32.xlu2 %v5772_v34, %s9444_s22  ;;  %v1770_v34 = vperm.slane %v5399_v61, %v5327_v10 }
 0x284   :  { %v6187_v63 = vpop.permute.xlu1 %3029 }
 0x285   :  { %9613 = vst [vmem:[#allocation124_spill] sm:$0xff] %v6187_v63  ;;  %v6192_v4 = vpop.permute.xlu2 %2811  ;;  %3203 = vrot.lane.b32.xlu0 %v540_v42, %s5295_s27  ;;  %v1764_v63 = vsel %vm169_vm0, 0.0, %v1763_v58  ;;  %v1775_v7 = vrot.slane %v1770_v34, 4  ;;  %v1612_v58 = vsel %vm169_vm0, 0.0, %v1611_v37 }
 0x286   :  { %9614 = vst [vmem:[#allocation125_spill] sm:$0xff] %v6192_v4 }
 0x287   :  { %v6195_v17 = vpop.permute.xlu0 %3035  ;;  %v1776_v55 = vsel %vm169_vm0, 0.0, %v1775_v7 }
 0x288   :  { %9615 = vst [vmem:[#allocation126_spill] sm:$0xff] %v6195_v17  ;;  %v579_v17 = vrot.slane %v6207_v52, 4 }
 0x28a   :  { %3211 = vrot.lane.b32.xlu1 %v548_v56, %s9441_s2  ;;  %v580_v14 = vsel %vm169_vm0, 0.0, %v579_v17  ;;  %v1784_v17 = vperm.slane %v1776_v55, %v5329_v11 }
 0x28b   :  { %2955 = vrot.lane.b32.xlu2 %v5793_v47, %s5295_s27  ;;  %v6219_v47 = vperm.slane %v1770_v34, %v5329_v11  ;;  %v549_v34 = vrot.slane %v5417_v9, 4 }
 0x28c   :  { %v6209_v42 = vpop.permute.xlu1 %3043 }
 0x28d   :  { %9616 = vst [vmem:[#allocation127_spill] sm:$0xff] %v6209_v42  ;;  %v6212_v4 = vpop.permute.xlu2 %2821  ;;  %3213 = vrot.lane.b32.xlu0 %v1764_v63, %s9441_s2  ;;  %v560_v63 = vsel %vm169_vm0, 0.0, %v559_v44  ;;  %v427_v42 = vrot.slane %v5823_v60, 4  ;;  %v550_v44 = vsel %vm169_vm0, 0.0, %v549_v34 }
 0x28e   :  { %9617 = vst [vmem:[#allocation128_spill] sm:$0xff] %v6212_v4  ;;  %v6239_v37 = vperm.slane %v560_v63, %v5329_v11 }
 0x28f   :  { %v6216_v56 = vpop.permute.xlu0 %3045  ;;  %v428_v7 = vsel %vm169_vm0, 0.0, %v427_v42 }
 0x290   :  { %9618 = vst [vmem:[#allocation129_spill] sm:$0xff] %v6216_v56 }
 0x292   :  { %3221 = vrot.lane.b32.xlu1 %v6219_v47, %s5302_s5 }
 0x293   :  { %2965 = vrot.lane.b32.xlu2 %v1612_v58, %s9441_s2  ;;  %v1765_v58 = vrot.slane %v5399_v61, 4  ;;  %v1797_v61 = vrot.slane %v1784_v17, 4 }
 0x294   :  { %v6226_v4 = vpop.permute.xlu1 %3053 }
 0x295   :  { %9619 = vst [vmem:[#allocation130_spill] sm:$0xff] %v6226_v4  ;;  %v6230_v56 = vpop.permute.xlu2 %2835  ;;  %3227 = vrot.lane.b32.xlu0 %v580_v14, %s9439_s6  ;;  %v1766_v60 = vsel %vm169_vm0, 0.0, %v1765_v58  ;;  %v558_v14 = vperm.slane %v550_v44, %v5327_v10 }
 0x296   :  { %9620 = vst [vmem:[#allocation131_spill] sm:$0xff] %v6230_v56  ;;  %v1774_v34 = vperm.slane %v1766_v60, %v5327_v10  ;;  %v1798_v56 = vsel %vm169_vm0, 0.0, %v1797_v61 }
 0x297   :  { %v6236_v16 = vpop.permute.xlu0 %3059  ;;  %v574_v42 = vperm.slane %v558_v14, %v5329_v11 }
 0x298   :  { %9621 = vst [vmem:[#allocation132_spill] sm:$0xff] %v6236_v16  ;;  %v6266_v44 = vperm.slane %v1774_v34, %v5329_v11 }
 0x299   :  { %v583_v60 = vrot.slane %v574_v42, 4 }
 0x29a   :  { %3235 = vrot.lane.b32.xlu1 %v6239_v37, %s5304_s7  ;;  %v1799_v61 = vrot.slane %v6266_v44, 4 }
 0x29b   :  { %2979 = vrot.lane.b32.xlu2 %v428_v7, %s9439_s6  ;;  %v569_v7 = vrot.slane %v558_v14, 4  ;;  %s9627_s6 = smov 80  }
 0x29c   :  { %v6248_v9 = vpop.permute.xlu1 %3067 }
 0x29d   :  { %9622 = vst [vmem:[#allocation133_spill] sm:$0xff] %v6248_v9  ;;  %v6252_v63 = vpop.permute.xlu2 %2845  ;;  %3237 = vrot.lane.b32.xlu0 %v1784_v17, %s5304_s7 }
 0x29e   :  { %9623 = vst [vmem:[#allocation134_spill] sm:$0xff] %v6252_v63 }
 0x29f   :  { %v6255_v55 = vpop.permute.xlu0 %3069 }
 0x2a0   :  { %9624 = vst [vmem:[#allocation135_spill] sm:$0xff] %v6255_v55  ;;  %v1785_v55 = vrot.slane %v1774_v34, 4 }
 0x2a2   :  { %3245 = vrot.lane.b32.xlu1 %v1798_v56, %s5305_s8  ;;  %v584_v56 = vsel %vm169_vm0, 0.0, %v583_v60  ;;  %v1786_v34 = vsel %vm169_vm0, 0.0, %v1785_v55 }
 0x2a3   :  { %2989 = vrot.lane.b32.xlu2 %v5849_v38, %s5304_s7  ;;  %v570_v38 = vsel %vm169_vm0, 0.0, %v569_v7  ;;  %v1647_v7 = vrot.slane %v5880_v41, 4 }
 0x2a4   :  { %v6263_v58 = vpop.permute.xlu1 %3077 }
 0x2a5   :  { %9625 = vst [vmem:[#allocation136_spill] sm:$0xff] %v6263_v58  ;;  %v6268_v17 = vpop.permute.xlu2 %2859  ;;  %3251 = vrot.lane.b32.xlu0 %v574_v42, %s9627_s6  ;;  %v1800_v58 = vsel %vm169_vm0, 0.0, %v1799_v61  ;;  %v6283_v42 = vperm.slane %v570_v38, %v5329_v11  ;;  %v1648_v61 = vsel %vm169_vm0, 0.0, %v1647_v7  ;;  %v1808_v38 = vperm.slane %v5406_v2, %v5327_v10 }
 0x2a6   :  { %9626 = vst [vmem:[#allocation137_spill] sm:$0xff] %v6268_v17 }
 0x2a7   :  { %v6271_v63 = vpop.permute.xlu0 %3083 }
 0x2a8   :  { %9628 = vst [vmem:[#allocation138_spill] sm:$0xff] %v6271_v63 }
 0x2aa   :  { %3259 = vrot.lane.b32.xlu1 %v584_v56, %s5307_s10  ;;  %v6293_v56 = vperm.slane %v1786_v34, %v5329_v11 }
 0x2ab   :  { %3003 = vrot.lane.b32.xlu2 %v5871_v40, %s9627_s6  ;;  %v585_v40 = vrot.slane %v6283_v42, 4 }
 0x2ac   :  { %v6279_v14 = vpop.permute.xlu1 %3091 }
 0x2ad   :  { %9629 = vst [vmem:[#allocation139_spill] sm:$0xff] %v6279_v14  ;;  %v6285_v63 = vpop.permute.xlu2 %2869  ;;  %3261 = vrot.lane.b32.xlu0 %v1800_v58, %s5307_s10  ;;  %v592_v58 = vperm.slane %v5425_v18, %v5327_v10  ;;  %v586_v41 = vsel %vm169_vm0, 0.0, %v585_v40 }
 0x2ae   :  { %9630 = vst [vmem:[#allocation140_spill] sm:$0xff] %v6285_v63 }
 0x2af   :  { %v6290_v60 = vpop.permute.xlu0 %3093  ;;  %v6314_v7 = vperm.slane %v592_v58, %v5329_v11  ;;  %v597_v9 = vrot.slane %v592_v58, 4 }
 0x2b0   :  { %9631 = vst [vmem:[#allocation141_spill] sm:$0xff] %v6290_v60  ;;  %v433_v60 = vrot.slane %v5898_v24, 4 }
 0x2b1   :  { %v598_v27 = vsel %vm169_vm0, 0.0, %v597_v9  ;;  %v1803_v9 = vrot.slane %v5406_v2, 4 }
 0x2b2   :  { %3269 = vrot.lane.b32.xlu1 %v6293_v56, %s5308_s11  ;;  %v434_v40 = vsel %vm169_vm0, 0.0, %v433_v60 }
 0x2b3   :  { %3013 = vrot.lane.b32.xlu2 %v1648_v61, %s5307_s10  ;;  %v1818_v61 = vperm.slane %v1808_v38, %v5329_v11 }
 0x2b4   :  { %v6302_v55 = vpop.permute.xlu1 %3101 }
 0x2b5   :  { %9632 = vst [vmem:[#allocation142_spill] sm:$0xff] %v6302_v55  ;;  %v6307_v34 = vpop.permute.xlu2 %2883  ;;  %3275 = vrot.lane.b32.xlu0 %v586_v41, %s5309_s9  ;;  %v1813_v41 = vrot.slane %v1808_v38, 4  ;;  %v1833_v24 = vrot.slane %v1818_v61, 4 }
 0x2b6   :  { %9633 = vst [vmem:[#allocation143_spill] sm:$0xff] %v6307_v34 }
 0x2b7   :  { %v6311_v14 = vpop.permute.xlu0 %3107  ;;  %v1814_v58 = vsel %vm169_vm0, 0.0, %v1813_v41  ;;  %v1834_v60 = vsel %vm169_vm0, 0.0, %v1833_v24  ;;  %v588_v41 = vsel %vm169_vm0, 0.0, %v587_v19 }
 0x2b8   :  { %9634 = vst [vmem:[#allocation144_spill] sm:$0xff] %v6311_v14  ;;  %v596_v24 = vperm.slane %v588_v41, %v5327_v10 }
 0x2ba   :  { %3283 = vrot.lane.b32.xlu1 %v6314_v7, %s5291_s23 }
 0x2bb   :  { %3027 = vrot.lane.b32.xlu2 %v434_v40, %s5309_s9  ;;  %v606_v40 = vperm.slane %v598_v27, %v5329_v11 }
 0x2bc   :  { %v6321_v4 = vpop.permute.xlu1 %3115 }
 0x2bd   :  { %9635 = vst [vmem:[#allocation145_spill] sm:$0xff] %v6321_v4  ;;  %v6323_v16 = vpop.permute.xlu2 %2893  ;;  %3285 = vrot.lane.b32.xlu0 %v1818_v61, %s5291_s23  ;;  %v6339_v61 = vperm.slane %v1814_v58, %v5329_v11  ;;  %v619_v18 = vrot.slane %v606_v40, 4 }
 0x2be   :  { %9636 = vst [vmem:[#allocation146_spill] sm:$0xff] %v6323_v16 }
 0x2bf   :  { %v6327_v29 = vpop.permute.xlu0 %3117  ;;  %v620_v58 = vsel %vm169_vm0, 0.0, %v619_v18 }
 0x2c0   :  { %9637 = vst [vmem:[#allocation147_spill] sm:$0xff] %v6327_v29 }
 0x2c2   :  { %3293 = vrot.lane.b32.xlu1 %v1834_v60, %s5293_s25  ;;  %v1804_v60 = vsel %vm169_vm0, 0.0, %v1803_v9  ;;  %v1683_v9 = vrot.slane %v5953_v45, 4 }
 0x2c3   :  { %3037 = vrot.lane.b32.xlu2 %v5922_v31, %s5291_s23  ;;  %v1835_v31 = vrot.slane %v6339_v61, 4  ;;  %v1812_v2 = vperm.slane %v1804_v60, %v5327_v10  ;;  %v607_v60 = vrot.slane %v596_v24, 4 }
 0x2c4   :  { %v6336_v38 = vpop.permute.xlu1 %3125 }
 0x2c5   :  { %9638 = vst [vmem:[#allocation148_spill] sm:$0xff] %v6336_v38  ;;  %v6343_v35 = vpop.permute.xlu2 %2907  ;;  %3299 = vrot.lane.b32.xlu0 %v606_v40, %s5294_s26  ;;  %v1836_v40 = vsel %vm169_vm0, 0.0, %v1835_v31  ;;  %v6360_v38 = vperm.slane %v596_v24, %v5329_v11  ;;  %v1823_v29 = vrot.slane %v1812_v2, 4  ;;  %v1684_v31 = vsel %vm169_vm0, 0.0, %v1683_v9 }
 0x2c6   :  { %9639 = vst [vmem:[#allocation149_spill] sm:$0xff] %v6343_v35  ;;  %v469_v24 = vrot.slane %v5974_v23, 4  ;;  %v630_v9 = vperm.slane %v5435_v25, %v5327_v10 }
 0x2c7   :  { %v6346_v27 = vpop.permute.xlu0 %3131 }
 0x2c8   :  { %9640 = vst [vmem:[#allocation150_spill] sm:$0xff] %v6346_v27  ;;  %v6398_v23 = vperm.slane %v630_v9, %v5329_v11 }
 0x2ca   :  { %3307 = vrot.lane.b32.xlu1 %v620_v58, %s5296_s28  ;;  %v6369_v58 = vperm.slane %v1812_v2, %v5329_v11  ;;  %v1824_v2 = vsel %vm169_vm0, 0.0, %v1823_v29  ;;  %9647 = vst [vmem:[#allocation157_spill] sm:$0xff] %v6398_v23 }
 0x2cb   :  { %3051 = vrot.lane.b32.xlu2 %v5942_v54, %s5294_s26  ;;  %v621_v54 = vrot.slane %v6360_v38, 4 }
 0x2cc   :  { %v6356_v19 = vpop.permute.xlu1 %3139 }
 0x2cd   :  { %9641 = vst [vmem:[#allocation151_spill] sm:$0xff] %v6356_v19  ;;  %v6362_v41 = vpop.permute.xlu2 %2917  ;;  %3309 = vrot.lane.b32.xlu0 %v1836_v40, %s5296_s28  ;;  %v622_v45 = vsel %vm169_vm0, 0.0, %v621_v54  ;;  %v1832_v54 = vperm.slane %v1824_v2, %v5329_v11  ;;  %v6407_v2 = vperm.slane %v5413_v6, %v5327_v10 }
 0x2ce   :  { %9642 = vst [vmem:[#allocation152_spill] sm:$0xff] %v6362_v41 }
 0x2cf   :  { %v6366_v18 = vpop.permute.xlu0 %3141 }
 0x2d0   :  { %9643 = vst [vmem:[#allocation153_spill] sm:$0xff] %v6366_v18  ;;  %v608_v18 = vsel %vm169_vm0, 0.0, %v607_v60 }
 0x2d2   :  { %3317 = vrot.lane.b32.xlu1 %v6369_v58, %s5297_s29 }
 0x2d3   :  { %3061 = vrot.lane.b32.xlu2 %v1684_v31, %s5296_s28  ;;  %v6390_v31 = vperm.slane %v608_v18, %v5329_v11  ;;  %v1839_v18 = vrot.slane %v1832_v54, 4 }
 0x2d4   :  { %v6376_v19 = vpop.permute.xlu1 %3149 }
 0x2d5   :  { %9644 = vst [vmem:[#allocation154_spill] sm:$0xff] %v6376_v19  ;;  %v6379_v40 = vpop.permute.xlu2 %2931  ;;  %3323 = vrot.lane.b32.xlu0 %v622_v45, %s5298_s30  ;;  %v470_v45 = vsel %vm169_vm0, 0.0, %v469_v24  ;;  %v655_v24 = vrot.slane %v6398_v23, 4 }
 0x2d6   :  { %9645 = vst [vmem:[#allocation155_spill] sm:$0xff] %v6379_v40  ;;  %v6415_v40 = vperm.slane %v6007_v43, %v5329_v11  ;;  %v625_v43 = vrot.slane %v5435_v25, 4 }
 0x2d7   :  { %v6385_v41 = vpop.permute.xlu0 %3155 }
 0x2d8   :  { %9646 = vst [vmem:[#allocation156_spill] sm:$0xff] %v6385_v41  ;;  %v635_v41 = vrot.slane %v630_v9, 4 }
 0x2d9   :  { %9651 = vst [vmem:[#allocation161_spill] sm:$0xff] %v6415_v40 }
 0x2da   :  { %3331 = vrot.lane.b32.xlu1 %v6390_v31, %s5300_s3  ;;  %v636_v9 = vsel %vm169_vm0, 0.0, %v635_v41 }
 0x2db   :  { %3075 = vrot.lane.b32.xlu2 %v470_v45, %s5298_s30  ;;  %v1840_v45 = vsel %vm169_vm0, 0.0, %v1839_v18  ;;  %v503_v18 = vrot.slane %v6415_v40, 4 }
 0x2dc   :  { %v6400_v29 = vpop.permute.xlu1 %3163 }
 0x2dd   :  { %9648 = vst [vmem:[#allocation158_spill] sm:$0xff] %v6400_v29  ;;  %v6402_v60 = vpop.permute.xlu2 %2941  ;;  %3333 = vrot.lane.b32.xlu0 %v1832_v54, %s5300_s3  ;;  %v504_v25 = vsel %vm169_vm0, 0.0, %v503_v18 }
 0x2de   :  { %9649 = vst [vmem:[#allocation159_spill] sm:$0xff] %v6402_v60  ;;  %v1851_v60 = vrot.slane %v6407_v2, 4 }
 0x2df   :  { %v6409_v19 = vpop.permute.xlu0 %3165 }
 0x2e0   :  { %9650 = vst [vmem:[#allocation160_spill] sm:$0xff] %v6409_v19  ;;  %v656_v19 = vsel %vm169_vm0, 0.0, %v655_v24  ;;  %v1852_v27 = vsel %vm169_vm0, 0.0, %v1851_v60 }
 0x2e1   :  { %v1860_v24 = vperm.slane %v1852_v27, %v5329_v11 }
 0x2e2   :  { %3341 = vrot.lane.b32.xlu1 %v1840_v45, %s5301_s4 }
 0x2e3   :  { %3085 = vrot.lane.b32.xlu2 %v5998_v20, %s5300_s3  ;;  %v6434_v20 = vperm.slane %v636_v9, %v5329_v11 }
 0x2e4   :  { %v6421_v54 = vpop.permute.xlu1 %3173 }
 0x2e5   :  { %9652 = vst [vmem:[#allocation162_spill] sm:$0xff] %v6421_v54  ;;  %v6424_v29 = vpop.permute.xlu2 %2955  ;;  %3347 = vrot.lane.b32.xlu0 %v656_v19, %s5280_s0  ;;  %v1841_v54 = vrot.slane %v5413_v6, 4  ;;  %v1873_v6 = vrot.slane %v1860_v24, 4 }
 0x2e6   :  { %9653 = vst [vmem:[#allocation163_spill] sm:$0xff] %v6424_v29  ;;  %v626_v29 = vsel %vm169_vm0, 0.0, %v625_v43 }
 0x2e7   :  { %v6431_v45 = vpop.permute.xlu0 %3179  ;;  %v1842_v41 = vsel %vm169_vm0, 0.0, %v1841_v54  ;;  %v634_v60 = vperm.slane %v626_v29, %v5327_v10 }
 0x2e8   :  { %9654 = vst [vmem:[#allocation164_spill] sm:$0xff] %v6431_v45  ;;  %v1850_v43 = vperm.slane %v1842_v41, %v5327_v10  ;;  %v1874_v45 = vsel %vm169_vm0, 0.0, %v1873_v6 }
 0x2e9   :  { %v650_v18 = vperm.slane %v634_v60, %v5329_v11 }
 0x2ea   :  { %3355 = vrot.lane.b32.xlu1 %v6434_v20, %s5277_s12  ;;  %v6461_v29 = vperm.slane %v1850_v43, %v5329_v11 }
 0x2eb   :  { %3099 = vrot.lane.b32.xlu2 %v504_v25, %s5280_s0  ;;  %v645_v25 = vrot.slane %v634_v60, 4  ;;  %v659_v41 = vrot.slane %v650_v18, 4 }
 0x2ec   :  { %v6443_v19 = vpop.permute.xlu1 %3187  ;;  %v1875_v6 = vrot.slane %v6461_v29, 4 }
 0x2ed   :  { %9655 = vst [vmem:[#allocation165_spill] sm:$0xff] %v6443_v19  ;;  %v6447_v9 = vpop.permute.xlu2 %2965  ;;  %3357 = vrot.lane.b32.xlu0 %v1860_v24, %s5277_s12  ;;  %v663_v19 = vrot.slane %v5445_v32, 4 }
 0x2ee   :  { %9656 = vst [vmem:[#allocation166_spill] sm:$0xff] %v6447_v9  ;;  %v1861_v9 = vrot.slane %v1850_v43, 4 }
 0x2ef   :  { %v6450_v27 = vpop.permute.xlu0 %3189 }
 0x2f0   :  { %9657 = vst [vmem:[#allocation167_spill] sm:$0xff] %v6450_v27  ;;  %v1862_v43 = vsel %vm169_vm0, 0.0, %v1861_v9 }
 0x2f2   :  { %3365 = vrot.lane.b32.xlu1 %v1874_v45, %s5282_s14  ;;  %v660_v45 = vsel %vm169_vm0, 0.0, %v659_v41 }
 0x2f3   :  { %3109 = vrot.lane.b32.xlu2 %v6041_v3, %s5277_s12  ;;  %v646_v3 = vsel %vm169_vm0, 0.0, %v645_v25  ;;  %v1723_v25 = vrot.slane %v6071_v62, 4 }
 0x2f4   :  { %v6458_v54 = vpop.permute.xlu1 %3197 }
 0x2f5   :  { %9658 = vst [vmem:[#allocation168_spill] sm:$0xff] %v6458_v54  ;;  %v6463_v24 = vpop.permute.xlu2 %2979  ;;  %3371 = vrot.lane.b32.xlu0 %v650_v18, %s5281_s13  ;;  %v1876_v54 = vsel %vm169_vm0, 0.0, %v1875_v6  ;;  %v6478_v18 = vperm.slane %v646_v3, %v5329_v11  ;;  %v1724_v6 = vsel %vm169_vm0, 0.0, %v1723_v25  ;;  %v1884_v3 = vperm.slane %v5421_v13, %v5327_v10 }
 0x2f6   :  { %9659 = vst [vmem:[#allocation169_spill] sm:$0xff] %v6463_v24 }
 0x2f7   :  { %v6466_v27 = vpop.permute.xlu0 %3203 }
 0x2f8   :  { %9660 = vst [vmem:[#allocation170_spill] sm:$0xff] %v6466_v27 }
 0x2fa   :  { %3379 = vrot.lane.b32.xlu1 %v660_v45, %s5283_s15  ;;  %v6488_v45 = vperm.slane %v1862_v43, %v5329_v11 }
 0x2fb   :  { %3123 = vrot.lane.b32.xlu2 %v6062_v5, %s5281_s13  ;;  %v661_v5 = vrot.slane %v6478_v18, 4 }
 0x2fc   :  { %v6474_v60 = vpop.permute.xlu1 %3211 }
 0x2fd   :  { %9661 = vst [vmem:[#allocation171_spill] sm:$0xff] %v6474_v60  ;;  %v6480_v27 = vpop.permute.xlu2 %2989  ;;  %3381 = vrot.lane.b32.xlu0 %v1876_v54, %s5283_s15  ;;  %v668_v54 = vperm.slane %v5445_v32, %v5327_v10  ;;  %v662_v62 = vsel %vm169_vm0, 0.0, %v661_v5 }
 0x2fe   :  { %9662 = vst [vmem:[#allocation172_spill] sm:$0xff] %v6480_v27 }
 0x2ff   :  { %v6485_v41 = vpop.permute.xlu0 %3213  ;;  %v6509_v25 = vperm.slane %v668_v54, %v5329_v11  ;;  %v673_v60 = vrot.slane %v668_v54, 4 }
 0x300   :  { %9663 = vst [vmem:[#allocation173_spill] sm:$0xff] %v6485_v41  ;;  %v509_v41 = vrot.slane %v6090_v21, 4 }
 0x302   :  { %3389 = vrot.lane.b32.xlu1 %v6488_v45, %s5284_s16  ;;  %v510_v5 = vsel %vm169_vm0, 0.0, %v509_v41 }
 0x303   :  { %3133 = vrot.lane.b32.xlu2 %v1724_v6, %s5283_s15  ;;  %v1894_v6 = vperm.slane %v1884_v3, %v5329_v11 }
 0x304   :  { %v6497_v9 = vpop.permute.xlu1 %3221 }
 0x305   :  { %9664 = vst [vmem:[#allocation174_spill] sm:$0xff] %v6497_v9  ;;  %v6502_v43 = vpop.permute.xlu2 %3003  ;;  %3395 = vrot.lane.b32.xlu0 %v662_v62, %s9453_s17  ;;  %v1889_v62 = vrot.slane %v1884_v3, 4  ;;  %v1909_v21 = vrot.slane %v1894_v6, 4 }
 0x306   :  { %9665 = vst [vmem:[#allocation175_spill] sm:$0xff] %v6502_v43 }
 0x307   :  { %v6506_v27 = vpop.permute.xlu0 %3227  ;;  %v1890_v54 = vsel %vm169_vm0, 0.0, %v1889_v62  ;;  %v1910_v41 = vsel %vm169_vm0, 0.0, %v1909_v21  ;;  %v664_v62 = vsel %vm169_vm0, 0.0, %v663_v19 }
 0x308   :  { %9666 = vst [vmem:[#allocation176_spill] sm:$0xff] %v6506_v27  ;;  %v674_v27 = vsel %vm169_vm0, 0.0, %v673_v60  ;;  %v1879_v60 = vrot.slane %v5421_v13, 4  ;;  %v672_v21 = vperm.slane %v664_v62, %v5327_v10 }
 0x30a   :  { %3403 = vrot.lane.b32.xlu1 %v6509_v25, %s5286_s18 }
 0x30b   :  { %3147 = vrot.lane.b32.xlu2 %v510_v5, %s9453_s17  ;;  %v682_v5 = vperm.slane %v674_v27, %v5329_v11 }
 0x30c   :  { %v6516_v9 = vpop.permute.xlu1 %3235 }
 0x30d   :  { %9667 = vst [vmem:[#allocation177_spill] sm:$0xff] %v6516_v9  ;;  %v6518_v43 = vpop.permute.xlu2 %3013  ;;  %3405 = vrot.lane.b32.xlu0 %v1894_v6, %s5286_s18  ;;  %v6534_v6 = vperm.slane %v1890_v54, %v5329_v11  ;;  %v695_v32 = vrot.slane %v682_v5, 4 }
 0x30e   :  { %9668 = vst [vmem:[#allocation178_spill] sm:$0xff] %v6518_v43 }
 0x30f   :  { %v6522_v24 = vpop.permute.xlu0 %3237  ;;  %v696_v54 = vsel %vm169_vm0, 0.0, %v695_v32 }
 0x310   :  { %9669 = vst [vmem:[#allocation179_spill] sm:$0xff] %v6522_v24 }
 0x312   :  { %3413 = vrot.lane.b32.xlu1 %v1910_v41, %s5287_s19  ;;  %v1880_v41 = vsel %vm169_vm0, 0.0, %v1879_v60  ;;  %v1759_v60 = vrot.slane %v6145_v57, 4 }
 0x313   :  { %3157 = vrot.lane.b32.xlu2 %v6114_v33, %s5286_s18  ;;  %v1911_v33 = vrot.slane %v6534_v6, 4  ;;  %v1888_v13 = vperm.slane %v1880_v41, %v5327_v10  ;;  %v683_v41 = vrot.slane %v672_v21, 4 }
 0x314   :  { %v6531_v3 = vpop.permute.xlu1 %3245 }
 0x315   :  { %9670 = vst [vmem:[#allocation180_spill] sm:$0xff] %v6531_v3  ;;  %v6538_v24 = vpop.permute.xlu2 %3027  ;;  %3419 = vrot.lane.b32.xlu0 %v682_v5, %s9447_s20  ;;  %v1912_v5 = vsel %vm169_vm0, 0.0, %v1911_v33  ;;  %v6555_v3 = vperm.slane %v672_v21, %v5329_v11  ;;  %v1760_v33 = vsel %vm169_vm0, 0.0, %v1759_v60  ;;  %v545_v21 = vrot.slane %v6166_v59, 4 }
 0x316   :  { %9671 = vst [vmem:[#allocation181_spill] sm:$0xff] %v6538_v24  ;;  %v706_v59 = vperm.slane %v5456_v39, %v5327_v10 }
 0x317   :  { %v6541_v27 = vpop.permute.xlu0 %3251 }
 0x318   :  { %9672 = vst [vmem:[#allocation182_spill] sm:$0xff] %v6541_v27 }
 0x31a   :  { %3427 = vrot.lane.b32.xlu1 %v696_v54, %s5289_s21  ;;  %v6564_v54 = vperm.slane %v1888_v13, %v5329_v11 }
 0x31b   :  { %3171 = vrot.lane.b32.xlu2 %v6133_v49, %s9447_s20  ;;  %v697_v49 = vrot.slane %v6555_v3, 4 }
 0x31c   :  { %v6551_v19 = vpop.permute.xlu1 %3259 }
 0x31d   :  { %9673 = vst [vmem:[#allocation183_spill] sm:$0xff] %v6551_v19  ;;  %v6557_v62 = vpop.permute.xlu2 %3037  ;;  %3429 = vrot.lane.b32.xlu0 %v1912_v5, %s5289_s21  ;;  %v1899_v19 = vrot.slane %v1888_v13, 4  ;;  %v698_v57 = vsel %vm169_vm0, 0.0, %v697_v49  ;;  %v546_v49 = vsel %vm169_vm0, 0.0, %v545_v21 }
 0x31e   :  { %9674 = vst [vmem:[#allocation184_spill] sm:$0xff] %v6557_v62 }
 0x31f   :  { %v6561_v32 = vpop.permute.xlu0 %3261  ;;  %v1900_v13 = vsel %vm169_vm0, 0.0, %v1899_v19 }
 0x320   :  { %9675 = vst [vmem:[#allocation185_spill] sm:$0xff] %v6561_v32  ;;  %v684_v32 = vsel %vm169_vm0, 0.0, %v683_v41 }
 0x321   :  { %v6583_v60 = vperm.slane %v684_v32, %v5329_v11 }
 0x322   :  { %3437 = vrot.lane.b32.xlu1 %v6564_v54, %s9444_s22 }
 0x323   :  { %3181 = vrot.lane.b32.xlu2 %v1760_v33, %s5289_s21  ;;  %v1908_v33 = vperm.slane %v1900_v13, %v5329_v11  ;;  %v1922_v13 = vperm.slane %v5431_v22, %v5327_v10 }
 0x324   :  { %v6571_v62 = vpop.permute.xlu1 %3269 }
 0x325   :  { %9676 = vst [vmem:[#allocation186_spill] sm:$0xff] %v6571_v62  ;;  %v6574_v5 = vpop.permute.xlu2 %3051  ;;  %3443 = vrot.lane.b32.xlu0 %v698_v57, %s5292_s24  ;;  %v1915_v32 = vrot.slane %v1908_v33, 4  ;;  %v716_v62 = vperm.slane %v706_v59, %v5329_v11 }
 0x326   :  { %9677 = vst [vmem:[#allocation187_spill] sm:$0xff] %v6574_v5  ;;  %v1927_v5 = vrot.slane %v1922_v13, 4 }
 0x327   :  { %v6580_v27 = vpop.permute.xlu0 %3275  ;;  %v1916_v21 = vsel %vm169_vm0, 0.0, %v1915_v32 }
 0x328   :  { %9678 = vst [vmem:[#allocation188_spill] sm:$0xff] %v6580_v27 }
 0x32a   :  { %3451 = vrot.lane.b32.xlu1 %v6583_v60, %s5295_s27 }
 0x32b   :  { %3195 = vrot.lane.b32.xlu2 %v546_v49, %s5292_s24  ;;  %v6607_v49 = vperm.slane %v1922_v13, %v5329_v11  ;;  %v701_v13 = vrot.slane %v5456_v39, 4 }
 0x32c   :  { %v6590_v57 = vpop.permute.xlu1 %3283 }
 0x32d   :  { %9679 = vst [vmem:[#allocation189_spill] sm:$0xff] %v6590_v57  ;;  %v6594_v19 = vpop.permute.xlu2 %3061  ;;  %3453 = vrot.lane.b32.xlu0 %v1908_v33, %s5295_s27  ;;  %v711_v33 = vrot.slane %v706_v59, 4  ;;  %v1947_v32 = vrot.slane %v6607_v49, 4 }
 0x32e   :  { %9680 = vst [vmem:[#allocation190_spill] sm:$0xff] %v6594_v19 }
 0x32f   :  { %v6597_v41 = vpop.permute.xlu0 %3285 }
 0x330   :  { %9681 = vst [vmem:[#allocation191_spill] sm:$0xff] %v6597_v41  ;;  %v731_v41 = vrot.slane %v716_v62, 4 }
 0x332   :  { %3461 = vrot.lane.b32.xlu1 %v1916_v21, %s9441_s2  ;;  %v712_v21 = vsel %vm169_vm0, 0.0, %v711_v33  ;;  %s9685_s2 = smov 68   ;;  %v1795_v33 = vrot.slane %v6219_v47, 4 }
 0x333   :  { %3205 = vrot.lane.b32.xlu2 %v6190_v28, %s5295_s27  ;;  %v732_v28 = vsel %vm169_vm0, 0.0, %v731_v41  ;;  %v1917_v41 = vrot.slane %v5431_v22, 4 }
 0x334   :  { %v6609_v19 = vpop.permute.xlu1 %3293  ;;  %v1796_v39 = vsel %vm169_vm0, 0.0, %v1795_v33 }
 0x335   :  { %9682 = vst [vmem:[#allocation192_spill] sm:$0xff] %v6609_v19  ;;  %v6611_v57 = vpop.permute.xlu2 %3075  ;;  %3467 = vrot.lane.b32.xlu0 %v716_v62, %s5302_s5  ;;  %v1948_v19 = vsel %vm169_vm0, 0.0, %v1947_v32  ;;  %v6626_v62 = vperm.slane %v712_v21, %v5329_v11  ;;  %v702_v21 = vsel %vm169_vm0, 0.0, %v701_v13  ;;  %v581_v13 = vrot.slane %v6239_v37, 4 }
 0x336   :  { %9683 = vst [vmem:[#allocation193_spill] sm:$0xff] %v6611_v57  ;;  %v1928_v57 = vsel %vm169_vm0, 0.0, %v1927_v5  ;;  %v1918_v5 = vsel %vm169_vm0, 0.0, %v1917_v41  ;;  %v710_v22 = vperm.slane %v702_v21, %v5327_v10 }
 0x337   :  { %v6614_v27 = vpop.permute.xlu0 %3299  ;;  %v733_v32 = vrot.slane %v6626_v62, 4 }
 0x338   :  { %9684 = vst [vmem:[#allocation194_spill] sm:$0xff] %v6614_v27  ;;  %v6659_v33 = vperm.slane %v710_v22, %v5329_v11  ;;  %v721_v21 = vrot.slane %v710_v22, 4 }
 0x33a   :  { %3475 = vrot.lane.b32.xlu1 %v732_v28, %s9685_s2  ;;  %v6638_v28 = vperm.slane %v1928_v57, %v5329_v11  ;;  %v734_v57 = vsel %vm169_vm0, 0.0, %v733_v32  ;;  %v582_v32 = vsel %vm169_vm0, 0.0, %v581_v13 }
 0x33b   :  { %3219 = vrot.lane.b32.xlu2 %v6207_v52, %s5302_s5 }
 0x33c   :  { %v6622_v59 = vpop.permute.xlu1 %3307 }
 0x33d   :  { %9686 = vst [vmem:[#allocation195_spill] sm:$0xff] %v6622_v59  ;;  %v6630_v27 = vpop.permute.xlu2 %3085  ;;  %3477 = vrot.lane.b32.xlu0 %v1948_v19, %s9685_s2  ;;  %v1926_v19 = vperm.slane %v1918_v5, %v5327_v10 }
 0x33e   :  { %9687 = vst [vmem:[#allocation196_spill] sm:$0xff] %v6630_v27 }
 0x33f   :  { %v6635_v52 = vpop.permute.xlu0 %3309 }
 0x340   :  { %9688 = vst [vmem:[#allocation197_spill] sm:$0xff] %v6635_v52  ;;  %v722_v52 = vsel %vm169_vm0, 0.0, %v721_v21 }
 0x341   :  { %v730_v59 = vperm.slane %v722_v52, %v5329_v11  ;;  %v744_v52 = vperm.slane %v5465_v53, %v5327_v10 }
 0x342   :  { %3485 = vrot.lane.b32.xlu1 %v6638_v28, %s5304_s7 }
 0x343   :  { %3229 = vrot.lane.b32.xlu2 %v1796_v39, %s9685_s2  ;;  %v1942_v39 = vperm.slane %v1926_v19, %v5329_v11  ;;  %v737_v21 = vrot.slane %v730_v59, 4  ;;  %v749_v24 = vrot.slane %v744_v52, 4 }
 0x344   :  { %v6648_v47 = vpop.permute.xlu1 %3317 }
 0x345   :  { %9689 = vst [vmem:[#allocation198_spill] sm:$0xff] %v6648_v47  ;;  %v6652_v27 = vpop.permute.xlu2 %3099  ;;  %3491 = vrot.lane.b32.xlu0 %v734_v57, %s5305_s8  ;;  %v1937_v57 = vrot.slane %v1926_v19, 4  ;;  %v1951_v37 = vrot.slane %v1942_v39, 4 }
 0x346   :  { %9690 = vst [vmem:[#allocation199_spill] sm:$0xff] %v6652_v27 }
 0x347   :  { %v6656_v41 = vpop.permute.xlu0 %3323  ;;  %v1952_v22 = vsel %vm169_vm0, 0.0, %v1951_v37  ;;  %v1938_v13 = vsel %vm169_vm0, 0.0, %v1937_v57 }
 0x348   :  { %9691 = vst [vmem:[#allocation200_spill] sm:$0xff] %v6656_v41 }
 0x34a   :  { %3499 = vrot.lane.b32.xlu1 %v6659_v33, %s9627_s6 }
 0x34b   :  { %3243 = vrot.lane.b32.xlu2 %v582_v32, %s5305_s8  ;;  %v6683_v32 = vperm.slane %v1938_v13, %v5329_v11  ;;  %v6700_v13 = vperm.slane %v744_v52, %v5329_v11 }
 0x34c   :  { %v6666_v5 = vpop.permute.xlu1 %3331 }
 0x34d   :  { %9692 = vst [vmem:[#allocation201_spill] sm:$0xff] %v6666_v5  ;;  %v6668_v47 = vpop.permute.xlu2 %3109  ;;  %3501 = vrot.lane.b32.xlu0 %v1942_v39, %s9627_s6  ;;  %v1953_v57 = vrot.slane %v6683_v32, 4  ;;  %v769_v5 = vrot.slane %v6700_v13, 4 }
 0x34e   :  { %9693 = vst [vmem:[#allocation202_spill] sm:$0xff] %v6668_v47 }
 0x34f   :  { %v6672_v41 = vpop.permute.xlu0 %3333 }
 0x350   :  { %9694 = vst [vmem:[#allocation203_spill] sm:$0xff] %v6672_v41 }
 0x352   :  { %3509 = vrot.lane.b32.xlu1 %v1952_v22, %s5307_s10  ;;  %v738_v22 = vsel %vm169_vm0, 0.0, %v737_v21  ;;  %v1801_v21 = vrot.slane %v6293_v56, 4  ;;  %v770_v56 = vsel %vm169_vm0, 0.0, %v769_v5 }
 0x353   :  { %3253 = vrot.lane.b32.xlu2 %v6266_v44, %s9627_s6  ;;  %v1960_v44 = vperm.slane %v5441_v30, %v5327_v10 }
 0x354   :  { %v6680_v19 = vpop.permute.xlu1 %3341 }
 0x355   :  { %9695 = vst [vmem:[#allocation204_spill] sm:$0xff] %v6680_v19  ;;  %v6685_v39 = vpop.permute.xlu2 %3123  ;;  %3515 = vrot.lane.b32.xlu0 %v730_v59, %s5308_s11  ;;  %v1954_v19 = vsel %vm169_vm0, 0.0, %v1953_v57  ;;  %v1965_v43 = vrot.slane %v1960_v44, 4  ;;  %v1802_v57 = vsel %vm169_vm0, 0.0, %v1801_v21 }
 0x356   :  { %9696 = vst [vmem:[#allocation205_spill] sm:$0xff] %v6685_v39 }
 0x357   :  { %v6688_v37 = vpop.permute.xlu0 %3347  ;;  %v1966_v52 = vsel %vm169_vm0, 0.0, %v1965_v43 }
 0x358   :  { %9697 = vst [vmem:[#allocation206_spill] sm:$0xff] %v6688_v37  ;;  %v1974_v5 = vperm.slane %v1966_v52, %v5329_v11 }
 0x35a   :  { %3523 = vrot.lane.b32.xlu1 %v738_v22, %s5309_s9 }
 0x35b   :  { %3267 = vrot.lane.b32.xlu2 %v6283_v42, %s5308_s11  ;;  %v6712_v42 = vperm.slane %v1960_v44, %v5329_v11  ;;  %v739_v44 = vrot.slane %v5465_v53, 4 }
 0x35c   :  { %v6702_v59 = vpop.permute.xlu1 %3355 }
 0x35d   :  { %9698 = vst [vmem:[#allocation207_spill] sm:$0xff] %v6702_v59  ;;  %v6705_v41 = vpop.permute.xlu2 %3133  ;;  %3525 = vrot.lane.b32.xlu0 %v1954_v19, %s5309_s9  ;;  %v750_v19 = vsel %vm169_vm0, 0.0, %v749_v24  ;;  %v740_v24 = vsel %vm169_vm0, 0.0, %v739_v44 }
 0x35e   :  { %9699 = vst [vmem:[#allocation208_spill] sm:$0xff] %v6705_v41  ;;  %v6732_v21 = vperm.slane %v750_v19, %v5329_v11 }
 0x35f   :  { %v6709_v22 = vpop.permute.xlu0 %3357 }
 0x360   :  { %9700 = vst [vmem:[#allocation209_spill] sm:$0xff] %v6709_v22  ;;  %v617_v22 = vrot.slane %v6314_v7, 4 }
 0x362   :  { %3533 = vrot.lane.b32.xlu1 %v6712_v42, %s5291_s23  ;;  %v618_v43 = vsel %vm169_vm0, 0.0, %v617_v22 }
 0x363   :  { %3277 = vrot.lane.b32.xlu2 %v1802_v57, %s5309_s9  ;;  %v1955_v57 = vrot.slane %v5441_v30, 4  ;;  %v1987_v30 = vrot.slane %v1974_v5, 4 }
 0x364   :  { %v6719_v9 = vpop.permute.xlu1 %3365 }
 0x365   :  { %9701 = vst [vmem:[#allocation210_spill] sm:$0xff] %v6719_v9  ;;  %v6723_v41 = vpop.permute.xlu2 %3147  ;;  %3539 = vrot.lane.b32.xlu0 %v770_v56, %s5293_s25  ;;  %v1956_v7 = vsel %vm169_vm0, 0.0, %v1955_v57  ;;  %v748_v56 = vperm.slane %v740_v24, %v5327_v10  ;;  %v1988_v9 = vsel %vm169_vm0, 0.0, %v1987_v30 }
 0x366   :  { %9702 = vst [vmem:[#allocation211_spill] sm:$0xff] %v6723_v41  ;;  %v1964_v44 = vperm.slane %v1956_v7, %v5327_v10  ;;  %v623_v41 = vrot.slane %v6390_v31, 4 }
 0x367   :  { %v6729_v47 = vpop.permute.xlu0 %3371  ;;  %v764_v22 = vperm.slane %v748_v56, %v5329_v11 }
 0x368   :  { %9703 = vst [vmem:[#allocation212_spill] sm:$0xff] %v6729_v47  ;;  %v6759_v24 = vperm.slane %v1964_v44, %v5329_v11 }
 0x369   :  { %v773_v7 = vrot.slane %v764_v22, 4 }
 0x36a   :  { %3547 = vrot.lane.b32.xlu1 %v6732_v21, %s5294_s26  ;;  %v1989_v30 = vrot.slane %v6759_v24, 4 }
 0x36b   :  { %3291 = vrot.lane.b32.xlu2 %v618_v43, %s5293_s25  ;;  %v759_v43 = vrot.slane %v748_v56, 4 }
 0x36c   :  { %v6741_v53 = vpop.permute.xlu1 %3379 }
 0x36d   :  { %9704 = vst [vmem:[#allocation213_spill] sm:$0xff] %v6741_v53  ;;  %v6745_v19 = vpop.permute.xlu2 %3157  ;;  %3549 = vrot.lane.b32.xlu0 %v1974_v5, %s5294_s26 }
 0x36e   :  { %9705 = vst [vmem:[#allocation214_spill] sm:$0xff] %v6745_v19 }
 0x36f   :  { %v6748_v52 = vpop.permute.xlu0 %3381 }
 0x370   :  { %9706 = vst [vmem:[#allocation215_spill] sm:$0xff] %v6748_v52  ;;  %v1975_v52 = vrot.slane %v1964_v44, 4 }
 0x372   :  { %3557 = vrot.lane.b32.xlu1 %v1988_v9, %s5296_s28  ;;  %v774_v9 = vsel %vm169_vm0, 0.0, %v773_v7  ;;  %v1837_v7 = vrot.slane %v6369_v58, 4 }
 0x373   :  { %3301 = vrot.lane.b32.xlu2 %v6339_v61, %s5294_s26  ;;  %v760_v61 = vsel %vm169_vm0, 0.0, %v759_v43  ;;  %v1976_v43 = vsel %vm169_vm0, 0.0, %v1975_v52 }
 0x374   :  { %v6756_v57 = vpop.permute.xlu1 %3389  ;;  %v1838_v52 = vsel %vm169_vm0, 0.0, %v1837_v7 }
 0x375   :  { %9707 = vst [vmem:[#allocation216_spill] sm:$0xff] %v6756_v57  ;;  %v6761_v5 = vpop.permute.xlu2 %3171  ;;  %3563 = vrot.lane.b32.xlu0 %v764_v22, %s5297_s29  ;;  %v1990_v57 = vsel %vm169_vm0, 0.0, %v1989_v30  ;;  %v6776_v22 = vperm.slane %v760_v61, %v5329_v11  ;;  %v6790_v30 = vperm.slane %v1976_v43, %v5329_v11 }
 0x376   :  { %9708 = vst [vmem:[#allocation217_spill] sm:$0xff] %v6761_v5  ;;  %v782_v5 = vperm.slane %v5473_v0, %v5327_v10 }
 0x377   :  { %v6764_v19 = vpop.permute.xlu0 %3395  ;;  %v775_v61 = vrot.slane %v6776_v22, 4 }
 0x378   :  { %9709 = vst [vmem:[#allocation218_spill] sm:$0xff] %v6764_v19 }
 0x379   :  { %v776_v43 = vsel %vm169_vm0, 0.0, %v775_v61  ;;  %v624_v61 = vsel %vm169_vm0, 0.0, %v623_v41 }
 0x37a   :  { %3571 = vrot.lane.b32.xlu1 %v774_v9, %s5298_s30 }
 0x37b   :  { %3315 = vrot.lane.b32.xlu2 %v6360_v38, %s5297_s29  ;;  %v1998_v38 = vperm.slane %v5452_v36, %v5327_v10 }
 0x37c   :  { %v6772_v56 = vpop.permute.xlu1 %3403 }
 0x37d   :  { %9710 = vst [vmem:[#allocation219_spill] sm:$0xff] %v6772_v56  ;;  %v6780_v44 = vpop.permute.xlu2 %3181  ;;  %3573 = vrot.lane.b32.xlu0 %v1990_v57, %s5298_s30  ;;  %v6794_v56 = vperm.slane %v782_v5, %v5329_v11  ;;  %v6801_v58 = vperm.slane %v1998_v38, %v5329_v11 }
 0x37e   :  { %9711 = vst [vmem:[#allocation220_spill] sm:$0xff] %v6780_v44  ;;  %v787_v44 = vrot.slane %v782_v5, 4  ;;  %v6818_v5 = vperm.slane %v6407_v2, %v5329_v11 }
 0x37f   :  { %v6785_v9 = vpop.permute.xlu0 %3405  ;;  %9713 = vst [vmem:[#allocation222_spill] sm:$0xff] %v6794_v56  ;;  %v807_v19 = vrot.slane %v6794_v56, 4  ;;  %v2023_v7 = vrot.slane %v6801_v58, 4 }
 0x380   :  { %9712 = vst [vmem:[#allocation221_spill] sm:$0xff] %v6785_v9  ;;  %v788_v48 = vsel %vm169_vm0, 0.0, %v787_v44  ;;  %v777_v44 = vrot.slane %v5473_v0, 4  ;;  %v1871_v41 = vrot.slane %v6818_v5, 4 }
 0x381   :  { %9714 = vst [vmem:[#allocation223_spill] sm:$0xff] %v6801_v58 }
 0x382   :  { %3581 = vrot.lane.b32.xlu1 %v6790_v30, %s5300_s3  ;;  %9718 = vst [vmem:[#allocation227_spill] sm:$0xff] %v6818_v5 }
 0x383   :  { %3325 = vrot.lane.b32.xlu2 %v1838_v52, %s5298_s30  ;;  %v2003_v52 = vrot.slane %v1998_v38, 4  ;;  %v6827_v38 = vperm.slane %v788_v48, %v5329_v11 }
 0x384   :  { %v6803_v57 = vpop.permute.xlu1 %3413 }
 0x385   :  { %9715 = vst [vmem:[#allocation224_spill] sm:$0xff] %v6803_v57  ;;  %v6806_v9 = vpop.permute.xlu2 %3195  ;;  %3587 = vrot.lane.b32.xlu0 %v776_v43, %s5301_s4  ;;  %v808_v57 = vsel %vm169_vm0, 0.0, %v807_v19  ;;  %v2024_v43 = vsel %vm169_vm0, 0.0, %v2023_v7  ;;  %v2004_v2 = vsel %vm169_vm0, 0.0, %v2003_v52  ;;  %v809_v48 = vrot.slane %v6827_v38, 4 }
 0x386   :  { %9716 = vst [vmem:[#allocation225_spill] sm:$0xff] %v6806_v9  ;;  %v6839_v9 = vperm.slane %v2004_v2, %v5329_v11  ;;  %v778_v7 = vsel %vm169_vm0, 0.0, %v777_v44  ;;  %v1872_v52 = vsel %vm169_vm0, 0.0, %v1871_v41  ;;  %v657_v44 = vrot.slane %v6434_v20, 4 }
 0x387   :  { %v6811_v53 = vpop.permute.xlu0 %3419  ;;  %v810_v2 = vsel %vm169_vm0, 0.0, %v809_v48 }
 0x388   :  { %9717 = vst [vmem:[#allocation226_spill] sm:$0xff] %v6811_v53  ;;  %v658_v48 = vsel %vm169_vm0, 0.0, %v657_v44 }
 0x38a   :  { %3595 = vrot.lane.b32.xlu1 %v808_v57, %s5280_s0  ;;  %v1993_v57 = vrot.slane %v5452_v36, 4  ;;  %v786_v36 = vperm.slane %v778_v7, %v5327_v10 }
 0x38b   :  { %3339 = vrot.lane.b32.xlu2 %v624_v61, %s5301_s4 }
 0x38c   :  { %v6823_v31 = vpop.permute.xlu1 %3427  ;;  %v1994_v0 = vsel %vm169_vm0, 0.0, %v1993_v57  ;;  %v6860_v41 = vperm.slane %v786_v36, %v5329_v11  ;;  %v797_v7 = vrot.slane %v786_v36, 4 }
 0x38d   :  { %9719 = vst [vmem:[#allocation228_spill] sm:$0xff] %v6823_v31  ;;  %v6830_v19 = vpop.permute.xlu2 %3205  ;;  %3597 = vrot.lane.b32.xlu0 %v2024_v43, %s5280_s0 }
 0x38e   :  { %9720 = vst [vmem:[#allocation229_spill] sm:$0xff] %v6830_v19  ;;  %v2002_v19 = vperm.slane %v1994_v0, %v5327_v10 }
 0x38f   :  { %v6836_v61 = vpop.permute.xlu0 %3429 }
 0x390   :  { %9721 = vst [vmem:[#allocation230_spill] sm:$0xff] %v6836_v61 }
 0x392   :  { %3605 = vrot.lane.b32.xlu1 %v6839_v9, %s5277_s12 }
 0x393   :  { %3349 = vrot.lane.b32.xlu2 %v1872_v52, %s5280_s0  ;;  %v2018_v52 = vperm.slane %v2002_v19, %v5329_v11 }
 0x394   :  { %v6849_v43 = vpop.permute.xlu1 %3437 }
 0x395   :  { %9722 = vst [vmem:[#allocation231_spill] sm:$0xff] %v6849_v43  ;;  %v6853_v61 = vpop.permute.xlu2 %3219  ;;  %3611 = vrot.lane.b32.xlu0 %v810_v2, %s5282_s14  ;;  %v2013_v2 = vrot.slane %v2002_v19, 4  ;;  %v2027_v20 = vrot.slane %v2018_v52, 4 }
 0x396   :  { %9723 = vst [vmem:[#allocation232_spill] sm:$0xff] %v6853_v61  ;;  %v798_v61 = vsel %vm169_vm0, 0.0, %v797_v7 }
 0x397   :  { %v6857_v57 = vpop.permute.xlu0 %3443  ;;  %v2028_v36 = vsel %vm169_vm0, 0.0, %v2027_v20  ;;  %v806_v31 = vperm.slane %v798_v61, %v5329_v11  ;;  %v2014_v44 = vsel %vm169_vm0, 0.0, %v2013_v2  ;;  %v820_v61 = vperm.slane %v5482_v15, %v5327_v10 }
 0x398   :  { %9724 = vst [vmem:[#allocation233_spill] sm:$0xff] %v6857_v57 }
 0x399   :  { %v813_v7 = vrot.slane %v806_v31, 4 }
 0x39a   :  { %3619 = vrot.lane.b32.xlu1 %v6860_v41, %s5281_s13 }
 0x39b   :  { %3363 = vrot.lane.b32.xlu2 %v658_v48, %s5282_s14  ;;  %v6884_v48 = vperm.slane %v2014_v44, %v5329_v11  ;;  %v6901_v44 = vperm.slane %v820_v61, %v5329_v11 }
 0x39c   :  { %v6867_v0 = vpop.permute.xlu1 %3451 }
 0x39d   :  { %9725 = vst [vmem:[#allocation234_spill] sm:$0xff] %v6867_v0  ;;  %v6869_v43 = vpop.permute.xlu2 %3229  ;;  %3621 = vrot.lane.b32.xlu0 %v2018_v52, %s5281_s13  ;;  %v2029_v2 = vrot.slane %v6884_v48, 4 }
 0x39e   :  { %9726 = vst [vmem:[#allocation235_spill] sm:$0xff] %v6869_v43 }
 0x39f   :  { %v6873_v57 = vpop.permute.xlu0 %3453  ;;  %v2030_v43 = vsel %vm169_vm0, 0.0, %v2029_v2 }
 0x3a0   :  { %9727 = vst [vmem:[#allocation236_spill] sm:$0xff] %v6873_v57  ;;  %v825_v57 = vrot.slane %v820_v61, 4 }
 0x3a2   :  { %3629 = vrot.lane.b32.xlu1 %v2028_v36, %s5283_s15  ;;  %v814_v36 = vsel %vm169_vm0, 0.0, %v813_v7  ;;  %v1877_v7 = vrot.slane %v6488_v45, 4 }
 0x3a3   :  { %3373 = vrot.lane.b32.xlu2 %v6461_v29, %s5281_s13  ;;  %v2036_v29 = vperm.slane %v5463_v51, %v5327_v10 }
 0x3a4   :  { %v6881_v19 = vpop.permute.xlu1 %3461  ;;  %v1878_v2 = vsel %vm169_vm0, 0.0, %v1877_v7 }
 0x3a5   :  { %9728 = vst [vmem:[#allocation237_spill] sm:$0xff] %v6881_v19  ;;  %v6886_v52 = vpop.permute.xlu2 %3243  ;;  %3635 = vrot.lane.b32.xlu0 %v806_v31, %s5284_s16 }
 0x3a6   :  { %9729 = vst [vmem:[#allocation238_spill] sm:$0xff] %v6886_v52  ;;  %v845_v52 = vrot.slane %v6901_v44, 4 }
 0x3a7   :  { %v6889_v20 = vpop.permute.xlu0 %3467 }
 0x3a8   :  { %9730 = vst [vmem:[#allocation239_spill] sm:$0xff] %v6889_v20  ;;  %v2041_v20 = vrot.slane %v2036_v29, 4  ;;  %v846_v45 = vsel %vm169_vm0, 0.0, %v845_v52 }
 0x3aa   :  { %3643 = vrot.lane.b32.xlu1 %v814_v36, %s9453_s17  ;;  %v2042_v61 = vsel %vm169_vm0, 0.0, %v2041_v20 }
 0x3ab   :  { %3387 = vrot.lane.b32.xlu2 %v6478_v18, %s5284_s16  ;;  %v6913_v18 = vperm.slane %v2036_v29, %v5329_v11  ;;  %v815_v29 = vrot.slane %v5482_v15, 4  ;;  %v2050_v52 = vperm.slane %v2042_v61, %v5329_v11 }
 0x3ac   :  { %v6903_v31 = vpop.permute.xlu1 %3475 }
 0x3ad   :  { %9731 = vst [vmem:[#allocation240_spill] sm:$0xff] %v6903_v31  ;;  %v6906_v19 = vpop.permute.xlu2 %3253  ;;  %3645 = vrot.lane.b32.xlu0 %v2030_v43, %s9453_s17  ;;  %v826_v43 = vsel %vm169_vm0, 0.0, %v825_v57  ;;  %v693_v31 = vrot.slane %v6509_v25, 4  ;;  %v816_v57 = vsel %vm169_vm0, 0.0, %v815_v29 }
 0x3ae   :  { %9732 = vst [vmem:[#allocation241_spill] sm:$0xff] %v6906_v19  ;;  %v6933_v7 = vperm.slane %v826_v43, %v5329_v11 }
 0x3af   :  { %v6910_v36 = vpop.permute.xlu0 %3477  ;;  %v694_v20 = vsel %vm169_vm0, 0.0, %v693_v31 }
 0x3b0   :  { %9733 = vst [vmem:[#allocation242_spill] sm:$0xff] %v6910_v36 }
 0x3b2   :  { %3653 = vrot.lane.b32.xlu1 %v6913_v18, %s5286_s18 }
 0x3b3   :  { %3397 = vrot.lane.b32.xlu2 %v1878_v2, %s9453_s17  ;;  %v2031_v2 = vrot.slane %v5463_v51, 4  ;;  %v2063_v51 = vrot.slane %v2050_v52, 4 }
 0x3b4   :  { %v6920_v19 = vpop.permute.xlu1 %3485 }
 0x3b5   :  { %9734 = vst [vmem:[#allocation243_spill] sm:$0xff] %v6920_v19  ;;  %v6924_v36 = vpop.permute.xlu2 %3267  ;;  %3659 = vrot.lane.b32.xlu0 %v846_v45, %s5287_s19  ;;  %v2032_v25 = vsel %vm169_vm0, 0.0, %v2031_v2  ;;  %v824_v45 = vperm.slane %v816_v57, %v5327_v10  ;;  %v2064_v19 = vsel %vm169_vm0, 0.0, %v2063_v51 }
 0x3b6   :  { %9735 = vst [vmem:[#allocation244_spill] sm:$0xff] %v6924_v36  ;;  %v2040_v29 = vperm.slane %v2032_v25, %v5327_v10  ;;  %v853_v36 = vrot.slane %v5496_v46, 4 }
 0x3b7   :  { %v6930_v0 = vpop.permute.xlu0 %3491  ;;  %v840_v31 = vperm.slane %v824_v45, %v5329_v11 }
 0x3b8   :  { %9736 = vst [vmem:[#allocation245_spill] sm:$0xff] %v6930_v0  ;;  %v6960_v57 = vperm.slane %v2040_v29, %v5329_v11 }
 0x3b9   :  { %v849_v25 = vrot.slane %v840_v31, 4 }
 0x3ba   :  { %3667 = vrot.lane.b32.xlu1 %v6933_v7, %s9447_s20  ;;  %v2065_v51 = vrot.slane %v6960_v57, 4 }
 0x3bb   :  { %3411 = vrot.lane.b32.xlu2 %v694_v20, %s5287_s19  ;;  %v835_v20 = vrot.slane %v824_v45, 4 }
 0x3bc   :  { %v6942_v15 = vpop.permute.xlu1 %3499 }
 0x3bd   :  { %9737 = vst [vmem:[#allocation246_spill] sm:$0xff] %v6942_v15  ;;  %v6946_v43 = vpop.permute.xlu2 %3277  ;;  %3669 = vrot.lane.b32.xlu0 %v2050_v52, %s9447_s20 }
 0x3be   :  { %9738 = vst [vmem:[#allocation247_spill] sm:$0xff] %v6946_v43 }
 0x3bf   :  { %v6949_v61 = vpop.permute.xlu0 %3501 }
 0x3c0   :  { %9739 = vst [vmem:[#allocation248_spill] sm:$0xff] %v6949_v61  ;;  %v2051_v61 = vrot.slane %v2040_v29, 4 }
 0x3c2   :  { %3677 = vrot.lane.b32.xlu1 %v2064_v19, %s5289_s21  ;;  %v850_v19 = vsel %vm169_vm0, 0.0, %v849_v25  ;;  %v2052_v29 = vsel %vm169_vm0, 0.0, %v2051_v61 }
 0x3c3   :  { %3421 = vrot.lane.b32.xlu2 %v6534_v6, %s9447_s20  ;;  %v836_v6 = vsel %vm169_vm0, 0.0, %v835_v20  ;;  %v1913_v20 = vrot.slane %v6564_v54, 4 }
 0x3c4   :  { %v6957_v2 = vpop.permute.xlu1 %3509 }
 0x3c5   :  { %9740 = vst [vmem:[#allocation249_spill] sm:$0xff] %v6957_v2  ;;  %v6962_v52 = vpop.permute.xlu2 %3291  ;;  %3683 = vrot.lane.b32.xlu0 %v840_v31, %s9444_s22  ;;  %v2066_v2 = vsel %vm169_vm0, 0.0, %v2065_v51  ;;  %v6977_v31 = vperm.slane %v836_v6, %v5329_v11  ;;  %v1914_v51 = vsel %vm169_vm0, 0.0, %v1913_v20  ;;  %v2074_v6 = vperm.slane %v5475_v1, %v5327_v10 }
 0x3c6   :  { %9741 = vst [vmem:[#allocation250_spill] sm:$0xff] %v6962_v52 }
 0x3c7   :  { %v6965_v43 = vpop.permute.xlu0 %3515 }
 0x3c8   :  { %9742 = vst [vmem:[#allocation251_spill] sm:$0xff] %v6965_v43 }
 0x3ca   :  { %3691 = vrot.lane.b32.xlu1 %v850_v19, %s5292_s24  ;;  %v6987_v19 = vperm.slane %v2052_v29, %v5329_v11 }
 0x3cb   :  { %3435 = vrot.lane.b32.xlu2 %v6555_v3, %s9444_s22  ;;  %v851_v3 = vrot.slane %v6977_v31, 4  ;;  %s9748_s22 = smov 60  }
 0x3cc   :  { %v6973_v45 = vpop.permute.xlu1 %3523 }
 0x3cd   :  { %9743 = vst [vmem:[#allocation252_spill] sm:$0xff] %v6973_v45  ;;  %v6979_v52 = vpop.permute.xlu2 %3301  ;;  %3693 = vrot.lane.b32.xlu0 %v2066_v2, %s5292_s24  ;;  %v858_v2 = vperm.slane %v5496_v46, %v5327_v10  ;;  %v852_v54 = vsel %vm169_vm0, 0.0, %v851_v3 }
 0x3ce   :  { %9744 = vst [vmem:[#allocation253_spill] sm:$0xff] %v6979_v52  ;;  %v699_v52 = vrot.slane %v6583_v60, 4 }
 0x3cf   :  { %v6984_v25 = vpop.permute.xlu0 %3525  ;;  %v7008_v20 = vperm.slane %v858_v2, %v5329_v11  ;;  %v863_v45 = vrot.slane %v858_v2, 4 }
 0x3d0   :  { %9745 = vst [vmem:[#allocation254_spill] sm:$0xff] %v6984_v25  ;;  %v700_v3 = vsel %vm169_vm0, 0.0, %v699_v52 }
 0x3d2   :  { %3701 = vrot.lane.b32.xlu1 %v6987_v19, %s5295_s27 }
 0x3d3   :  { %3445 = vrot.lane.b32.xlu2 %v1914_v51, %s5292_s24  ;;  %v2084_v51 = vperm.slane %v2074_v6, %v5329_v11 }
 0x3d4   :  { %v6996_v61 = vpop.permute.xlu1 %3533 }
 0x3d5   :  { %9746 = vst [vmem:[#allocation255_spill] sm:$0xff] %v6996_v61  ;;  %v7001_v29 = vpop.permute.xlu2 %3315  ;;  %3707 = vrot.lane.b32.xlu0 %v852_v54, %s9748_s22  ;;  %v2079_v54 = vrot.slane %v2074_v6, 4  ;;  %v2099_v60 = vrot.slane %v2084_v51, 4 }
 0x3d6   :  { %9747 = vst [vmem:[#allocation256_spill] sm:$0xff] %v7001_v29 }
 0x3d7   :  { %v7005_v25 = vpop.permute.xlu0 %3539  ;;  %v2080_v2 = vsel %vm169_vm0, 0.0, %v2079_v54  ;;  %v2100_v52 = vsel %vm169_vm0, 0.0, %v2099_v60  ;;  %v854_v54 = vsel %vm169_vm0, 0.0, %v853_v36 }
 0x3d8   :  { %9749 = vst [vmem:[#allocation257_spill] sm:$0xff] %v7005_v25  ;;  %v864_v25 = vsel %vm169_vm0, 0.0, %v863_v45  ;;  %v2069_v45 = vrot.slane %v5475_v1, 4  ;;  %v862_v60 = vperm.slane %v854_v54, %v5327_v10 }
 0x3da   :  { %3715 = vrot.lane.b32.xlu1 %v7008_v20, %s5302_s5 }
 0x3db   :  { %3459 = vrot.lane.b32.xlu2 %v700_v3, %s9748_s22  ;;  %v872_v3 = vperm.slane %v864_v25, %v5329_v11 }
 0x3dc   :  { %v7015_v61 = vpop.permute.xlu1 %3547 }
 0x3dd   :  { %9750 = vst [vmem:[#allocation258_spill] sm:$0xff] %v7015_v61  ;;  %v7017_v29 = vpop.permute.xlu2 %3325  ;;  %3717 = vrot.lane.b32.xlu0 %v2084_v51, %s5302_s5  ;;  %v7033_v51 = vperm.slane %v2080_v2, %v5329_v11  ;;  %v885_v46 = vrot.slane %v872_v3, 4 }
 0x3de   :  { %9751 = vst [vmem:[#allocation259_spill] sm:$0xff] %v7017_v29 }
 0x3df   :  { %v7021_v43 = vpop.permute.xlu0 %3549  ;;  %v886_v2 = vsel %vm169_vm0, 0.0, %v885_v46 }
 0x3e0   :  { %9752 = vst [vmem:[#allocation260_spill] sm:$0xff] %v7021_v43 }
 0x3e2   :  { %3725 = vrot.lane.b32.xlu1 %v2100_v52, %s9685_s2  ;;  %v2070_v52 = vsel %vm169_vm0, 0.0, %v2069_v45  ;;  %v1949_v45 = vrot.slane %v6638_v28, 4 }
 0x3e3   :  { %3469 = vrot.lane.b32.xlu2 %v6607_v49, %s5302_s5  ;;  %v2101_v49 = vrot.slane %v7033_v51, 4  ;;  %v2078_v1 = vperm.slane %v2070_v52, %v5327_v10  ;;  %v873_v52 = vrot.slane %v862_v60, 4 }
 0x3e4   :  { %v7030_v6 = vpop.permute.xlu1 %3557 }
 0x3e5   :  { %9753 = vst [vmem:[#allocation261_spill] sm:$0xff] %v7030_v6  ;;  %v7037_v29 = vpop.permute.xlu2 %3339  ;;  %3731 = vrot.lane.b32.xlu0 %v872_v3, %s5304_s7  ;;  %v2102_v3 = vsel %vm169_vm0, 0.0, %v2101_v49  ;;  %v2089_v6 = vrot.slane %v2078_v1, 4  ;;  %v1950_v49 = vsel %vm169_vm0, 0.0, %v1949_v45 }
 0x3e6   :  { %9754 = vst [vmem:[#allocation262_spill] sm:$0xff] %v7037_v29  ;;  %v7054_v29 = vperm.slane %v862_v60, %v5329_v11  ;;  %v735_v60 = vrot.slane %v6659_v33, 4  ;;  %v896_v33 = vperm.slane %v5510_v8, %v5327_v10 }
 0x3e7   :  { %v7040_v25 = vpop.permute.xlu0 %3563 }
 0x3e8   :  { %9755 = vst [vmem:[#allocation263_spill] sm:$0xff] %v7040_v25 }
 0x3ea   :  { %3739 = vrot.lane.b32.xlu1 %v886_v2, %s5305_s8  ;;  %v7063_v2 = vperm.slane %v2078_v1, %v5329_v11  ;;  %v2090_v1 = vsel %vm169_vm0, 0.0, %v2089_v6 }
 0x3eb   :  { %3483 = vrot.lane.b32.xlu2 %v6626_v62, %s5304_s7  ;;  %v887_v62 = vrot.slane %v7054_v29, 4 }
 0x3ec   :  { %v7050_v36 = vpop.permute.xlu1 %3571 }
 0x3ed   :  { %9756 = vst [vmem:[#allocation264_spill] sm:$0xff] %v7050_v36  ;;  %v7056_v54 = vpop.permute.xlu2 %3349  ;;  %3741 = vrot.lane.b32.xlu0 %v2102_v3, %s5305_s8  ;;  %v888_v28 = vsel %vm169_vm0, 0.0, %v887_v62  ;;  %v736_v62 = vsel %vm169_vm0, 0.0, %v735_v60 }
 0x3ee   :  { %9757 = vst [vmem:[#allocation265_spill] sm:$0xff] %v7056_v54 }
 0x3ef   :  { %v7060_v46 = vpop.permute.xlu0 %3573 }
 0x3f0   :  { %9758 = vst [vmem:[#allocation266_spill] sm:$0xff] %v7060_v46  ;;  %v874_v46 = vsel %vm169_vm0, 0.0, %v873_v52 }
 0x3f1   :  { %v7082_v45 = vperm.slane %v874_v46, %v5329_v11 }
 0x3f2   :  { %3749 = vrot.lane.b32.xlu1 %v7063_v2, %s9627_s6 }
 0x3f3   :  { %3493 = vrot.lane.b32.xlu2 %v1950_v49, %s5305_s8  ;;  %v2098_v49 = vperm.slane %v2090_v1, %v5329_v11  ;;  %v2112_v1 = vperm.slane %v5486_v26, %v5327_v10 }
 0x3f4   :  { %v7070_v43 = vpop.permute.xlu1 %3581 }
 0x3f5   :  { %9759 = vst [vmem:[#allocation267_spill] sm:$0xff] %v7070_v43  ;;  %v7073_v3 = vpop.permute.xlu2 %3363  ;;  %3755 = vrot.lane.b32.xlu0 %v888_v28, %s5307_s10  ;;  %v2105_v46 = vrot.slane %v2098_v49, 4  ;;  %v906_v43 = vperm.slane %v896_v33, %v5329_v11  ;;  %v2117_v0 = vrot.slane %v2112_v1, 4 }
 0x3f6   :  { %9760 = vst [vmem:[#allocation268_spill] sm:$0xff] %v7073_v3 }
 0x3f7   :  { %v7079_v36 = vpop.permute.xlu0 %3587  ;;  %v2106_v60 = vsel %vm169_vm0, 0.0, %v2105_v46  ;;  %v921_v61 = vrot.slane %v906_v43, 4 }
 0x3f8   :  { %9761 = vst [vmem:[#allocation269_spill] sm:$0xff] %v7079_v36 }
 0x3fa   :  { %3763 = vrot.lane.b32.xlu1 %v7082_v45, %s5308_s11 }
 0x3fb   :  { %3507 = vrot.lane.b32.xlu2 %v736_v62, %s5307_s10  ;;  %v7106_v62 = vperm.slane %v2112_v1, %v5329_v11  ;;  %v891_v1 = vrot.slane %v5510_v8, 4 }
 0x3fc   :  { %v7089_v28 = vpop.permute.xlu1 %3595 }
 0x3fd   :  { %9762 = vst [vmem:[#allocation270_spill] sm:$0xff] %v7089_v28  ;;  %v7093_v6 = vpop.permute.xlu2 %3373  ;;  %3765 = vrot.lane.b32.xlu0 %v2098_v49, %s5308_s11  ;;  %v901_v49 = vrot.slane %v896_v33, 4  ;;  %v2137_v46 = vrot.slane %v7106_v62, 4 }
 0x3fe   :  { %9763 = vst [vmem:[#allocation271_spill] sm:$0xff] %v7093_v6 }
 0x3ff   :  { %v7096_v52 = vpop.permute.xlu0 %3597  ;;  %v2138_v53 = vsel %vm169_vm0, 0.0, %v2137_v46 }
 0x400   :  { %9764 = vst [vmem:[#allocation272_spill] sm:$0xff] %v7096_v52 }
 0x402   :  { %3773 = vrot.lane.b32.xlu1 %v2106_v60, %s5309_s9  ;;  %v902_v60 = vsel %vm169_vm0, 0.0, %v901_v49  ;;  %v1985_v49 = vrot.slane %v6712_v42, 4 }
 0x403   :  { %3517 = vrot.lane.b32.xlu2 %v6683_v32, %s5308_s11  ;;  %v922_v32 = vsel %vm169_vm0, 0.0, %v921_v61  ;;  %v2107_v61 = vrot.slane %v5486_v26, 4 }
 0x404   :  { %v7108_v36 = vpop.permute.xlu1 %3605  ;;  %v1986_v8 = vsel %vm169_vm0, 0.0, %v1985_v49 }
 0x405   :  { %9765 = vst [vmem:[#allocation273_spill] sm:$0xff] %v7108_v36  ;;  %v7110_v25 = vpop.permute.xlu2 %3387  ;;  %3779 = vrot.lane.b32.xlu0 %v906_v43, %s5291_s23  ;;  %v7125_v43 = vperm.slane %v902_v60, %v5329_v11  ;;  %v2118_v36 = vsel %vm169_vm0, 0.0, %v2117_v0  ;;  %v892_v60 = vsel %vm169_vm0, 0.0, %v891_v1  ;;  %v2108_v0 = vsel %vm169_vm0, 0.0, %v2107_v61 }
 0x406   :  { %9766 = vst [vmem:[#allocation274_spill] sm:$0xff] %v7110_v25  ;;  %v900_v26 = vperm.slane %v892_v60, %v5327_v10  ;;  %v771_v1 = vrot.slane %v6732_v21, 4 }
 0x407   :  { %v7113_v15 = vpop.permute.xlu0 %3611  ;;  %v923_v46 = vrot.slane %v7125_v43, 4 }
 0x408   :  { %9767 = vst [vmem:[#allocation275_spill] sm:$0xff] %v7113_v15  ;;  %v7158_v49 = vperm.slane %v900_v26, %v5329_v11  ;;  %v911_v60 = vrot.slane %v900_v26, 4 }
 0x40a   :  { %3787 = vrot.lane.b32.xlu1 %v922_v32, %s5293_s25  ;;  %v7137_v32 = vperm.slane %v2118_v36, %v5329_v11  ;;  %v2116_v36 = vperm.slane %v2108_v0, %v5327_v10 }
 0x40b   :  { %3531 = vrot.lane.b32.xlu2 %v6700_v13, %s5291_s23 }
 0x40c   :  { %v7121_v33 = vpop.permute.xlu1 %3619 }
 0x40d   :  { %9768 = vst [vmem:[#allocation276_spill] sm:$0xff] %v7121_v33  ;;  %v7129_v58 = vpop.permute.xlu2 %3397  ;;  %3789 = vrot.lane.b32.xlu0 %v2138_v53, %s5293_s25  ;;  %v924_v53 = vsel %vm169_vm0, 0.0, %v923_v46  ;;  %v772_v46 = vsel %vm169_vm0, 0.0, %v771_v1 }
 0x40e   :  { %9769 = vst [vmem:[#allocation277_spill] sm:$0xff] %v7129_v58 }
 0x40f   :  { %v7134_v13 = vpop.permute.xlu0 %3621 }
 0x410   :  { %9770 = vst [vmem:[#allocation278_spill] sm:$0xff] %v7134_v13  ;;  %v912_v13 = vsel %vm169_vm0, 0.0, %v911_v60 }
 0x412   :  { %3797 = vrot.lane.b32.xlu1 %v7137_v32, %s5294_s26 }
 0x413   :  { %3541 = vrot.lane.b32.xlu2 %v1986_v8, %s5293_s25  ;;  %v2132_v8 = vperm.slane %v2116_v36, %v5329_v11 }
 0x414   :  { %v7147_v42 = vpop.permute.xlu1 %3629 }
 0x415   :  { %9771 = vst [vmem:[#allocation279_spill] sm:$0xff] %v7147_v42  ;;  %v7151_v58 = vpop.permute.xlu2 %3411  ;;  %3803 = vrot.lane.b32.xlu0 %v924_v53, %s5296_s28  ;;  %v2127_v53 = vrot.slane %v2116_v36, 4  ;;  %v2141_v21 = vrot.slane %v2132_v8, 4 }
 0x416   :  { %9772 = vst [vmem:[#allocation280_spill] sm:$0xff] %v7151_v58  ;;  %v920_v58 = vperm.slane %v912_v13, %v5329_v11 }
 0x417   :  { %v7155_v61 = vpop.permute.xlu0 %3635  ;;  %v2142_v26 = vsel %vm169_vm0, 0.0, %v2141_v21  ;;  %v2128_v1 = vsel %vm169_vm0, 0.0, %v2127_v53  ;;  %v9779_v53 = vld [vmem:[#allocation23_spill] sm:$0xff] }
 0x418   :  { %9773 = vst [vmem:[#allocation281_spill] sm:$0xff] %v7155_v61  ;;  %v927_v13 = vrot.slane %v920_v58, 4  ;;  %v7191_v21 = vperm.slane %v9779_v53, %v5327_v10 }
 0x41a   :  { %3811 = vrot.lane.b32.xlu1 %v7158_v49, %s5297_s29  ;;  %v7599_v47 = vperm.slane %v7191_v21, %v5329_v11 }
 0x41b   :  { %3555 = vrot.lane.b32.xlu2 %v772_v46, %s5296_s28  ;;  %v7182_v46 = vperm.slane %v2128_v1, %v5329_v11  ;;  %v928_v1 = vsel %vm169_vm0, 0.0, %v927_v13  ;;  %v1991_v13 = vrot.slane %v6790_v30, 4 }
 0x41c   :  { %v7165_v0 = vpop.permute.xlu1 %3643 }
 0x41d   :  { %9774 = vst [vmem:[#allocation282_spill] sm:$0xff] %v7165_v0  ;;  %v7167_v42 = vpop.permute.xlu2 %3421  ;;  %3813 = vrot.lane.b32.xlu0 %v2132_v8, %s5297_s29  ;;  %v2150_v8 = vperm.slane %v5498_v50, %v5327_v10 }
 0x41e   :  { %9775 = vst [vmem:[#allocation283_spill] sm:$0xff] %v7167_v42  ;;  %v939_v42 = vrot.slane %v7191_v21, 4 }
 0x41f   :  { %v7171_v61 = vpop.permute.xlu0 %3645 }
 0x420   :  { %9776 = vst [vmem:[#allocation284_spill] sm:$0xff] %v7171_v61  ;;  %v940_v52 = vsel %vm169_vm0, 0.0, %v939_v42  ;;  %v2145_v42 = vrot.slane %v5498_v50, 4 }
 0x422   :  { %3821 = vrot.lane.b32.xlu1 %v2142_v26, %s5298_s30 }
 0x423   :  { %3565 = vrot.lane.b32.xlu2 %v6759_v24, %s5297_s29  ;;  %v2143_v24 = vrot.slane %v7182_v46, 4 }
 0x424   :  { %v7179_v36 = vpop.permute.xlu1 %3653 }
 0x425   :  { %9777 = vst [vmem:[#allocation285_spill] sm:$0xff] %v7179_v36  ;;  %v7186_v60 = vpop.permute.xlu2 %3435  ;;  %3827 = vrot.lane.b32.xlu0 %v920_v58, %s5300_s3  ;;  %v7197_v36 = vperm.slane %v2150_v8, %v5329_v11  ;;  %v2144_v61 = vsel %vm169_vm0, 0.0, %v2143_v24 }
 0x426   :  { %9778 = vst [vmem:[#allocation286_spill] sm:$0xff] %v7186_v60  ;;  %v2155_v60 = vrot.slane %v2150_v8, 4  ;;  %v948_v8 = vperm.slane %v940_v52, %v5329_v11 }
 0x427   :  { %v7193_v26 = vpop.permute.xlu0 %3659  ;;  %v2175_v0 = vrot.slane %v7197_v36, 4 }
 0x428   :  { %9780 = vst [vmem:[#allocation23_spill] sm:$0xff] %v7193_v26  ;;  %v961_v52 = vrot.slane %v948_v8, 4 }
 0x42a   :  { %3835 = vrot.lane.b32.xlu1 %v928_v1, %s5301_s4  ;;  %v2156_v1 = vsel %vm169_vm0, 0.0, %v2155_v60 }
 0x42b   :  { %3579 = vrot.lane.b32.xlu2 %v6776_v22, %s5300_s3  ;;  %v929_v22 = vrot.slane %v9779_v53, 4  ;;  %v7225_v30 = vperm.slane %v2156_v1, %v5329_v11  ;;  %v962_v1 = vsel %vm169_vm0, 0.0, %v961_v52 }
 0x42c   :  { %v7204_v58 = vpop.permute.xlu1 %3667 }
 0x42d   :  { %9781 = vst [vmem:[#allocation287_spill] sm:$0xff] %v7204_v58  ;;  %v7207_v26 = vpop.permute.xlu2 %3445  ;;  %3837 = vrot.lane.b32.xlu0 %v2144_v61, %s5301_s4  ;;  %v2176_v58 = vsel %vm169_vm0, 0.0, %v2175_v0  ;;  %v1992_v61 = vsel %vm169_vm0, 0.0, %v1991_v13  ;;  %v930_v60 = vsel %vm169_vm0, 0.0, %v929_v22  ;;  %v2177_v13 = vrot.slane %v7225_v30, 4 }
 0x42e   :  { %9782 = vst [vmem:[#allocation288_spill] sm:$0xff] %v7207_v26 }
 0x42f   :  { %v7213_v33 = vpop.permute.xlu0 %3669 }
 0x430   :  { %9783 = vst [vmem:[#allocation289_spill] sm:$0xff] %v7213_v33 }
 0x432   :  { %3845 = vrot.lane.b32.xlu1 %v2176_v58, %s5280_s0  ;;  %v938_v58 = vperm.slane %v930_v60, %v5327_v10 }
 0x433   :  { %3589 = vrot.lane.b32.xlu2 %v1992_v61, %s5301_s4  ;;  %v2146_v61 = vsel %vm169_vm0, 0.0, %v2145_v42  ;;  %v2025_v42 = vrot.slane %v6839_v9, 4 }
 0x434   :  { %v7222_v24 = vpop.permute.xlu1 %3677  ;;  %v2154_v50 = vperm.slane %v2146_v61, %v5327_v10  ;;  %v949_v61 = vrot.slane %v938_v58, 4 }
 0x435   :  { %9784 = vst [vmem:[#allocation290_spill] sm:$0xff] %v7222_v24  ;;  %v7229_v53 = vpop.permute.xlu2 %3459  ;;  %3851 = vrot.lane.b32.xlu0 %v948_v8, %s5277_s12  ;;  %v2178_v8 = vsel %vm169_vm0, 0.0, %v2177_v13  ;;  %v7246_v24 = vperm.slane %v938_v58, %v5329_v11  ;;  %v2026_v13 = vsel %vm169_vm0, 0.0, %v2025_v42  ;;  %v811_v58 = vrot.slane %v6860_v41, 4  ;;  %v9794_v41 = vld [vmem:[#allocation26_spill] sm:$0xff] }
 0x436   :  { %9785 = vst [vmem:[#allocation291_spill] sm:$0xff] %v7229_v53 }
 0x437   :  { %v7232_v0 = vpop.permute.xlu0 %3683 }
 0x438   :  { %9786 = vst [vmem:[#allocation292_spill] sm:$0xff] %v7232_v0 }
 0x43a   :  { %3859 = vrot.lane.b32.xlu1 %v962_v1, %s5282_s14  ;;  %v7255_v1 = vperm.slane %v2154_v50, %v5329_v11 }
 0x43b   :  { %3603 = vrot.lane.b32.xlu2 %v6827_v38, %s5277_s12  ;;  %v963_v38 = vrot.slane %v7246_v24, 4 }
 0x43c   :  { %v7242_v22 = vpop.permute.xlu1 %3691 }
 0x43d   :  { %9787 = vst [vmem:[#allocation293_spill] sm:$0xff] %v7242_v22  ;;  %v7248_v60 = vpop.permute.xlu2 %3469  ;;  %3861 = vrot.lane.b32.xlu0 %v2178_v8, %s5282_s14  ;;  %v2165_v22 = vrot.slane %v2154_v50, 4  ;;  %v964_v9 = vsel %vm169_vm0, 0.0, %v963_v38  ;;  %v812_v38 = vsel %vm169_vm0, 0.0, %v811_v58 }
 0x43e   :  { %9788 = vst [vmem:[#allocation294_spill] sm:$0xff] %v7248_v60 }
 0x43f   :  { %v7252_v52 = vpop.permute.xlu0 %3693  ;;  %v2166_v50 = vsel %vm169_vm0, 0.0, %v2165_v22 }
 0x440   :  { %9789 = vst [vmem:[#allocation295_spill] sm:$0xff] %v7252_v52  ;;  %v950_v52 = vsel %vm169_vm0, 0.0, %v949_v61  ;;  %v972_v61 = vperm.slane %v9794_v41, %v5327_v10 }
 0x441   :  { %v7274_v42 = vperm.slane %v950_v52, %v5329_v11 }
 0x442   :  { %3869 = vrot.lane.b32.xlu1 %v7255_v1, %s5281_s13 }
 0x443   :  { %3613 = vrot.lane.b32.xlu2 %v2026_v13, %s5282_s14  ;;  %v2174_v13 = vperm.slane %v2166_v50, %v5329_v11  ;;  %v9797_v50 = vld [vmem:[#allocation21_spill] sm:$0xff]  ;;  %v965_v14 = vrot.slane %v7274_v42, 4 }
 0x444   :  { %v7262_v60 = vpop.permute.xlu1 %3701 }
 0x445   :  { %9790 = vst [vmem:[#allocation296_spill] sm:$0xff] %v7262_v60  ;;  %v7265_v8 = vpop.permute.xlu2 %3483  ;;  %3875 = vrot.lane.b32.xlu0 %v964_v9, %s5283_s15  ;;  %v2181_v52 = vrot.slane %v2174_v13, 4 }
 0x446   :  { %9791 = vst [vmem:[#allocation297_spill] sm:$0xff] %v7265_v8  ;;  %v982_v8 = vperm.slane %v972_v61, %v5329_v11 }
 0x447   :  { %v7271_v26 = vpop.permute.xlu0 %3707  ;;  %v2182_v58 = vsel %vm169_vm0, 0.0, %v2181_v52 }
 0x448   :  { %9792 = vst [vmem:[#allocation298_spill] sm:$0xff] %v7271_v26  ;;  %v2188_v26 = vperm.slane %v9797_v50, %v5327_v10 }
 0x44a   :  { %3883 = vrot.lane.b32.xlu1 %v7274_v42, %s5284_s16  ;;  %v2193_v0 = vrot.slane %v2188_v26, 4 }
 0x44b   :  { %3627 = vrot.lane.b32.xlu2 %v812_v38, %s5283_s15  ;;  %v7298_v38 = vperm.slane %v2188_v26, %v5329_v11  ;;  %v967_v26 = vrot.slane %v9794_v41, 4 }
 0x44c   :  { %v7281_v9 = vpop.permute.xlu1 %3715 }
 0x44d   :  { %9793 = vst [vmem:[#allocation299_spill] sm:$0xff] %v7281_v9  ;;  %v7285_v22 = vpop.permute.xlu2 %3493  ;;  %3885 = vrot.lane.b32.xlu0 %v2174_v13, %s5284_s16  ;;  %v977_v13 = vrot.slane %v972_v61, 4  ;;  %v2213_v52 = vrot.slane %v7298_v38, 4 }
 0x44e   :  { %9795 = vst [vmem:[#allocation26_spill] sm:$0xff] %v7285_v22 }
 0x44f   :  { %v7288_v60 = vpop.permute.xlu0 %3717 }
 0x450   :  { %9796 = vst [vmem:[#allocation300_spill] sm:$0xff] %v7288_v60  ;;  %v997_v60 = vrot.slane %v982_v8, 4 }
 0x452   :  { %3893 = vrot.lane.b32.xlu1 %v2182_v58, %s9453_s17  ;;  %v978_v58 = vsel %vm169_vm0, 0.0, %v977_v13  ;;  %v2061_v13 = vrot.slane %v6913_v18, 4 }
 0x453   :  { %3637 = vrot.lane.b32.xlu2 %v6884_v48, %s5284_s16  ;;  %v998_v48 = vsel %vm169_vm0, 0.0, %v997_v60  ;;  %v2183_v60 = vrot.slane %v9797_v50, 4 }
 0x454   :  { %v7300_v22 = vpop.permute.xlu1 %3725  ;;  %v2062_v41 = vsel %vm169_vm0, 0.0, %v2061_v13 }
 0x455   :  { %9798 = vst [vmem:[#allocation21_spill] sm:$0xff] %v7300_v22  ;;  %v7302_v9 = vpop.permute.xlu2 %3507  ;;  %3899 = vrot.lane.b32.xlu0 %v982_v8, %s5286_s18  ;;  %v2214_v22 = vsel %vm169_vm0, 0.0, %v2213_v52  ;;  %v7317_v8 = vperm.slane %v978_v58, %v5329_v11  ;;  %v968_v58 = vsel %vm169_vm0, 0.0, %v967_v26  ;;  %v847_v26 = vrot.slane %v6933_v7, 4 }
 0x456   :  { %9799 = vst [vmem:[#allocation301_spill] sm:$0xff] %v7302_v9  ;;  %v976_v18 = vperm.slane %v968_v58, %v5327_v10 }
 0x457   :  { %v7305_v33 = vpop.permute.xlu0 %3731  ;;  %v999_v52 = vrot.slane %v7317_v8, 4 }
 0x458   :  { %9800 = vst [vmem:[#allocation302_spill] sm:$0xff] %v7305_v33  ;;  %v2194_v33 = vsel %vm169_vm0, 0.0, %v2193_v0  ;;  %v2184_v0 = vsel %vm169_vm0, 0.0, %v2183_v60  ;;  %v7350_v13 = vperm.slane %v976_v18, %v5329_v11  ;;  %v987_v58 = vrot.slane %v976_v18, 4 }
 0x459   :  { %v2192_v50 = vperm.slane %v2184_v0, %v5327_v10 }
 0x45a   :  { %3907 = vrot.lane.b32.xlu1 %v998_v48, %s5287_s19  ;;  %v7329_v48 = vperm.slane %v2194_v33, %v5329_v11  ;;  %v1000_v33 = vsel %vm169_vm0, 0.0, %v999_v52  ;;  %v848_v52 = vsel %vm169_vm0, 0.0, %v847_v26 }
 0x45b   :  { %3651 = vrot.lane.b32.xlu2 %v6901_v44, %s5286_s18 }
 0x45c   :  { %v7313_v61 = vpop.permute.xlu1 %3739 }
 0x45d   :  { %9801 = vst [vmem:[#allocation303_spill] sm:$0xff] %v7313_v61  ;;  %v7321_v9 = vpop.permute.xlu2 %3517  ;;  %3909 = vrot.lane.b32.xlu0 %v2214_v22, %s5287_s19 }
 0x45e   :  { %9802 = vst [vmem:[#allocation304_spill] sm:$0xff] %v7321_v9 }
 0x45f   :  { %v7326_v44 = vpop.permute.xlu0 %3741 }
 0x460   :  { %9803 = vst [vmem:[#allocation305_spill] sm:$0xff] %v7326_v44  ;;  %v988_v44 = vsel %vm169_vm0, 0.0, %v987_v58 }
 0x462   :  { %3917 = vrot.lane.b32.xlu1 %v7329_v48, %s9447_s20  ;;  %s9807_s20 = smov 48  }
 0x463   :  { %3661 = vrot.lane.b32.xlu2 %v2062_v41, %s5287_s19  ;;  %v2208_v41 = vperm.slane %v2192_v50, %v5329_v11 }
 0x464   :  { %v7339_v22 = vpop.permute.xlu1 %3749 }
 0x465   :  { %9804 = vst [vmem:[#allocation306_spill] sm:$0xff] %v7339_v22  ;;  %v7343_v9 = vpop.permute.xlu2 %3531  ;;  %3923 = vrot.lane.b32.xlu0 %v1000_v33, %s5289_s21  ;;  %v2203_v33 = vrot.slane %v2192_v50, 4  ;;  %v2217_v7 = vrot.slane %v2208_v41, 4 }
 0x466   :  { %9805 = vst [vmem:[#allocation307_spill] sm:$0xff] %v7343_v9  ;;  %v996_v9 = vperm.slane %v988_v44, %v5329_v11  ;;  %v9814_v44 = vld [vmem:[#allocation29_spill] sm:$0xff] }
 0x467   :  { %v7347_v60 = vpop.permute.xlu0 %3755  ;;  %v2218_v18 = vsel %vm169_vm0, 0.0, %v2217_v7  ;;  %v2204_v26 = vsel %vm169_vm0, 0.0, %v2203_v33  ;;  %v1010_v33 = vperm.slane %v9814_v44, %v5327_v10 }
 0x468   :  { %9806 = vst [vmem:[#allocation308_spill] sm:$0xff] %v7347_v60  ;;  %v1003_v58 = vrot.slane %v996_v9, 4 }
 0x46a   :  { %3931 = vrot.lane.b32.xlu1 %v7350_v13, %s9807_s20 }
 0x46b   :  { %3675 = vrot.lane.b32.xlu2 %v848_v52, %s5289_s21  ;;  %v7374_v52 = vperm.slane %v2204_v26, %v5329_v11 }
 0x46c   :  { %v7357_v0 = vpop.permute.xlu1 %3763 }
 0x46d   :  { %9808 = vst [vmem:[#allocation309_spill] sm:$0xff] %v7357_v0  ;;  %v7359_v22 = vpop.permute.xlu2 %3541  ;;  %3933 = vrot.lane.b32.xlu0 %v2208_v41, %s9807_s20  ;;  %v1015_v0 = vrot.slane %v1010_v33, 4 }
 0x46e   :  { %9809 = vst [vmem:[#allocation310_spill] sm:$0xff] %v7359_v22  ;;  %v1004_v22 = vsel %vm169_vm0, 0.0, %v1003_v58  ;;  %v2067_v58 = vrot.slane %v6987_v19, 4 }
 0x46f   :  { %v7363_v60 = vpop.permute.xlu0 %3765 }
 0x470   :  { %9810 = vst [vmem:[#allocation311_spill] sm:$0xff] %v7363_v60 }
 0x472   :  { %3941 = vrot.lane.b32.xlu1 %v2218_v18, %s5292_s24  ;;  %v2219_v18 = vrot.slane %v7374_v52, 4 }
 0x473   :  { %3685 = vrot.lane.b32.xlu2 %v6960_v57, %s9807_s20  ;;  %v9815_v57 = vld [vmem:[#allocation24_spill] sm:$0xff] }
 0x474   :  { %v7371_v50 = vpop.permute.xlu1 %3773  ;;  %v2226_v26 = vperm.slane %v9815_v57, %v5327_v10  ;;  %v2220_v60 = vsel %vm169_vm0, 0.0, %v2219_v18  ;;  %v2068_v18 = vsel %vm169_vm0, 0.0, %v2067_v58 }
 0x475   :  { %9811 = vst [vmem:[#allocation312_spill] sm:$0xff] %v7371_v50  ;;  %v7376_v41 = vpop.permute.xlu2 %3555  ;;  %3947 = vrot.lane.b32.xlu0 %v996_v9, %s5295_s27  ;;  %v7391_v50 = vperm.slane %v1010_v33, %v5329_v11 }
 0x476   :  { %9812 = vst [vmem:[#allocation313_spill] sm:$0xff] %v7376_v41  ;;  %v2231_v61 = vrot.slane %v2226_v26, 4 }
 0x477   :  { %v7379_v7 = vpop.permute.xlu0 %3779  ;;  %v1035_v41 = vrot.slane %v7391_v50, 4 }
 0x478   :  { %9813 = vst [vmem:[#allocation314_spill] sm:$0xff] %v7379_v7  ;;  %v2232_v33 = vsel %vm169_vm0, 0.0, %v2231_v61 }
 0x479   :  { %v1036_v19 = vsel %vm169_vm0, 0.0, %v1035_v41  ;;  %v2240_v41 = vperm.slane %v2232_v33, %v5329_v11 }
 0x47a   :  { %3955 = vrot.lane.b32.xlu1 %v1004_v22, %s9748_s22 }
 0x47b   :  { %3699 = vrot.lane.b32.xlu2 %v6977_v31, %s5295_s27  ;;  %v7403_v31 = vperm.slane %v2226_v26, %v5329_v11  ;;  %v1005_v26 = vrot.slane %v9814_v44, 4 }
 0x47c   :  { %v7393_v9 = vpop.permute.xlu1 %3787 }
 0x47d   :  { %9816 = vst [vmem:[#allocation29_spill] sm:$0xff] %v7393_v9  ;;  %v7396_v7 = vpop.permute.xlu2 %3565  ;;  %3957 = vrot.lane.b32.xlu0 %v2220_v60, %s9748_s22  ;;  %v1016_v60 = vsel %vm169_vm0, 0.0, %v1015_v0  ;;  %v883_v9 = vrot.slane %v7008_v20, 4  ;;  %v1006_v0 = vsel %vm169_vm0, 0.0, %v1005_v26 }
 0x47e   :  { %9817 = vst [vmem:[#allocation24_spill] sm:$0xff] %v7396_v7  ;;  %v7423_v58 = vperm.slane %v1016_v60, %v5329_v11 }
 0x47f   :  { %v7400_v22 = vpop.permute.xlu0 %3789  ;;  %v884_v61 = vsel %vm169_vm0, 0.0, %v883_v9 }
 0x480   :  { %9818 = vst [vmem:[#allocation315_spill] sm:$0xff] %v7400_v22 }
 0x482   :  { %3965 = vrot.lane.b32.xlu1 %v7403_v31, %s5302_s5 }
 0x483   :  { %3709 = vrot.lane.b32.xlu2 %v2068_v18, %s9748_s22  ;;  %v2221_v18 = vrot.slane %v9815_v57, 4  ;;  %v2253_v57 = vrot.slane %v2240_v41, 4 }
 0x484   :  { %v7410_v7 = vpop.permute.xlu1 %3797 }
 0x485   :  { %9819 = vst [vmem:[#allocation316_spill] sm:$0xff] %v7410_v7  ;;  %v7414_v22 = vpop.permute.xlu2 %3579  ;;  %3971 = vrot.lane.b32.xlu0 %v1036_v19, %s9685_s2  ;;  %v2222_v20 = vsel %vm169_vm0, 0.0, %v2221_v18  ;;  %v1014_v19 = vperm.slane %v1006_v0, %v5327_v10  ;;  %v2254_v7 = vsel %vm169_vm0, 0.0, %v2253_v57 }
 0x486   :  { %9820 = vst [vmem:[#allocation317_spill] sm:$0xff] %v7414_v22  ;;  %v2230_v26 = vperm.slane %v2222_v20, %v5327_v10 }
 0x487   :  { %v7420_v53 = vpop.permute.xlu0 %3803  ;;  %v1030_v9 = vperm.slane %v1014_v19, %v5329_v11 }
 0x488   :  { %9821 = vst [vmem:[#allocation318_spill] sm:$0xff] %v7420_v53  ;;  %v7450_v0 = vperm.slane %v2230_v26, %v5329_v11 }
 0x489   :  { %v1039_v20 = vrot.slane %v1030_v9, 4 }
 0x48a   :  { %3979 = vrot.lane.b32.xlu1 %v7423_v58, %s5304_s7  ;;  %v2255_v57 = vrot.slane %v7450_v0, 4 }
 0x48b   :  { %3723 = vrot.lane.b32.xlu2 %v884_v61, %s9685_s2  ;;  %v1025_v61 = vrot.slane %v1014_v19, 4 }
 0x48c   :  { %v7432_v44 = vpop.permute.xlu1 %3811 }
 0x48d   :  { %9822 = vst [vmem:[#allocation319_spill] sm:$0xff] %v7432_v44  ;;  %v7436_v60 = vpop.permute.xlu2 %3589  ;;  %3981 = vrot.lane.b32.xlu0 %v2240_v41, %s5304_s7  ;;  %v889_v44 = vrot.slane %v7082_v45, 4 }
 0x48e   :  { %9823 = vst [vmem:[#allocation320_spill] sm:$0xff] %v7436_v60 }
 0x48f   :  { %v7439_v33 = vpop.permute.xlu0 %3813 }
 0x490   :  { %9824 = vst [vmem:[#allocation321_spill] sm:$0xff] %v7439_v33  ;;  %v2241_v33 = vrot.slane %v2230_v26, 4 }
 0x492   :  { %3989 = vrot.lane.b32.xlu1 %v2254_v7, %s5305_s8  ;;  %v1040_v7 = vsel %vm169_vm0, 0.0, %v1039_v20  ;;  %v2242_v26 = vsel %vm169_vm0, 0.0, %v2241_v33 }
 0x493   :  { %3733 = vrot.lane.b32.xlu2 %v7033_v51, %s5304_s7  ;;  %v1026_v51 = vsel %vm169_vm0, 0.0, %v1025_v61  ;;  %v2103_v61 = vrot.slane %v7063_v2, 4 }
 0x494   :  { %v7447_v18 = vpop.permute.xlu1 %3821 }
 0x495   :  { %9825 = vst [vmem:[#allocation322_spill] sm:$0xff] %v7447_v18  ;;  %v7452_v41 = vpop.permute.xlu2 %3603  ;;  %3995 = vrot.lane.b32.xlu0 %v1030_v9, %s9627_s6  ;;  %v2256_v18 = vsel %vm169_vm0, 0.0, %v2255_v57  ;;  %v7467_v9 = vperm.slane %v1026_v51, %v5329_v11  ;;  %v2104_v57 = vsel %vm169_vm0, 0.0, %v2103_v61 }
 0x496   :  { %9826 = vst [vmem:[#allocation323_spill] sm:$0xff] %v7452_v41 }
 0x497   :  { %v7455_v60 = vpop.permute.xlu0 %3827 }
 0x498   :  { %9827 = vst [vmem:[#allocation324_spill] sm:$0xff] %v7455_v60 }
 0x49a   :  { %4003 = vrot.lane.b32.xlu1 %v1040_v7, %s5307_s10  ;;  %v7477_v7 = vperm.slane %v2242_v26, %v5329_v11 }
 0x49b   :  { %3747 = vrot.lane.b32.xlu2 %v7054_v29, %s9627_s6  ;;  %v1041_v29 = vrot.slane %v7467_v9, 4 }
 0x49c   :  { %v7463_v19 = vpop.permute.xlu1 %3835 }
 0x49d   :  { %9828 = vst [vmem:[#allocation325_spill] sm:$0xff] %v7463_v19  ;;  %v7469_v60 = vpop.permute.xlu2 %3613  ;;  %4005 = vrot.lane.b32.xlu0 %v2256_v18, %s5307_s10  ;;  %v9831_v18 = vld [vmem:[#allocation33_spill] sm:$0xff]  ;;  %v1042_v2 = vsel %vm169_vm0, 0.0, %v1041_v29  ;;  %v890_v29 = vsel %vm169_vm0, 0.0, %v889_v44 }
 0x49e   :  { %9829 = vst [vmem:[#allocation326_spill] sm:$0xff] %v7469_v60  ;;  %v1048_v51 = vperm.slane %v9831_v18, %v5327_v10  ;;  %v1043_v25 = vrot.slane %v9831_v18, 4 }
 0x49f   :  { %v7474_v20 = vpop.permute.xlu0 %3837 }
 0x4a0   :  { %9830 = vst [vmem:[#allocation327_spill] sm:$0xff] %v7474_v20  ;;  %v9832_v20 = vld [vmem:[#allocation27_spill] sm:$0xff]  ;;  %v7498_v61 = vperm.slane %v1048_v51, %v5329_v11  ;;  %v1053_v22 = vrot.slane %v1048_v51, 4 }
 0x4a1   :  { %v2264_v26 = vperm.slane %v9832_v20, %v5327_v10 }
 0x4a2   :  { %4013 = vrot.lane.b32.xlu1 %v7477_v7, %s5308_s11  ;;  %v1054_v6 = vsel %vm169_vm0, 0.0, %v1053_v22  ;;  %v2259_v22 = vrot.slane %v9832_v20, 4 }
 0x4a3   :  { %3757 = vrot.lane.b32.xlu2 %v2104_v57, %s5307_s10  ;;  %v2274_v57 = vperm.slane %v2264_v26, %v5329_v11 }
 0x4a4   :  { %v7486_v33 = vpop.permute.xlu1 %3845 }
 0x4a5   :  { %v7491_v19 = vpop.permute.xlu2 %3627  ;;  %4019 = vrot.lane.b32.xlu0 %v1042_v2, %s5309_s9  ;;  %v2269_v2 = vrot.slane %v2264_v26, 4  ;;  %v2289_v45 = vrot.slane %v2274_v57, 4 }
 0x4a6   :  { %9833 = vst [vmem:[#allocation33_spill] sm:$0xff] %v7491_v19 }
 0x4a7   :  { %v7495_v53 = vpop.permute.xlu0 %3851  ;;  %v2270_v51 = vsel %vm169_vm0, 0.0, %v2269_v2  ;;  %v2290_v44 = vsel %vm169_vm0, 0.0, %v2289_v45  ;;  %v1044_v2 = vsel %vm169_vm0, 0.0, %v1043_v25 }
 0x4a8   :  { %v1052_v45 = vperm.slane %v1044_v2, %v5327_v10 }
 0x4aa   :  { %4027 = vrot.lane.b32.xlu1 %v7498_v61, %s5291_s23 }
 0x4ab   :  { %3771 = vrot.lane.b32.xlu2 %v890_v29, %s5309_s9  ;;  %v1062_v29 = vperm.slane %v1054_v6, %v5329_v11 }
 0x4ac   :  { %v7505_v60 = vpop.permute.xlu1 %3859 }
 0x4ad   :  { %v7507_v19 = vpop.permute.xlu2 %3637  ;;  %4029 = vrot.lane.b32.xlu0 %v2274_v57, %s5291_s23  ;;  %v7523_v57 = vperm.slane %v2270_v51, %v5329_v11  ;;  %v1075_v18 = vrot.slane %v1062_v29, 4 }
 0x4ae   :  { %9834 = vst [vmem:[#allocation27_spill] sm:$0xff] %v7507_v19 }
 0x4af   :  { %v7511_v15 = vpop.permute.xlu0 %3861  ;;  %v1076_v51 = vsel %vm169_vm0, 0.0, %v1075_v18 }
 0x4b2   :  { %4037 = vrot.lane.b32.xlu1 %v2290_v44, %s5293_s25  ;;  %v2260_v44 = vsel %vm169_vm0, 0.0, %v2259_v22  ;;  %v2139_v22 = vrot.slane %v7137_v32, 4 }
 0x4b3   :  { %3781 = vrot.lane.b32.xlu2 %v7106_v62, %s5291_s23  ;;  %v2291_v62 = vrot.slane %v7523_v57, 4  ;;  %v2268_v25 = vperm.slane %v2260_v44, %v5327_v10  ;;  %v1063_v44 = vrot.slane %v1052_v45, 4 }
 0x4b4   :  { %v7520_v26 = vpop.permute.xlu1 %3869 }
 0x4b5   :  { %v7527_v19 = vpop.permute.xlu2 %3651  ;;  %4043 = vrot.lane.b32.xlu0 %v1062_v29, %s5294_s26  ;;  %v2292_v29 = vsel %vm169_vm0, 0.0, %v2291_v62  ;;  %v2279_v41 = vrot.slane %v2268_v25, 4  ;;  %v2140_v62 = vsel %vm169_vm0, 0.0, %v2139_v22  ;;  %v1064_v55 = vsel %vm169_vm0, 0.0, %v1063_v44  ;;  %v9838_v22 = vld [vmem:[#allocation38_spill] sm:$0xff] }
 0x4b6   :  { %9835 = vst [vmem:[#allocation328_spill] sm:$0xff] %v7527_v19  ;;  %v7544_v19 = vperm.slane %v1052_v45, %v5329_v11  ;;  %v925_v45 = vrot.slane %v7158_v49, 4  ;;  %v1086_v28 = vperm.slane %v9838_v22, %v5327_v10  ;;  %v1081_v21 = vrot.slane %v9838_v22, 4 }
 0x4b7   :  { %v7530_v6 = vpop.permute.xlu0 %3875 }
 0x4b8   :  { %v7582_v49 = vperm.slane %v1086_v28, %v5329_v11  ;;  %v1091_v54 = vrot.slane %v1086_v28, 4 }
 0x4ba   :  { %4051 = vrot.lane.b32.xlu1 %v1076_v51, %s5296_s28  ;;  %v7553_v51 = vperm.slane %v2268_v25, %v5329_v11  ;;  %v2280_v25 = vsel %vm169_vm0, 0.0, %v2279_v41  ;;  %v1092_v28 = vsel %vm169_vm0, 0.0, %v1091_v54 }
 0x4bb   :  { %3795 = vrot.lane.b32.xlu2 %v7125_v43, %s5294_s26  ;;  %v1077_v43 = vrot.slane %v7544_v19, 4 }
 0x4bc   :  { %v7540_v20 = vpop.permute.xlu1 %3883 }
 0x4bd   :  { %v7546_v2 = vpop.permute.xlu2 %3661  ;;  %4053 = vrot.lane.b32.xlu0 %v2292_v29, %s5296_s28  ;;  %v1078_v32 = vsel %vm169_vm0, 0.0, %v1077_v43  ;;  %v2288_v43 = vperm.slane %v2280_v25, %v5329_v11 }
 0x4be   :  { %9836 = vst [vmem:[#allocation329_spill] sm:$0xff] %v7546_v2 }
 0x4bf   :  { %v7550_v18 = vpop.permute.xlu0 %3885 }
 0x4c2   :  { %4061 = vrot.lane.b32.xlu1 %v7553_v51, %s5297_s29 }
 0x4c3   :  { %3805 = vrot.lane.b32.xlu2 %v2140_v62, %s5296_s28  ;;  %v7574_v62 = vperm.slane %v1064_v55, %v5329_v11  ;;  %v2295_v55 = vrot.slane %v2288_v43, 4 }
 0x4c4   :  { %v7560_v2 = vpop.permute.xlu1 %3893 }
 0x4c5   :  { %v7563_v29 = vpop.permute.xlu2 %3675  ;;  %4067 = vrot.lane.b32.xlu0 %v1078_v32, %s5298_s30  ;;  %v926_v32 = vsel %vm169_vm0, 0.0, %v925_v45  ;;  %v1111_v45 = vrot.slane %v7582_v49, 4 }
 0x4c6   :  { %9837 = vst [vmem:[#allocation330_spill] sm:$0xff] %v7563_v29  ;;  %v9840_v29 = vld [vmem:[#allocation30_spill] sm:$0xff] }
 0x4c7   :  { %v7569_v56 = vpop.permute.xlu0 %3899  ;;  %v7591_v25 = vperm.slane %v9840_v29, %v5327_v10  ;;  %v1112_v35 = vsel %vm169_vm0, 0.0, %v1111_v45  ;;  %v2297_v16 = vrot.slane %v9840_v29, 4 }
 0x4c9   :  { %v2298_v22 = vsel %vm169_vm0, 0.0, %v2297_v16 }
 0x4ca   :  { %4075 = vrot.lane.b32.xlu1 %v7574_v62, %s5300_s3 }
 0x4cb   :  { %3819 = vrot.lane.b32.xlu2 %v926_v32, %s5298_s30  ;;  %v2296_v32 = vsel %vm169_vm0, 0.0, %v2295_v55  ;;  %v959_v55 = vrot.slane %v7599_v47, 4 }
 0x4cc   :  { %v7584_v41 = vpop.permute.xlu1 %3907 }
 0x4cd   :  { %v7586_v44 = vpop.permute.xlu2 %3685  ;;  %4077 = vrot.lane.b32.xlu0 %v2288_v43, %s5300_s3 }
 0x4ce   :  { %9839 = vst [vmem:[#allocation38_spill] sm:$0xff] %v7586_v44  ;;  %v2307_v44 = vrot.slane %v7591_v25, 4 }
 0x4cf   :  { %v7593_v5 = vpop.permute.xlu0 %3909 }
 0x4d0   :  { %v2308_v4 = vsel %vm169_vm0, 0.0, %v2307_v44 }
 0x4d1   :  { %v2316_v45 = vperm.slane %v2308_v4, %v5329_v11 }
 0x4d2   :  { %4085 = vrot.lane.b32.xlu1 %v2296_v32, %s5301_s4 }
 0x4d3   :  { %3829 = vrot.lane.b32.xlu2 %v7182_v46, %s5300_s3  ;;  %v7618_v46 = vperm.slane %v1092_v28, %v5329_v11  ;;  %v2329_v4 = vrot.slane %v2316_v45, 4 }
 0x4d4   :  { %v7605_v43 = vpop.permute.xlu1 %3917 }
 0x4d5   :  { %v7608_v39 = vpop.permute.xlu2 %3699  ;;  %4091 = vrot.lane.b32.xlu0 %v1112_v35, %s5280_s0  ;;  %v960_v35 = vsel %vm169_vm0, 0.0, %v959_v55  ;;  %v2330_v3 = vsel %vm169_vm0, 0.0, %v2329_v4 }
 0x4d6   :  { %9841 = vst [vmem:[#allocation30_spill] sm:$0xff] %v7608_v39  ;;  %v1082_v39 = vsel %vm169_vm0, 0.0, %v1081_v21  ;;  %v2306_v21 = vperm.slane %v2298_v22, %v5327_v10 }
 0x4d7   :  { %v7615_v32 = vpop.permute.xlu0 %3923  ;;  %v1090_v44 = vperm.slane %v1082_v39, %v5327_v10 }
 0x4d8   :  { %v7645_v39 = vperm.slane %v2306_v21, %v5329_v11  ;;  %v2317_v59 = vrot.slane %v2306_v21, 4 }
 0x4d9   :  { %v1106_v55 = vperm.slane %v1090_v44, %v5329_v11 }
 0x4da   :  { %4099 = vrot.lane.b32.xlu1 %v7618_v46, %s5277_s12  ;;  %v2331_v4 = vrot.slane %v7645_v39, 4  ;;  %v2318_v21 = vsel %vm169_vm0, 0.0, %v2317_v59 }
 0x4db   :  { %3843 = vrot.lane.b32.xlu2 %v960_v35, %s5280_s0  ;;  %v1101_v35 = vrot.slane %v1090_v44, 4  ;;  %v1115_v22 = vrot.slane %v1106_v55, 4 }
 0x4dc   :  { %v7627_v54 = vpop.permute.xlu1 %3931 }
 0x4dd   :  { %v7631_v28 = vpop.permute.xlu2 %3709  ;;  %4101 = vrot.lane.b32.xlu0 %v2316_v45, %s5277_s12 }
 0x4de   :  { %9842 = vst [vmem:[#allocation331_spill] sm:$0xff] %v7631_v28 }
 0x4df   :  { %v7634_v29 = vpop.permute.xlu0 %3933 }
 0x4e2   :  { %4109 = vrot.lane.b32.xlu1 %v2330_v3, %s5282_s14  ;;  %v1116_v3 = vsel %vm169_vm0, 0.0, %v1115_v22 }
 0x4e3   :  { %3853 = vrot.lane.b32.xlu2 %v7225_v30, %s5277_s12  ;;  %v1102_v30 = vsel %vm169_vm0, 0.0, %v1101_v35  ;;  %v2179_v35 = vrot.slane %v7255_v1, 4 }
 0x4e4   :  { %v7642_v16 = vpop.permute.xlu1 %3941 }
 0x4e5   :  { %v7647_v45 = vpop.permute.xlu2 %3723  ;;  %4115 = vrot.lane.b32.xlu0 %v1106_v55, %s5281_s13  ;;  %v7662_v55 = vperm.slane %v1102_v30, %v5329_v11 }
 0x4e6   :  { %9843 = vst [vmem:[#allocation332_spill] sm:$0xff] %v7647_v45  ;;  %v2332_v45 = vsel %vm169_vm0, 0.0, %v2331_v4  ;;  %v2180_v4 = vsel %vm169_vm0, 0.0, %v2179_v35 }
 0x4e7   :  { %v7650_v28 = vpop.permute.xlu0 %3947 }
 0x4ea   :  { %4123 = vrot.lane.b32.xlu1 %v1116_v3, %s5283_s15  ;;  %v7672_v3 = vperm.slane %v2318_v21, %v5329_v11 }
 0x4eb   :  { %3867 = vrot.lane.b32.xlu2 %v7246_v24, %s5281_s13  ;;  %v1117_v24 = vrot.slane %v7662_v55, 4 }
 0x4ec   :  { %v7658_v44 = vpop.permute.xlu1 %3955 }
 0x4ed   :  { %v7664_v23 = vpop.permute.xlu2 %3733  ;;  %4125 = vrot.lane.b32.xlu0 %v2332_v45, %s5283_s15  ;;  %v9845_v45 = vld [vmem:[#allocation41_spill] sm:$0xff]  ;;  %v1118_v1 = vsel %vm169_vm0, 0.0, %v1117_v24  ;;  %v966_v24 = vsel %vm169_vm0, 0.0, %v965_v14 }
 0x4ee   :  { %9844 = vst [vmem:[#allocation333_spill] sm:$0xff] %v7664_v23  ;;  %v1124_v30 = vperm.slane %v9845_v45, %v5327_v10  ;;  %v9846_v23 = vld [vmem:[#allocation34_spill] sm:$0xff]  ;;  %v1119_v12 = vrot.slane %v9845_v45, 4 }
 0x4ef   :  { %v7669_v22 = vpop.permute.xlu0 %3957  ;;  %v2340_v21 = vperm.slane %v9846_v23, %v5327_v10 }
 0x4f0   :  { %v7693_v35 = vperm.slane %v1124_v30, %v5329_v11  ;;  %v1129_v40 = vrot.slane %v1124_v30, 4 }
 0x4f2   :  { %4133 = vrot.lane.b32.xlu1 %v7672_v3, %s5284_s16  ;;  %v1130_v63 = vsel %vm169_vm0, 0.0, %v1129_v40  ;;  %v2335_v40 = vrot.slane %v9846_v23, 4 }
 0x4f3   :  { %3877 = vrot.lane.b32.xlu2 %v2180_v4, %s5283_s15  ;;  %v2350_v4 = vperm.slane %v2340_v21, %v5329_v11 }
 0x4f4   :  { %v7681_v59 = vpop.permute.xlu1 %3965 }
 0x4f5   :  { %v7686_v37 = vpop.permute.xlu2 %3747  ;;  %4139 = vrot.lane.b32.xlu0 %v1118_v1, %s9453_s17  ;;  %v2345_v1 = vrot.slane %v2340_v21, 4  ;;  %v2365_v42 = vrot.slane %v2350_v4, 4 }
 0x4f6   :  { %9847 = vst [vmem:[#allocation41_spill] sm:$0xff] %v7686_v37 }
 0x4f7   :  { %v7690_v34 = vpop.permute.xlu0 %3971  ;;  %v2346_v30 = vsel %vm169_vm0, 0.0, %v2345_v1  ;;  %v2366_v14 = vsel %vm169_vm0, 0.0, %v2365_v42  ;;  %v1120_v1 = vsel %vm169_vm0, 0.0, %v1119_v12 }
 0x4f8   :  { %v1128_v42 = vperm.slane %v1120_v1, %v5327_v10 }
 0x4fa   :  { %4147 = vrot.lane.b32.xlu1 %v7693_v35, %s5286_s18 }
 0x4fb   :  { %3891 = vrot.lane.b32.xlu2 %v966_v24, %s9453_s17  ;;  %v1138_v24 = vperm.slane %v1130_v63, %v5329_v11  ;;  %s9851_s17 = smov 40  }
 0x4fc   :  { %v7700_v37 = vpop.permute.xlu1 %3979 }
 0x4fd   :  { %v7702_v27 = vpop.permute.xlu2 %3757  ;;  %4149 = vrot.lane.b32.xlu0 %v2350_v4, %s5286_s18  ;;  %v7718_v4 = vperm.slane %v2346_v30, %v5329_v11  ;;  %v1151_v45 = vrot.slane %v1138_v24, 4 }
 0x4fe   :  { %9848 = vst [vmem:[#allocation34_spill] sm:$0xff] %v7702_v27 }
 0x4ff   :  { %v7706_v17 = vpop.permute.xlu0 %3981  ;;  %9849 = vst [vmem:[#allocation334_spill] sm:$0xff] %v7718_v4  ;;  %v1152_v30 = vsel %vm169_vm0, 0.0, %v1151_v45 }
 0x502   :  { %4157 = vrot.lane.b32.xlu1 %v2366_v14, %s5287_s19  ;;  %v2336_v14 = vsel %vm169_vm0, 0.0, %v2335_v40  ;;  %v2215_v40 = vrot.slane %v7329_v48, 4 }
 0x503   :  { %3901 = vrot.lane.b32.xlu2 %v7298_v38, %s5286_s18  ;;  %v2367_v38 = vrot.slane %v7718_v4, 4  ;;  %v2344_v12 = vperm.slane %v2336_v14, %v5327_v10  ;;  %v1139_v14 = vrot.slane %v1128_v42, 4 }
 0x504   :  { %v7715_v21 = vpop.permute.xlu1 %3989 }
 0x505   :  { %v7722_v27 = vpop.permute.xlu2 %3771  ;;  %4163 = vrot.lane.b32.xlu0 %v1138_v24, %s9851_s17  ;;  %v2368_v24 = vsel %vm169_vm0, 0.0, %v2367_v38  ;;  %v2355_v4 = vrot.slane %v2344_v12, 4  ;;  %v2216_v38 = vsel %vm169_vm0, 0.0, %v2215_v40 }
 0x506   :  { %9850 = vst [vmem:[#allocation335_spill] sm:$0xff] %v7722_v27  ;;  %v7739_v27 = vperm.slane %v1128_v42, %v5329_v11  ;;  %v1001_v42 = vrot.slane %v7350_v13, 4  ;;  %v9861_v13 = vld [vmem:[#allocation44_spill] sm:$0xff] }
 0x507   :  { %v7725_v63 = vpop.permute.xlu0 %3995 }
 0x508   :  { %9853 = vst [vmem:[#allocation337_spill] sm:$0xff] %v7739_v27 }
 0x50a   :  { %4171 = vrot.lane.b32.xlu1 %v1152_v30, %s5289_s21  ;;  %v7748_v30 = vperm.slane %v2344_v12, %v5329_v11  ;;  %v2356_v12 = vsel %vm169_vm0, 0.0, %v2355_v4 }
 0x50b   :  { %3915 = vrot.lane.b32.xlu2 %v7317_v8, %s9851_s17  ;;  %v1153_v8 = vrot.slane %v7739_v27, 4 }
 0x50c   :  { %v7735_v23 = vpop.permute.xlu1 %4003  ;;  %9855 = vst [vmem:[#allocation339_spill] sm:$0xff] %v7748_v30 }
 0x50d   :  { %9852 = vst [vmem:[#allocation336_spill] sm:$0xff] %v7735_v23  ;;  %v7741_v1 = vpop.permute.xlu2 %3781  ;;  %4173 = vrot.lane.b32.xlu0 %v2368_v24, %s5289_s21  ;;  %v1154_v48 = vsel %vm169_vm0, 0.0, %v1153_v8  ;;  %v1140_v23 = vsel %vm169_vm0, 0.0, %v1139_v14  ;;  %v1002_v8 = vsel %vm169_vm0, 0.0, %v1001_v42  ;;  %v1162_v14 = vperm.slane %v9861_v13, %v5327_v10 }
 0x50e   :  { %9854 = vst [vmem:[#allocation338_spill] sm:$0xff] %v7741_v1  ;;  %v7767_v40 = vperm.slane %v1140_v23, %v5329_v11 }
 0x50f   :  { %v7745_v45 = vpop.permute.xlu0 %4005 }
 0x510   :  { %9859 = vst [vmem:[#allocation343_spill] sm:$0xff] %v7767_v40 }
 0x512   :  { %4181 = vrot.lane.b32.xlu1 %v7748_v30, %s9807_s20 }
 0x513   :  { %3925 = vrot.lane.b32.xlu2 %v2216_v38, %s5289_s21  ;;  %v2364_v38 = vperm.slane %v2356_v12, %v5329_v11  ;;  %v9864_v12 = vld [vmem:[#allocation39_spill] sm:$0xff] }
 0x514   :  { %v7755_v1 = vpop.permute.xlu1 %4013  ;;  %v2378_v30 = vperm.slane %v9864_v12, %v5327_v10 }
 0x515   :  { %9856 = vst [vmem:[#allocation340_spill] sm:$0xff] %v7755_v1  ;;  %v7758_v24 = vpop.permute.xlu2 %3795  ;;  %4187 = vrot.lane.b32.xlu0 %v1154_v48, %s5292_s24  ;;  %v2371_v23 = vrot.slane %v2364_v38, 4 }
 0x516   :  { %9857 = vst [vmem:[#allocation341_spill] sm:$0xff] %v7758_v24  ;;  %v2383_v1 = vrot.slane %v2378_v30, 4 }
 0x517   :  { %v7764_v27 = vpop.permute.xlu0 %4019  ;;  %v2372_v42 = vsel %vm169_vm0, 0.0, %v2371_v23 }
 0x518   :  { %9858 = vst [vmem:[#allocation342_spill] sm:$0xff] %v7764_v27 }
 0x51a   :  { %4195 = vrot.lane.b32.xlu1 %v7767_v40, %s5295_s27  ;;  %v1172_v40 = vperm.slane %v1162_v14, %v5329_v11 }
 0x51b   :  { %3939 = vrot.lane.b32.xlu2 %v1002_v8, %s5292_s24  ;;  %v7791_v8 = vperm.slane %v2378_v30, %v5329_v11  ;;  %v1157_v30 = vrot.slane %v9861_v13, 4 }
 0x51c   :  { %v7774_v48 = vpop.permute.xlu1 %4027 }
 0x51d   :  { %9860 = vst [vmem:[#allocation344_spill] sm:$0xff] %v7774_v48  ;;  %v7778_v4 = vpop.permute.xlu2 %3805  ;;  %4197 = vrot.lane.b32.xlu0 %v2364_v38, %s5295_s27  ;;  %v1167_v38 = vrot.slane %v1162_v14, 4  ;;  %v2403_v23 = vrot.slane %v7791_v8, 4 }
 0x51e   :  { %9862 = vst [vmem:[#allocation44_spill] sm:$0xff] %v7778_v4 }
 0x51f   :  { %v7781_v24 = vpop.permute.xlu0 %4029  ;;  %9865 = vst [vmem:[#allocation39_spill] sm:$0xff] %v7791_v8 }
 0x520   :  { %9863 = vst [vmem:[#allocation345_spill] sm:$0xff] %v7781_v24  ;;  %v1187_v24 = vrot.slane %v1172_v40, 4 }
 0x522   :  { %4205 = vrot.lane.b32.xlu1 %v2372_v42, %s9748_s22  ;;  %v1168_v42 = vsel %vm169_vm0, 0.0, %v1167_v38  ;;  %v2251_v38 = vrot.slane %v7403_v31, 4 }
 0x523   :  { %3949 = vrot.lane.b32.xlu2 %v7374_v52, %s5295_s27  ;;  %v1188_v52 = vsel %vm169_vm0, 0.0, %v1187_v24  ;;  %v2373_v24 = vrot.slane %v9864_v12, 4 }
 0x524   :  { %v7793_v4 = vpop.permute.xlu1 %4037 }
 0x525   :  { %v7795_v48 = vpop.permute.xlu2 %3819  ;;  %4211 = vrot.lane.b32.xlu0 %v1172_v40, %s5302_s5  ;;  %v7810_v40 = vperm.slane %v1168_v42, %v5329_v11  ;;  %v1158_v42 = vsel %vm169_vm0, 0.0, %v1157_v30  ;;  %v1037_v30 = vrot.slane %v7423_v58, 4 }
 0x526   :  { %9866 = vst [vmem:[#allocation346_spill] sm:$0xff] %v7795_v48  ;;  %v2404_v48 = vsel %vm169_vm0, 0.0, %v2403_v23  ;;  %v1166_v31 = vperm.slane %v1158_v42, %v5327_v10 }
 0x527   :  { %v7798_v27 = vpop.permute.xlu0 %4043  ;;  %9869 = vst [vmem:[#allocation349_spill] sm:$0xff] %v7810_v40  ;;  %v1189_v23 = vrot.slane %v7810_v40, 4 }
 0x528   :  { %9867 = vst [vmem:[#allocation347_spill] sm:$0xff] %v7798_v27  ;;  %v2384_v27 = vsel %vm169_vm0, 0.0, %v2383_v1  ;;  %v2374_v1 = vsel %vm169_vm0, 0.0, %v2373_v24  ;;  %v1177_v42 = vrot.slane %v1166_v31, 4 }
 0x529   :  { %v2382_v12 = vperm.slane %v2374_v1, %v5327_v10 }
 0x52a   :  { %4219 = vrot.lane.b32.xlu1 %v1188_v52, %s9685_s2  ;;  %v7822_v52 = vperm.slane %v2384_v27, %v5329_v11  ;;  %v1190_v27 = vsel %vm169_vm0, 0.0, %v1189_v23  ;;  %v1038_v23 = vsel %vm169_vm0, 0.0, %v1037_v30  ;;  %v1178_v40 = vsel %vm169_vm0, 0.0, %v1177_v42 }
 0x52b   :  { %3963 = vrot.lane.b32.xlu2 %v7391_v50, %s5302_s5 }
 0x52c   :  { %v7806_v14 = vpop.permute.xlu1 %4051  ;;  %9872 = vst [vmem:[#allocation352_spill] sm:$0xff] %v7822_v52 }
 0x52d   :  { %9868 = vst [vmem:[#allocation348_spill] sm:$0xff] %v7806_v14  ;;  %v7814_v8 = vpop.permute.xlu2 %3829  ;;  %4221 = vrot.lane.b32.xlu0 %v2404_v48, %s9685_s2  ;;  %v2252_v48 = vsel %vm169_vm0, 0.0, %v2251_v38  ;;  %v7843_v38 = vperm.slane %v1166_v31, %v5329_v11 }
 0x52e   :  { %9870 = vst [vmem:[#allocation350_spill] sm:$0xff] %v7814_v8 }
 0x52f   :  { %v7819_v50 = vpop.permute.xlu0 %4053  ;;  %9875 = vst [vmem:[#allocation355_spill] sm:$0xff] %v7843_v38 }
 0x530   :  { %9871 = vst [vmem:[#allocation351_spill] sm:$0xff] %v7819_v50 }
 0x532   :  { %4229 = vrot.lane.b32.xlu1 %v7822_v52, %s5304_s7 }
 0x533   :  { %3973 = vrot.lane.b32.xlu2 %v2252_v48, %s9685_s2  ;;  %v2398_v48 = vperm.slane %v2382_v12, %v5329_v11 }
 0x534   :  { %v7832_v13 = vpop.permute.xlu1 %4061 }
 0x535   :  { %9873 = vst [vmem:[#allocation353_spill] sm:$0xff] %v7832_v13  ;;  %v7836_v8 = vpop.permute.xlu2 %3843  ;;  %4235 = vrot.lane.b32.xlu0 %v1190_v27, %s5305_s8  ;;  %v2393_v27 = vrot.slane %v2382_v12, 4  ;;  %v2407_v58 = vrot.slane %v2398_v48, 4 }
 0x537   :  { %v7840_v24 = vpop.permute.xlu0 %4067  ;;  %v2408_v31 = vsel %vm169_vm0, 0.0, %v2407_v58  ;;  %v2394_v30 = vsel %vm169_vm0, 0.0, %v2393_v27 }
 0x538   :  { %9874 = vst [vmem:[#allocation354_spill] sm:$0xff] %v7840_v24 }
 0x53a   :  { %4243 = vrot.lane.b32.xlu1 %v7843_v38, %s9627_s6  ;;  %v1186_v38 = vperm.slane %v1178_v40, %v5329_v11  ;;  %v9880_v40 = vld [vmem:[#allocation48_spill] sm:$0xff] }
 0x53b   :  { %3987 = vrot.lane.b32.xlu2 %v1038_v23, %s5305_s8  ;;  %v7867_v23 = vperm.slane %v2394_v30, %v5329_v11 }
 0x53c   :  { %v7850_v1 = vpop.permute.xlu1 %4075  ;;  %v1193_v42 = vrot.slane %v1186_v38, 4 }
 0x53d   :  { %9876 = vst [vmem:[#allocation356_spill] sm:$0xff] %v7850_v1  ;;  %v7852_v52 = vpop.permute.xlu2 %3853  ;;  %4245 = vrot.lane.b32.xlu0 %v2398_v48, %s9627_s6  ;;  %v2409_v27 = vrot.slane %v7867_v23, 4 }
 0x53e   :  { %9879 = vst [vmem:[#allocation359_spill] sm:$0xff] %v7867_v23 }
 0x53f   :  { %v7856_v24 = vpop.permute.xlu0 %4077  ;;  %v2410_v23 = vsel %vm169_vm0, 0.0, %v2409_v27 }
 0x540   :  { %9877 = vst [vmem:[#allocation357_spill] sm:$0xff] %v7856_v24  ;;  %v1200_v24 = vperm.slane %v9880_v40, %v5327_v10 }
 0x542   :  { %4253 = vrot.lane.b32.xlu1 %v2408_v31, %s5307_s10  ;;  %v1194_v31 = vsel %vm169_vm0, 0.0, %v1193_v42 }
 0x543   :  { %3997 = vrot.lane.b32.xlu2 %v7450_v0, %s9627_s6  ;;  %v9881_v0 = vld [vmem:[#allocation42_spill] sm:$0xff] }
 0x544   :  { %v7864_v12 = vpop.permute.xlu1 %4085  ;;  %v2416_v30 = vperm.slane %v9881_v0, %v5327_v10 }
 0x545   :  { %9878 = vst [vmem:[#allocation358_spill] sm:$0xff] %v7864_v12  ;;  %v7869_v48 = vpop.permute.xlu2 %3867  ;;  %4259 = vrot.lane.b32.xlu0 %v1186_v38, %s5308_s11  ;;  %v7882_v38 = vperm.slane %v1200_v24, %v5329_v11 }
 0x546   :  { %v7897_v50 = vperm.slane %v2416_v30, %v5329_v11 }
 0x547   :  { %v4092_v58 = vpop.permute.xlu0 %4091  ;;  %9882 = vst [vmem:[#allocation48_spill] sm:$0xff] %v7882_v38  ;;  %v1225_v14 = vrot.slane %v7882_v38, 4 }
 0x548   :  { %v4988_v12 = vsel %vm4585_vm1, %v7582_v49, %v4092_v58  ;;  %9885 = vst [vmem:[#allocation361_spill] sm:$0xff] %v7897_v50  ;;  %v1205_v49 = vrot.slane %v1200_v24, 4  ;;  %v2421_v58 = vrot.slane %v2416_v30, 4  ;;  %v1195_v30 = vrot.slane %v9880_v40, 4 }
 0x54a   :  { %4267 = vrot.lane.b32.xlu1 %v1194_v31, %s5309_s9  ;;  %v2422_v24 = vsel %vm169_vm0, 0.0, %v2421_v58 }
 0x54b   :  { %4011 = vrot.lane.b32.xlu2 %v7467_v9, %s5308_s11  ;;  %v2257_v9 = vrot.slane %v7477_v7, 4  ;;  %v1226_v7 = vsel %vm169_vm0, 0.0, %v1225_v14  ;;  %v2430_v14 = vperm.slane %v2422_v24, %v5329_v11 }
 0x54c   :  { %v4100_v1 = vpop.permute.xlu1 %4099 }
 0x54d   :  { %v7888_v42 = vsel %vm4588_vm2, %v4988_v12, %v4100_v1  ;;  %v7890_v31 = vpop.permute.xlu2 %3877  ;;  %4269 = vrot.lane.b32.xlu0 %v2410_v23, %s5309_s9  ;;  %v2258_v1 = vsel %vm169_vm0, 0.0, %v2257_v9  ;;  %v1206_v23 = vsel %vm169_vm0, 0.0, %v1205_v49  ;;  %v1196_v49 = vsel %vm169_vm0, 0.0, %v1195_v30 }
 0x54e   :  { %9883 = vst [vmem:[#allocation42_spill] sm:$0xff] %v7888_v42  ;;  %v7917_v9 = vperm.slane %v1206_v23, %v5329_v11 }
 0x54f   :  { %v7894_v13 = vpop.permute.xlu0 %4101 }
 0x550   :  { %9884 = vst [vmem:[#allocation360_spill] sm:$0xff] %v7894_v13 }
 0x551   :  { %9888 = vst [vmem:[#allocation364_spill] sm:$0xff] %v7917_v9 }
 0x552   :  { %4277 = vrot.lane.b32.xlu1 %v7897_v50, %s5291_s23  ;;  %v1073_v50 = vrot.slane %v7498_v61, 4 }
 0x553   :  { %4021 = vrot.lane.b32.xlu2 %v2258_v1, %s5309_s9  ;;  %v2411_v1 = vrot.slane %v9881_v0, 4  ;;  %v2443_v0 = vrot.slane %v2430_v14, 4 }
 0x554   :  { %v7904_v12 = vpop.permute.xlu1 %4109  ;;  %v1074_v58 = vsel %vm169_vm0, 0.0, %v1073_v50 }
 0x555   :  { %9886 = vst [vmem:[#allocation362_spill] sm:$0xff] %v7904_v12  ;;  %v7908_v27 = vpop.permute.xlu2 %3891  ;;  %4283 = vrot.lane.b32.xlu0 %v1226_v7, %s5293_s25  ;;  %v2412_v61 = vsel %vm169_vm0, 0.0, %v2411_v1  ;;  %v1204_v7 = vperm.slane %v1196_v49, %v5327_v10 }
 0x556   :  { %v2420_v30 = vperm.slane %v2412_v61, %v5327_v10 }
 0x557   :  { %v7914_v38 = vpop.permute.xlu0 %4115  ;;  %v1220_v50 = vperm.slane %v1204_v7, %v5329_v11 }
 0x558   :  { %9887 = vst [vmem:[#allocation363_spill] sm:$0xff] %v7914_v38  ;;  %v7944_v49 = vperm.slane %v2420_v30, %v5329_v11 }
 0x559   :  { %v1229_v61 = vrot.slane %v1220_v50, 4 }
 0x55a   :  { %4291 = vrot.lane.b32.xlu1 %v7917_v9, %s5294_s26  ;;  %v2444_v9 = vsel %vm169_vm0, 0.0, %v2443_v0  ;;  %9892 = vst [vmem:[#allocation368_spill] sm:$0xff] %v7944_v49  ;;  %v2445_v0 = vrot.slane %v7944_v49, 4 }
 0x55b   :  { %4035 = vrot.lane.b32.xlu2 %v1074_v58, %s5293_s25  ;;  %v1215_v58 = vrot.slane %v1204_v7, 4 }
 0x55c   :  { %v7926_v40 = vpop.permute.xlu1 %4123 }
 0x55d   :  { %9889 = vst [vmem:[#allocation365_spill] sm:$0xff] %v7926_v40  ;;  %v7930_v23 = vpop.permute.xlu2 %3901  ;;  %4293 = vrot.lane.b32.xlu0 %v2430_v14, %s5294_s26  ;;  %v2431_v40 = vrot.slane %v2420_v30, 4 }
 0x55f   :  { %v7933_v24 = vpop.permute.xlu0 %4125 }
 0x560   :  { %9890 = vst [vmem:[#allocation366_spill] sm:$0xff] %v7933_v24 }
 0x562   :  { %4301 = vrot.lane.b32.xlu1 %v2444_v9, %s5296_s28  ;;  %v1230_v9 = vsel %vm169_vm0, 0.0, %v1229_v61  ;;  %v2293_v61 = vrot.slane %v7553_v51, 4 }
 0x563   :  { %4045 = vrot.lane.b32.xlu2 %v7523_v57, %s5294_s26  ;;  %v1216_v57 = vsel %vm169_vm0, 0.0, %v1215_v58  ;;  %v2432_v58 = vsel %vm169_vm0, 0.0, %v2431_v40 }
 0x564   :  { %v7941_v1 = vpop.permute.xlu1 %4133  ;;  %v2294_v40 = vsel %vm169_vm0, 0.0, %v2293_v61 }
 0x565   :  { %9891 = vst [vmem:[#allocation367_spill] sm:$0xff] %v7941_v1  ;;  %v7946_v14 = vpop.permute.xlu2 %3915  ;;  %4307 = vrot.lane.b32.xlu0 %v1220_v50, %s5297_s29  ;;  %v2446_v1 = vsel %vm169_vm0, 0.0, %v2445_v0  ;;  %v7961_v50 = vperm.slane %v1216_v57, %v5329_v11  ;;  %v7975_v0 = vperm.slane %v2432_v58, %v5329_v11 }
 0x567   :  { %v7949_v24 = vpop.permute.xlu0 %4139  ;;  %9895 = vst [vmem:[#allocation371_spill] sm:$0xff] %v7961_v50  ;;  %v1231_v57 = vrot.slane %v7961_v50, 4 }
 0x568   :  { %9893 = vst [vmem:[#allocation369_spill] sm:$0xff] %v7949_v24  ;;  %v9896_v24 = vld [vmem:[#allocation51_spill] sm:$0xff] }
 0x569   :  { %v1238_v49 = vperm.slane %v9896_v24, %v5327_v10  ;;  %v1232_v58 = vsel %vm169_vm0, 0.0, %v1231_v57 }
 0x56a   :  { %4315 = vrot.lane.b32.xlu1 %v1230_v9, %s5298_s30 }
 0x56b   :  { %4059 = vrot.lane.b32.xlu2 %v7544_v19, %s5297_s29  ;;  %v9898_v19 = vld [vmem:[#allocation45_spill] sm:$0xff]  ;;  %v7979_v38 = vperm.slane %v1238_v49, %v5329_v11 }
 0x56c   :  { %v7957_v7 = vpop.permute.xlu1 %4147  ;;  %9899 = vst [vmem:[#allocation45_spill] sm:$0xff] %v7975_v0 }
 0x56d   :  { %9894 = vst [vmem:[#allocation370_spill] sm:$0xff] %v7957_v7  ;;  %v7965_v30 = vpop.permute.xlu2 %3925  ;;  %4317 = vrot.lane.b32.xlu0 %v2446_v1, %s5298_s30  ;;  %v2454_v7 = vperm.slane %v9898_v19, %v5327_v10  ;;  %v1263_v50 = vrot.slane %v7979_v38, 4 }
 0x56e   :  { %9900 = vst [vmem:[#allocation372_spill] sm:$0xff] %v7979_v38 }
 0x56f   :  { %v7970_v9 = vpop.permute.xlu0 %4149  ;;  %v7986_v51 = vperm.slane %v2454_v7, %v5329_v11 }
 0x570   :  { %9897 = vst [vmem:[#allocation51_spill] sm:$0xff] %v7970_v9  ;;  %v1243_v9 = vrot.slane %v1238_v49, 4  ;;  %v8003_v49 = vperm.slane %v7591_v25, %v5329_v11  ;;  %v1233_v25 = vrot.slane %v9896_v24, 4 }
 0x571   :  { %v2479_v61 = vrot.slane %v7986_v51, 4 }
 0x572   :  { %4325 = vrot.lane.b32.xlu1 %v7975_v0, %s5300_s3  ;;  %v1079_v0 = vrot.slane %v7574_v62, 4  ;;  %v1244_v42 = vsel %vm169_vm0, 0.0, %v1243_v9  ;;  %v4927_v62 = vsel %vm4585_vm1, %v7197_v36, %v7486_v33  ;;  %v2449_v36 = vrot.slane %v9898_v19, 4 }
 0x573   :  { %4069 = vrot.lane.b32.xlu2 %v2294_v40, %s5298_s30  ;;  %v2459_v40 = vrot.slane %v2454_v7, 4  ;;  %v2480_v7 = vsel %vm169_vm0, 0.0, %v2479_v61  ;;  %v4929_v9 = vsel %vm4588_vm2, %v4927_v62, %v7852_v52  ;;  %v4926_v33 = vsel %vm4585_vm1, %v7599_v47, %v7836_v8 }
 0x574   :  { %v7988_v1 = vpop.permute.xlu1 %4157  ;;  %v1080_v57 = vsel %vm169_vm0, 0.0, %v1079_v0  ;;  %v4931_v52 = vsel %vm4591_vm3, %v4929_v9, %v7511_v15  ;;  %v4928_v19 = vsel %vm4588_vm2, %v4926_v33, %v7495_v53  ;;  %v2450_v47 = vsel %vm169_vm0, 0.0, %v2449_v36 }
 0x575   :  { %9901 = vst [vmem:[#allocation373_spill] sm:$0xff] %v7988_v1  ;;  %v7991_v12 = vpop.permute.xlu2 %3939  ;;  %4331 = vrot.lane.b32.xlu0 %v1232_v58, %s5301_s4  ;;  %v1264_v1 = vsel %vm169_vm0, 0.0, %v1263_v50  ;;  %v8015_v50 = vperm.slane %v1244_v42, %v5329_v11  ;;  %v2460_v0 = vsel %vm169_vm0, 0.0, %v2459_v40  ;;  %v2327_v42 = vrot.slane %v8003_v49, 4 }
 0x576   :  { %v8034_v24 = vperm.slane %v2460_v0, %v5329_v11  ;;  %v1234_v40 = vsel %vm169_vm0, 0.0, %v1233_v25  ;;  %v4933_v15 = vsel %vm4594_vm4, %v4931_v52, %v7520_v26  ;;  %v2458_v0 = vperm.slane %v2450_v47, %v5327_v10 }
 0x577   :  { %v7996_v13 = vpop.permute.xlu0 %4163  ;;  %v2328_v8 = vsel %vm169_vm0, 0.0, %v2327_v42  ;;  %v1242_v62 = vperm.slane %v1234_v40, %v5327_v10  ;;  %v4935_v53 = vsel %vm4597_vm5, %v4933_v15, %v7890_v31  ;;  %v1113_v33 = vrot.slane %v7618_v46, 4 }
 0x579   :  { %v8069_v52 = vperm.slane %v1242_v62, %v5329_v11 }
 0x57a   :  { %4339 = vrot.lane.b32.xlu1 %v1264_v1, %s5280_s0 }
 0x57b   :  { %4083 = vrot.lane.b32.xlu2 %v1080_v57, %s5301_s4  ;;  %v1265_v57 = vrot.slane %v8015_v50, 4 }
 0x57c   :  { %v8011_v58 = vpop.permute.xlu1 %4171 }
 0x57d   :  { %v8020_v1 = vpop.permute.xlu2 %3949  ;;  %4341 = vrot.lane.b32.xlu0 %v2480_v7, %s5280_s0  ;;  %v4930_v7 = vsel %vm4591_vm3, %v4928_v19, %v7505_v60  ;;  %v1266_v9 = vsel %vm169_vm0, 0.0, %v1265_v57  ;;  %v4937_v60 = vsel %vm9495_vm6, %v4935_v53, %v7550_v18  ;;  %v1253_v57 = vrot.slane %v1242_v62, 4 }
 0x57e   :  { %v4932_v36 = vsel %vm4594_vm4, %v4930_v7, %v7869_v48  ;;  %v2474_v48 = vperm.slane %v2458_v0, %v5329_v11  ;;  %v4939_v40 = vsel %vm9494_vm7, %v4937_v60, %v7560_v2  ;;  %v1114_v18 = vsel %vm169_vm0, 0.0, %v1113_v33 }
 0x57f   :  { %v8029_v61 = vpop.permute.xlu0 %4173  ;;  %v4934_v42 = vsel %vm4597_vm5, %v4932_v36, %v7530_v6  ;;  %v4941_v6 = vsel %vm9492_vm8, %v4939_v40, %v7930_v23  ;;  %v2469_v2 = vrot.slane %v2458_v0, 4 }
 0x580   :  { %v4936_v46 = vsel %vm9495_vm6, %v4934_v42, %v7540_v20  ;;  %v2483_v15 = vrot.slane %v2474_v48, 4  ;;  %v4943_v62 = vsel %vm9490_vm9, %v4941_v6, %v7593_v5  ;;  %v1254_v20 = vsel %vm169_vm0, 0.0, %v1253_v57 }
 0x581   :  { %v4938_v19 = vsel %vm9494_vm7, %v4936_v46, %v7908_v27  ;;  %v4945_v27 = vsel %vm9491_vm10, %v4943_v62, %v7605_v43  ;;  %v2470_v0 = vsel %vm169_vm0, 0.0, %v2469_v2 }
 0x582   :  { %4349 = vrot.lane.b32.xlu1 %v8034_v24, %s5277_s12  ;;  %v4940_v23 = vsel %vm9492_vm8, %v4938_v19, %v7569_v56  ;;  %v2484_v53 = vsel %vm169_vm0, 0.0, %v2483_v15  ;;  %v4947_v36 = vsel %vm9493_vm11, %v4945_v27, %v7965_v30  ;;  %v8111_v33 = vperm.slane %v2470_v0, %v5329_v11 }
 0x583   :  { %4093 = vrot.lane.b32.xlu2 %v2328_v8, %s5280_s0  ;;  %v4942_v5 = vsel %vm9490_vm9, %v4940_v23, %v7584_v41  ;;  %v4949_v41 = vsel %vm9471_vm12, %v4947_v36, %v7634_v29  ;;  %s9903_s0 = smov 28  }
 0x584   :  { %v8052_v25 = vpop.permute.xlu1 %4181  ;;  %v4944_v56 = vsel %vm9491_vm10, %v4942_v5, %v7946_v14  ;;  %v4951_v57 = vsel %vm9470_vm13, %v4949_v41, %v7642_v16  ;;  %v2485_v40 = vrot.slane %v8111_v33, 4  ;;  %v9904_v16 = vld [vmem:[#allocation49_spill] sm:$0xff] }
 0x585   :  { %v8058_v26 = vpop.permute.xlu2 %3963  ;;  %4355 = vrot.lane.b32.xlu0 %v1266_v9, %s5282_s14  ;;  %v1262_v9 = vperm.slane %v1254_v20, %v5329_v11  ;;  %v4946_v42 = vsel %vm9493_vm11, %v4944_v56, %v7615_v32  ;;  %v2492_v6 = vperm.slane %v9904_v16, %v5327_v10 }
 0x586   :  { %v4948_v29 = vsel %vm9471_vm12, %v4946_v42, %v7627_v54  ;;  %v2486_v2 = vsel %vm169_vm0, 0.0, %v2485_v40  ;;  %vm9475_vm12 = vcmask 556032  }
 0x587   :  { %v8064_v31 = vpop.permute.xlu0 %4187  ;;  %v1269_v30 = vrot.slane %v1262_v9, 4  ;;  %v4950_v46 = vsel %vm9470_vm13, %v4948_v29, %v7991_v12  ;;  %vm9473_vm13 = vcmask 523264  }
 0x588   :  { %v4952_v12 = vsel %vm9472_vm14, %v4950_v46, %v7650_v28 }
 0x589   :  { %v1270_v32 = vsel %vm169_vm0, 0.0, %v1269_v30  ;;  %v4954_v23 = vsel %vm9474_vm15, %v4952_v12, %v7658_v44 }
 0x58a   :  { %4363 = vrot.lane.b32.xlu1 %v8069_v52, %s5281_s13 }
 0x58b   :  { %4107 = vrot.lane.b32.xlu2 %v1114_v18, %s5282_s14  ;;  %v4953_v18 = vsel %vm9472_vm14, %v4951_v57, %v8020_v1  ;;  %vm9477_vm14 = vcmask 588800   ;;  %v2487_v57 = vrot.slane %v9904_v16, 4 }
 0x58c   :  { %v8084_v47 = vpop.permute.xlu1 %4195  ;;  %v4955_v54 = vsel %vm9474_vm15, %v4953_v18, %v7669_v22  ;;  %v8154_v22 = vperm.slane %v2492_v6, %v5329_v11  ;;  %vm4642_vm15 = vcmask 654336  }
 0x58d   :  { %v3974_v8 = vpop.permute.xlu2 %3973  ;;  %4365 = vrot.lane.b32.xlu0 %v2474_v48, %s5281_s13  ;;  %v4957_v62 = vsel %vm9473_vm13, %v4955_v54, %v7681_v59 }
 0x58e   :  { %v4959_v28 = vsel %vm9475_vm12, %v4957_v62, %v3974_v8 }
 0x58f   :  { %v8092_v7 = vpop.permute.xlu0 %4197  ;;  %v4961_v0 = vsel %vm9477_vm14, %v4959_v28, %v7706_v17 }
 0x592   :  { %4373 = vrot.lane.b32.xlu1 %v2484_v53, %s5283_s15  ;;  %v2497_v53 = vrot.slane %v2492_v6, 4 }
 0x593   :  { %4117 = vrot.lane.b32.xlu2 %v7645_v39, %s5281_s13  ;;  %v9902_v39 = vld [vmem:[#allocation54_spill] sm:$0xff] }
 0x594   :  { %v8108_v43 = vpop.permute.xlu1 %4205  ;;  %v1276_v48 = vperm.slane %v9902_v39, %v5327_v10  ;;  %v1271_v41 = vrot.slane %v9902_v39, 4 }
 0x595   :  { %v3988_v60 = vpop.permute.xlu2 %3987  ;;  %4379 = vrot.lane.b32.xlu0 %v1262_v9, %s5284_s16 }
 0x596   :  { %v8138_v19 = vperm.slane %v1276_v48, %v5329_v11  ;;  %v1281_v9 = vrot.slane %v1276_v48, 4 }
 0x597   :  { %v8118_v14 = vpop.permute.xlu0 %4211 }
 0x598   :  { %v1301_v27 = vrot.slane %v8138_v19, 4  ;;  %v1282_v36 = vsel %vm169_vm0, 0.0, %v1281_v9  ;;  %v9908_v9 = vld [vmem:[#allocation334_spill] sm:$0xff] }
 0x599   :  { %v8188_v29 = vperm.slane %v1282_v36, %v5329_v11 }
 0x59a   :  { %4387 = vrot.lane.b32.xlu1 %v1270_v32, %s9903_s0  ;;  %v1302_v5 = vsel %vm169_vm0, 0.0, %v1301_v27  ;;  %v9907_v27 = vld [vmem:[#allocation342_spill] sm:$0xff] }
 0x59b   :  { %4131 = vrot.lane.b32.xlu2 %v7662_v55, %s5284_s16  ;;  %v2333_v55 = vrot.slane %v7672_v3, 4  ;;  %v4956_v3 = vsel %vm9473_vm13, %v4954_v23, %v8058_v26  ;;  %v2498_v26 = vsel %vm169_vm0, 0.0, %v2497_v53  ;;  %vm9476_vm13 = vcmask 621568  }
 0x59c   :  { %v8142_v1 = vpop.permute.xlu1 %4219  ;;  %v4958_v44 = vsel %vm9475_vm12, %v4956_v3, %v7690_v34  ;;  %v4963_v17 = vsel %vm9476_vm13, %v4961_v0, %v7715_v21  ;;  %v1149_v34 = vrot.slane %v7693_v35, 4  ;;  %vm9478_vm12 = vcmask 687104  }
 0x59d   :  { %v3998_v15 = vpop.permute.xlu2 %3997  ;;  %4389 = vrot.lane.b32.xlu0 %v2486_v2, %s9903_s0  ;;  %v2334_v59 = vsel %vm169_vm0, 0.0, %v2333_v55  ;;  %v4960_v30 = vsel %vm9477_vm14, %v4958_v44, %v7700_v37  ;;  %v2506_v39 = vperm.slane %v2498_v26, %v5329_v11  ;;  %v1272_v21 = vsel %vm169_vm0, 0.0, %v1271_v41  ;;  %v9906_v2 = vld [vmem:[#allocation336_spill] sm:$0xff] }
 0x59e   :  { %v4965_v42 = vsel %vm4642_vm15, %v4963_v17, %v3998_v15  ;;  %v4962_v40 = vsel %vm9476_vm13, %v4960_v30, %v3988_v60  ;;  %v1150_v37 = vsel %vm169_vm0, 0.0, %v1149_v34  ;;  %v2488_v60 = vsel %vm169_vm0, 0.0, %v2487_v57  ;;  %v9910_v57 = vld [vmem:[#allocation345_spill] sm:$0xff] }
 0x59f   :  { %v8151_v20 = vpop.permute.xlu0 %4221  ;;  %v4967_v35 = vsel %vm9478_vm12, %v4965_v42, %v7745_v45  ;;  %v4964_v18 = vsel %vm4642_vm15, %v4962_v40, %v7725_v63  ;;  %vm9479_vm13 = vcmask 719872   ;;  %v1280_v46 = vperm.slane %v1272_v21, %v5327_v10  ;;  %v9905_v45 = vld [vmem:[#allocation340_spill] sm:$0xff] }
 0x5a0   :  { %vm9480_vm14 = vcmask 752640   ;;  %v4969_v6 = vsel %vm9479_vm13, %v4967_v35, %v9905_v45  ;;  %v2519_v54 = vrot.slane %v2506_v39, 4  ;;  %v4966_v63 = vsel %vm9478_vm12, %v4964_v18, %v9906_v2  ;;  %v9912_v45 = vld [vmem:[#allocation339_spill] sm:$0xff] }
 0x5a1   :  { %v2496_v62 = vperm.slane %v2488_v60, %v5327_v10  ;;  %v1296_v28 = vperm.slane %v1280_v46, %v5329_v11  ;;  %vm9482_vm12 = vcmask 785408   ;;  %v1291_v0 = vrot.slane %v1280_v46, 4 }
 0x5a2   :  { %4397 = vrot.lane.b32.xlu1 %v8154_v22, %s5286_s18  ;;  %v2520_v23 = vsel %vm169_vm0, 0.0, %v2519_v54 }
 0x5a3   :  { %4141 = vrot.lane.b32.xlu2 %v2334_v59, %s9903_s0  ;;  %v8224_v59 = vperm.slane %v2496_v62, %v5329_v11  ;;  %v1305_v36 = vrot.slane %v1296_v28, 4  ;;  %v2507_v34 = vrot.slane %v2496_v62, 4  ;;  %v1292_v42 = vsel %vm169_vm0, 0.0, %v1291_v0  ;;  %v9914_v62 = vld [vmem:[#allocation57_spill] sm:$0xff] }
 0x5a4   :  { %v8170_v8 = vpop.permute.xlu1 %4229 }
 0x5a5   :  { %v4012_v56 = vpop.permute.xlu2 %4011  ;;  %4403 = vrot.lane.b32.xlu0 %v1302_v5, %s5287_s19  ;;  %v9909_v5 = vld [vmem:[#allocation344_spill] sm:$0xff]  ;;  %v2521_v17 = vrot.slane %v8224_v59, 4  ;;  %v1306_v30 = vsel %vm169_vm0, 0.0, %v1305_v36  ;;  %v2508_v46 = vsel %vm169_vm0, 0.0, %v2507_v34  ;;  %v9917_v36 = vld [vmem:[#allocation343_spill] sm:$0xff] }
 0x5a6   :  { %v4968_v15 = vsel %vm9479_vm13, %v4966_v63, %v4012_v56  ;;  %vm9481_vm13 = vcmask 818176   ;;  %v8255_v2 = vperm.slane %v2508_v46, %v5329_v11  ;;  %v9919_v46 = vld [vmem:[#allocation353_spill] sm:$0xff] }
 0x5a7   :  { %v8183_v48 = vpop.permute.xlu0 %4235  ;;  %v4970_v53 = vsel %vm9480_vm14, %v4968_v15, %v9907_v27  ;;  %v2522_v35 = vsel %vm169_vm0, 0.0, %v2521_v17 }
 0x5a8   :  { %v4972_v26 = vsel %vm9482_vm12, %v4970_v53, %v9909_v5  ;;  %v9915_v53 = vld [vmem:[#allocation52_spill] sm:$0xff] }
 0x5aa   :  { %4411 = vrot.lane.b32.xlu1 %v8188_v29, %s9851_s17 }
 0x5ab   :  { %4155 = vrot.lane.b32.xlu2 %v1150_v37, %s5287_s19  ;;  %v8244_v37 = vperm.slane %v1292_v42, %v5329_v11 }
 0x5ac   :  { %v8201_v32 = vpop.permute.xlu1 %4243 }
 0x5ad   :  { %v4022_v16 = vpop.permute.xlu2 %4021  ;;  %4413 = vrot.lane.b32.xlu0 %v2506_v39, %s9851_s17  ;;  %v9911_v39 = vld [vmem:[#allocation337_spill] sm:$0xff]  ;;  %v1307_v63 = vrot.slane %v8244_v37, 4 }
 0x5ae   :  { %v4971_v12 = vsel %vm9480_vm14, %v4969_v6, %v4022_v16  ;;  %vm9483_vm14 = vcmask 850944   ;;  %v2369_v6 = vrot.slane %v9912_v45, 4 }
 0x5af   :  { %v8211_v55 = vpop.permute.xlu0 %4245  ;;  %v4973_v40 = vsel %vm9482_vm12, %v4971_v12, %v9910_v57  ;;  %v9913_v12 = vld [vmem:[#allocation347_spill] sm:$0xff]  ;;  %v1308_v27 = vsel %vm169_vm0, 0.0, %v1307_v63  ;;  %vm9484_vm12 = vcmask 916480  }
 0x5b0   :  { %v4975_v60 = vsel %vm9481_vm13, %v4973_v40, %v7793_v4  ;;  %v2370_v4 = vsel %vm169_vm0, 0.0, %v2369_v6  ;;  %v9918_v57 = vld [vmem:[#allocation351_spill] sm:$0xff] }
 0x5b2   :  { %4421 = vrot.lane.b32.xlu1 %v2520_v23, %s5289_s21  ;;  %v1314_v23 = vperm.slane %v9914_v62, %v5327_v10 }
 0x5b3   :  { %4165 = vrot.lane.b32.xlu2 %v9908_v9, %s9851_s17  ;;  %v2530_v9 = vperm.slane %v9915_v53, %v5327_v10 }
 0x5b4   :  { %v8221_v3 = vpop.permute.xlu1 %4253  ;;  %v8279_v34 = vperm.slane %v1314_v23, %v5329_v11  ;;  %v1319_v42 = vrot.slane %v1314_v23, 4 }
 0x5b5   :  { %v4036_v44 = vpop.permute.xlu2 %4035  ;;  %4427 = vrot.lane.b32.xlu0 %v1296_v28, %s9807_s20 }
 0x5b6   :  { %v4974_v56 = vsel %vm9481_vm13, %v4972_v26, %v4036_v44  ;;  %vm9485_vm13 = vcmask 883712   ;;  %v9916_v44 = vld [vmem:[#allocation348_spill] sm:$0xff] }
 0x5b7   :  { %v8230_v41 = vpop.permute.xlu0 %4259  ;;  %v4976_v15 = vsel %vm9483_vm14, %v4974_v56, %v9913_v12  ;;  %v1155_v56 = vrot.slane %v9917_v36, 4 }
 0x5b8   :  { %v4978_v5 = vsel %vm9485_vm13, %v4976_v15, %v9916_v44  ;;  %v9922_v44 = vld [vmem:[#allocation39_spill] sm:$0xff] }
 0x5ba   :  { %4435 = vrot.lane.b32.xlu1 %v1306_v30, %s5292_s24  ;;  %v2540_v30 = vperm.slane %v2530_v9, %v5329_v11 }
 0x5bb   :  { %4179 = vrot.lane.b32.xlu2 %v9911_v39, %s9807_s20  ;;  %v1156_v39 = vsel %vm169_vm0, 0.0, %v1155_v56 }
 0x5bc   :  { %v8240_v21 = vpop.permute.xlu1 %4267  ;;  %v2555_v6 = vrot.slane %v2540_v30, 4 }
 0x5bd   :  { %v4046_v18 = vpop.permute.xlu2 %4045  ;;  %4437 = vrot.lane.b32.xlu0 %v2522_v35, %s5292_s24 }
 0x5be   :  { %v4977_v16 = vsel %vm9483_vm14, %v4975_v60, %v4046_v18  ;;  %v2535_v18 = vrot.slane %v2530_v9, 4  ;;  %vm4669_vm14 = vcmask 949248   ;;  %v2556_v23 = vsel %vm169_vm0, 0.0, %v2555_v6  ;;  %v9921_v9 = vld [vmem:[#allocation354_spill] sm:$0xff] }
 0x5bf   :  { %v8252_v54 = vpop.permute.xlu0 %4269  ;;  %v4979_v40 = vsel %vm9485_vm13, %v4977_v16, %v9918_v57  ;;  %v1320_v16 = vsel %vm169_vm0, 0.0, %v1319_v42  ;;  %vm9496_vm13 = vcmask 1014784   ;;  %v9923_v42 = vld [vmem:[#allocation356_spill] sm:$0xff] }
 0x5c0   :  { %v4981_v45 = vsel %vm9484_vm12, %v4979_v40, %v9919_v46  ;;  %v2536_v15 = vsel %vm169_vm0, 0.0, %v2535_v18 }
 0x5c1   :  { %v8312_v56 = vperm.slane %v2536_v15, %v5329_v11 }
 0x5c2   :  { %4445 = vrot.lane.b32.xlu1 %v8255_v2, %s5295_s27 }
 0x5c3   :  { %4189 = vrot.lane.b32.xlu2 %v2370_v4, %s5292_s24  ;;  %v1309_v4 = vrot.slane %v9914_v62, 4  ;;  %v2557_v18 = vrot.slane %v8312_v56, 4 }
 0x5c4   :  { %v8266_v28 = vpop.permute.xlu1 %4277 }
 0x5c5   :  { %v4060_v0 = vpop.permute.xlu2 %4059  ;;  %4451 = vrot.lane.b32.xlu0 %v1308_v27, %s9748_s22  ;;  %v1328_v27 = vperm.slane %v1320_v16, %v5329_v11  ;;  %v1310_v62 = vsel %vm169_vm0, 0.0, %v1309_v4  ;;  %v2558_v15 = vsel %vm169_vm0, 0.0, %v2557_v18 }
 0x5c6   :  { %v4980_v26 = vsel %vm9484_vm12, %v4978_v5, %v4060_v0  ;;  %v2525_v5 = vrot.slane %v9915_v53, 4  ;;  %vm4672_vm12 = vcmask 982016  }
 0x5c7   :  { %v8276_v17 = vpop.permute.xlu0 %4283  ;;  %v4982_v0 = vsel %vm4669_vm14, %v4980_v26, %v9921_v9  ;;  %v1341_v57 = vrot.slane %v1328_v27, 4 }
 0x5c8   :  { %v4984_v26 = vsel %vm4672_vm12, %v4982_v0, %v9923_v42 }
 0x5c9   :  { %v1342_v46 = vsel %vm169_vm0, 0.0, %v1341_v57 }
 0x5ca   :  { %4459 = vrot.lane.b32.xlu1 %v8279_v34, %s5302_s5 }
 0x5cb   :  { %4203 = vrot.lane.b32.xlu2 %v1156_v39, %s9748_s22  ;;  %v1318_v39 = vperm.slane %v1310_v62, %v5327_v10 }
 0x5cc   :  { %v8288_v35 = vpop.permute.xlu1 %4291 }
 0x5cd   :  { %v4070_v60 = vpop.permute.xlu2 %4069  ;;  %4461 = vrot.lane.b32.xlu0 %v2540_v30, %s5302_s5  ;;  %v8335_v4 = vperm.slane %v1318_v39, %v5329_v11  ;;  %v1329_v62 = vrot.slane %v1318_v39, 4 }
 0x5ce   :  { %v8295_v63 = vsel %vm4669_vm14, %v4981_v45, %v4070_v60  ;;  %v2526_v60 = vsel %vm169_vm0, 0.0, %v2525_v5  ;;  %v9925_v45 = vld [vmem:[#allocation349_spill] sm:$0xff] }
 0x5cf   :  { %9920 = vst [vmem:[#allocation54_spill] sm:$0xff] %v8295_v63  ;;  %v8297_v12 = vpop.permute.xlu0 %4293  ;;  %v2534_v6 = vperm.slane %v2526_v60, %v5327_v10  ;;  %v1343_v5 = vrot.slane %v8335_v4, 4  ;;  %v1330_v60 = vsel %vm169_vm0, 0.0, %v1329_v62 }
 0x5d0   :  { %9926 = vst [vmem:[#allocation340_spill] sm:$0xff] %v8335_v4  ;;  %v9940_v4 = vld [vmem:[#allocation365_spill] sm:$0xff] }
 0x5d1   :  { %v1344_v57 = vsel %vm169_vm0, 0.0, %v1343_v5 }
 0x5d2   :  { %4469 = vrot.lane.b32.xlu1 %v2556_v23, %s9685_s2 }
 0x5d3   :  { %4213 = vrot.lane.b32.xlu2 %v9922_v44, %s5302_s5  ;;  %v8342_v44 = vperm.slane %v2534_v6, %v5329_v11 }
 0x5d4   :  { %v8309_v36 = vpop.permute.xlu1 %4301 }
 0x5d5   :  { %v4084_v30 = vpop.permute.xlu2 %4083  ;;  %4475 = vrot.lane.b32.xlu0 %v1328_v27, %s5304_s7  ;;  %v9927_v27 = vld [vmem:[#allocation352_spill] sm:$0xff]  ;;  %9928 = vst [vmem:[#allocation336_spill] sm:$0xff] %v8342_v44 }
 0x5d6   :  { %v8319_v40 = vsel %vm9496_vm13, %v4984_v26, %v4084_v30  ;;  %v2405_v9 = vrot.slane %v9927_v27, 4  ;;  %v2545_v30 = vrot.slane %v2534_v6, 4 }
 0x5d7   :  { %9924 = vst [vmem:[#allocation49_spill] sm:$0xff] %v8319_v40  ;;  %v8321_v53 = vpop.permute.xlu0 %4307 }
 0x5d8   :  { %v2406_v42 = vsel %vm169_vm0, 0.0, %v2405_v9 }
 0x5da   :  { %4483 = vrot.lane.b32.xlu1 %v1342_v46, %s5305_s8  ;;  %v9929_v46 = vld [vmem:[#allocation42_spill] sm:$0xff] }
 0x5db   :  { %4227 = vrot.lane.b32.xlu2 %v9925_v45, %s5304_s7  ;;  %v9930_v45 = vld [vmem:[#allocation355_spill] sm:$0xff] }
 0x5dc   :  { %v8331_v16 = vpop.permute.xlu1 %4315  ;;  %v1191_v6 = vrot.slane %v9930_v45, 4 }
 0x5dd   :  { %v4094_v23 = vpop.permute.xlu2 %4093  ;;  %4485 = vrot.lane.b32.xlu0 %v2558_v15, %s5305_s8  ;;  %v2546_v15 = vsel %vm169_vm0, 0.0, %v2545_v30 }
 0x5de   :  { %v4989_v27 = vsel %vm4585_vm1, %v8003_v49, %v4094_v23  ;;  %v2554_v5 = vperm.slane %v2546_v15, %v5329_v11  ;;  %v9935_v49 = vld [vmem:[#allocation62_spill] sm:$0xff] }
 0x5df   :  { %v8339_v0 = vpop.permute.xlu0 %4317  ;;  %v1352_v23 = vperm.slane %v9935_v49, %v5327_v10 }
 0x5e0   :  { %v2561_v15 = vrot.slane %v2554_v5, 4 }
 0x5e2   :  { %4493 = vrot.lane.b32.xlu1 %v8342_v44, %s9627_s6  ;;  %v2562_v40 = vsel %vm169_vm0, 0.0, %v2561_v15 }
 0x5e3   :  { %4237 = vrot.lane.b32.xlu2 %v2406_v42, %s5305_s8  ;;  %v8363_v42 = vperm.slane %v1330_v60, %v5329_v11  ;;  %v9936_v60 = vld [vmem:[#allocation362_spill] sm:$0xff] }
 0x5e4   :  { %v8349_v26 = vpop.permute.xlu1 %4325 }
 0x5e5   :  { %v4108_v18 = vpop.permute.xlu2 %4107  ;;  %4499 = vrot.lane.b32.xlu0 %v1344_v57, %s5307_s10  ;;  %9932 = vst [vmem:[#allocation334_spill] sm:$0xff] %v8363_v42  ;;  %v9933_v57 = vld [vmem:[#allocation360_spill] sm:$0xff] }
 0x5e6   :  { %v4992_v39 = vsel %vm4591_vm3, %v9929_v46, %v4108_v18  ;;  %v4991_v62 = vsel %vm4588_vm2, %v4989_v27, %v9933_v57  ;;  %v1192_v18 = vsel %vm169_vm0, 0.0, %v1191_v6  ;;  %v9937_v57 = vld [vmem:[#allocation55_spill] sm:$0xff]  ;;  %v1362_v6 = vperm.slane %v1352_v23, %v5329_v11 }
 0x5e7   :  { %v8360_v9 = vpop.permute.xlu0 %4331  ;;  %v4993_v45 = vsel %vm4591_vm3, %v4991_v62, %v9936_v60  ;;  %v2568_v63 = vperm.slane %v9937_v57, %v5327_v10  ;;  %v9939_v62 = vld [vmem:[#allocation359_spill] sm:$0xff] }
 0x5e8   :  { %9931 = vst [vmem:[#allocation342_spill] sm:$0xff] %v8360_v9  ;;  %v9938_v9 = vld [vmem:[#allocation363_spill] sm:$0xff] }
 0x5e9   :  { %v2573_v38 = vrot.slane %v2568_v63, 4 }
 0x5ea   :  { %4507 = vrot.lane.b32.xlu1 %v8363_v42, %s5308_s11  ;;  %v4994_v42 = vsel %vm4594_vm4, %v4992_v39, %v9938_v9 }
 0x5eb   :  { %4251 = vrot.lane.b32.xlu2 %v1192_v18, %s5307_s10  ;;  %v4996_v39 = vsel %vm4597_vm5, %v4994_v42, %v9940_v4 }
 0x5ec   :  { %v8372_v30 = vpop.permute.xlu1 %4339 }
 0x5ed   :  { %9934 = vst [vmem:[#allocation344_spill] sm:$0xff] %v8372_v30  ;;  %v4118_v46 = vpop.permute.xlu2 %4117  ;;  %4509 = vrot.lane.b32.xlu0 %v2554_v5, %s5308_s11  ;;  %v8390_v5 = vperm.slane %v2568_v63, %v5329_v11  ;;  %v1347_v63 = vrot.slane %v9935_v49, 4 }
 0x5ee   :  { %v4995_v27 = vsel %vm4594_vm4, %v4993_v45, %v4118_v46  ;;  %v1357_v45 = vrot.slane %v1352_v23, 4  ;;  %v9941_v23 = vld [vmem:[#allocation366_spill] sm:$0xff] }
 0x5ef   :  { %v4342_v18 = vpop.permute.xlu0 %4341 }
 0x5f0   :  { %v5051_v46 = vsel %vm4585_vm1, %v7986_v51, %v4342_v18  ;;  %v1358_v30 = vsel %vm169_vm0, 0.0, %v1357_v45  ;;  %v4997_v18 = vsel %vm4597_vm5, %v4995_v27, %v9941_v23  ;;  %v9943_v45 = vld [vmem:[#allocation367_spill] sm:$0xff]  ;;  %v2563_v27 = vrot.slane %v9937_v57, 4  ;;  %v9945_v23 = vld [vmem:[#allocation369_spill] sm:$0xff] }
 0x5f1   :  { %v8411_v42 = vperm.slane %v1358_v30, %v5329_v11 }
 0x5f2   :  { %4517 = vrot.lane.b32.xlu1 %v2562_v40, %s5309_s9  ;;  %v1377_v40 = vrot.slane %v1362_v6, 4  ;;  %v2564_v49 = vsel %vm169_vm0, 0.0, %v2563_v27 }
 0x5f3   :  { %4261 = vrot.lane.b32.xlu2 %v9939_v62, %s5308_s11  ;;  %v2593_v62 = vrot.slane %v8390_v5, 4  ;;  %v1379_v30 = vrot.slane %v8411_v42, 4  ;;  %s5310_s11 = smov [#allocation5]  }
 0x5f4   :  { %v4350_v60 = vpop.permute.xlu1 %4349  ;;  %v1378_v51 = vsel %vm169_vm0, 0.0, %v1377_v40  ;;  %v9944_v40 = vld [vmem:[#allocation361_spill] sm:$0xff]  ;;  %s5171_s13 = sshll.u32 %s5310_s11, 4  ;;  %s5172_s13 = int_to_ptr.vmem [resolvable:$true] %s5171_s13 }
 0x5f5   :  { %v8395_v44 = vsel %vm4588_vm2, %v5051_v46, %v4350_v60  ;;  %v4132_v15 = vpop.permute.xlu2 %4131  ;;  %4523 = vrot.lane.b32.xlu0 %v1362_v6, %s5291_s23  ;;  %v9942_v46 = vld [vmem:[#allocation48_spill] sm:$0xff]  ;;  %v2594_v4 = vsel %vm169_vm0, 0.0, %v2593_v62  ;;  %v2574_v6 = vsel %vm169_vm0, 0.0, %v2573_v38  ;;  %v1348_v38 = vsel %vm169_vm0, 0.0, %v1347_v63  ;;  %v9946_v63 = vld [vmem:[#allocation370_spill] sm:$0xff] }
 0x5f6   :  { %v4998_v9 = vsel %vm9495_vm6, %v4996_v39, %v4132_v15  ;;  %v4999_v15 = vsel %vm9495_vm6, %v4997_v18, %v9943_v45  ;;  %v8422_v62 = vperm.slane %v2574_v6, %v5329_v11  ;;  %v2572_v6 = vperm.slane %v2564_v49, %v5327_v10 }
 0x5f7   :  { %v5000_v18 = vsel %vm9494_vm7, %v4998_v9, %v9945_v23  ;;  %v9948_v23 = vld [vmem:[#allocation51_spill] sm:$0xff] }
 0x5f8   :  { %v5002_v45 = vsel %vm9492_vm8, %v5000_v18, %v9946_v63  ;;  %v2583_v49 = vrot.slane %v2572_v6, 4 }
 0x5fa   :  { %4531 = vrot.lane.b32.xlu1 %v1378_v51, %s5293_s25  ;;  %v2441_v51 = vrot.slane %v9944_v40, 4 }
 0x5fb   :  { %4275 = vrot.lane.b32.xlu2 %v9942_v46, %s5291_s23  ;;  %v1356_v46 = vperm.slane %v1348_v38, %v5327_v10 }
 0x5fc   :  { %v2442_v57 = vsel %vm169_vm0, 0.0, %v2441_v51  ;;  %v2588_v51 = vperm.slane %v2572_v6, %v5329_v11 }
 0x5fd   :  { %v4142_v60 = vpop.permute.xlu2 %4141  ;;  %4533 = vrot.lane.b32.xlu0 %v2594_v4, %s5293_s25  ;;  %v1380_v4 = vsel %vm169_vm0, 0.0, %v1379_v30  ;;  %v8442_v40 = vperm.slane %v1356_v46, %v5329_v11  ;;  %v1367_v38 = vrot.slane %v1356_v46, 4 }
 0x5fe   :  { %v5001_v39 = vsel %vm9494_vm7, %v4999_v15, %v4142_v60  ;;  %v9947_v15 = vld [vmem:[#allocation364_spill] sm:$0xff]  ;;  %vm9958_vm7 = vcmask 490496  }
 0x5ff   :  { %v1227_v27 = vrot.slane %v9947_v15, 4  ;;  %v5003_v30 = vsel %vm9492_vm8, %v5001_v39, %v9948_v23  ;;  %v1368_v63 = vsel %vm169_vm0, 0.0, %v1367_v38  ;;  %v2584_v15 = vsel %vm169_vm0, 0.0, %v2583_v49 }
 0x601   :  { %v1228_v10 = vsel %vm169_vm0, 0.0, %v1227_v27  ;;  %v9950_v27 = vld [vmem:[#allocation368_spill] sm:$0xff] }
 0x602   :  { %4541 = vrot.lane.b32.xlu1 %v8422_v62, %s5294_s26 }
 0x603   :  { %4285 = vrot.lane.b32.xlu2 %v2442_v57, %s5293_s25  ;;  %v9949_v57 = vld [vmem:[#allocation373_spill] sm:$0xff] }
 0x605   :  { %v4156_v60 = vpop.permute.xlu2 %4155  ;;  %4547 = vrot.lane.b32.xlu0 %v1380_v4, %s5296_s28  ;;  %v5005_v4 = vsel %vm9490_vm9, %v5003_v30, %v9949_v57 }
 0x606   :  { %v5004_v9 = vsel %vm9490_vm9, %v5002_v45, %v4156_v60  ;;  %v2597_v60 = vrot.slane %v2588_v51, 4  ;;  %v1376_v45 = vperm.slane %v1368_v63, %v5329_v11  ;;  %vm9951_vm9 = vcmask 392192  }
 0x607   :  { %v5006_v6 = vsel %vm9491_vm10, %v5004_v9, %v7996_v13 }
 0x608   :  { %v2598_v39 = vsel %vm169_vm0, 0.0, %v2597_v60  ;;  %v5008_v38 = vsel %vm9493_vm11, %v5006_v6, %v8011_v58  ;;  %v1383_v30 = vrot.slane %v1376_v45, 4  ;;  %v9955_v60 = vld [vmem:[#allocation45_spill] sm:$0xff] }
 0x609   :  { %v2447_v63 = vrot.slane %v9955_v60, 4 }
 0x60a   :  { %4555 = vrot.lane.b32.xlu1 %v8442_v40, %s5297_s29  ;;  %v1384_v13 = vsel %vm169_vm0, 0.0, %v1383_v30 }
 0x60b   :  { %4299 = vrot.lane.b32.xlu2 %v1228_v10, %s5296_s28 }
 0x60d   :  { %v4166_v18 = vpop.permute.xlu2 %4165  ;;  %4557 = vrot.lane.b32.xlu0 %v2588_v51, %s5297_s29  ;;  %v8465_v51 = vperm.slane %v2584_v15, %v5329_v11  ;;  %v9952_v11 = vld [vmem:[#allocation371_spill] sm:$0xff] }
 0x60e   :  { %v5007_v46 = vsel %vm9491_vm10, %v5005_v4, %v4166_v18  ;;  %vm9953_vm10 = vmmov %vm9951_vm9 }
 0x60f   :  { %v2599_v49 = vrot.slane %v8465_v51, 4  ;;  %v5009_v9 = vsel %vm9493_vm11, %v5007_v46, %v8029_v61  ;;  %v2448_v46 = vsel %vm169_vm0, 0.0, %v2447_v63  ;;  %vm9957_vm11 = vcmask 457728  }
 0x610   :  { %v5011_v57 = vsel %vm9953_vm10, %v5009_v9, %v8052_v25  ;;  %vm9959_vm10 = vmmov %vm9957_vm11 }
 0x611   :  { %v2600_v18 = vsel %vm169_vm0, 0.0, %v2599_v49 }
 0x612   :  { %4565 = vrot.lane.b32.xlu1 %v2598_v39, %s5298_s30 }
 0x613   :  { %4309 = vrot.lane.b32.xlu2 %v9950_v27, %s5297_s29 }
 0x615   :  { %v4180_v23 = vpop.permute.xlu2 %4179  ;;  %4571 = vrot.lane.b32.xlu0 %v1376_v45, %s5300_s3 }
 0x616   :  { %v5010_v10 = vsel %vm9951_vm9, %v5008_v38, %v4180_v23  ;;  %vm9954_vm9 = vcmask 424960   ;;  %v2481_v23 = vrot.slane %v8034_v24, 4 }
 0x617   :  { %vm9956_vm8 = vmmov %vm9954_vm9 }
 0x618   :  { %v5012_v61 = vsel %vm9956_vm8, %v5010_v10, %v8064_v31  ;;  %vm9961_vm8 = vcmask 523264   ;;  %v1267_v10 = vrot.slane %v8069_v52, 4 }
 0x619   :  { %v5014_v45 = vsel %vm9957_vm11, %v5012_v61, %v8084_v47  ;;  %vm9962_vm6 = vmmov %vm9961_vm8  ;;  %v2482_v47 = vsel %vm169_vm0, 0.0, %v2481_v23  ;;  %vm9964_vm11 = vcmask 588800   ;;  %v4356_v61 = vpop.permute.xlu0 %4355 }
 0x61a   :  { %4579 = vrot.lane.b32.xlu1 %v1384_v13, %s5301_s4  ;;  %v1268_v24 = vsel %vm169_vm0, 0.0, %v1267_v10  ;;  %v9986_v10 = vld [vmem:[#allocation372_spill] sm:$0xff] }
 0x61b   :  { %4323 = vrot.lane.b32.xlu2 %v9952_v11, %s5300_s3 }
 0x61d   :  { %v4190_v58 = vpop.permute.xlu2 %4189  ;;  %4581 = vrot.lane.b32.xlu0 %v2600_v18, %s5301_s4 }
 0x61e   :  { %v5013_v4 = vsel %vm9954_vm9, %v5011_v57, %v4190_v58  ;;  %vm9960_vm9 = vmmov %vm9958_vm7 }
 0x61f   :  { %v5015_v25 = vsel %vm9959_vm10, %v5013_v4, %v8092_v7  ;;  %v1303_v4 = vrot.slane %v8188_v29, 4 }
 0x620   :  { %v5017_v31 = vsel %vm9960_vm9, %v5015_v25, %v8108_v43  ;;  %vm9967_vm9 = vcmask 621568  }
 0x623   :  { %4333 = vrot.lane.b32.xlu2 %v2448_v46, %s5301_s4  ;;  %v4364_v46 = vpop.permute.xlu1 %4363 }
 0x625   :  { %v4204_v39 = vpop.permute.xlu2 %4203 }
 0x626   :  { %v5016_v15 = vsel %vm9958_vm7, %v5014_v45, %v4204_v39  ;;  %vm9963_vm7 = vcmask 556032   ;;  %v4366_v45 = vpop.permute.xlu0 %4365 }
 0x627   :  { %v5018_v38 = vsel %vm9962_vm6, %v5016_v15, %v8118_v14  ;;  %vm9965_vm10 = vmmov %vm9963_vm7 }
 0x628   :  { %v5020_v7 = vsel %vm9963_vm7, %v5018_v38, %v8142_v1  ;;  %vm9966_vm6 = vmmov %vm9964_vm11  ;;  %vm9969_vm7 = vcmask 687104  }
 0x62b   :  { %4347 = vrot.lane.b32.xlu2 %v8015_v50, %s5277_s12  ;;  %v4374_v15 = vpop.permute.xlu1 %4373 }
 0x62d   :  { %v4214_v6 = vpop.permute.xlu2 %4213 }
 0x62e   :  { %v5019_v27 = vsel %vm9961_vm8, %v5017_v31, %v4214_v6  ;;  %vm9968_vm8 = vmmov %vm9967_vm9  ;;  %v2523_v6 = vrot.slane %v8255_v2, 4 }
 0x62f   :  { %v5021_v43 = vsel %vm9965_vm10, %v5019_v27, %v8151_v20  ;;  %vm9971_vm10 = vcmask 719872  }
 0x630   :  { %v5023_v49 = vsel %vm9966_vm6, %v5021_v43, %v8170_v8  ;;  %vm9972_vm6 = vmmov %vm9971_vm10  ;;  %v2524_v31 = vsel %vm169_vm0, 0.0, %v2523_v6 }
 0x633   :  { %4357 = vrot.lane.b32.xlu2 %v2482_v47, %s5282_s14  ;;  %v4388_v38 = vpop.permute.xlu1 %4387 }
 0x635   :  { %v4228_v30 = vpop.permute.xlu2 %4227 }
 0x636   :  { %v5022_v50 = vsel %vm9964_vm11, %v5020_v7, %v4228_v30  ;;  %vm9970_vm11 = vmmov %vm9969_vm7 }
 0x637   :  { %v5024_v1 = vsel %vm9968_vm8, %v5022_v50, %v8183_v48  ;;  %vm9974_vm8 = vcmask 785408  }
 0x638   :  { %v5026_v20 = vsel %vm4642_vm15, %v5024_v1, %v8201_v32 }
 0x63b   :  { %4371 = vrot.lane.b32.xlu2 %v1268_v24, %s5283_s15  ;;  %v4398_v50 = vpop.permute.xlu1 %4397 }
 0x63d   :  { %v4238_v14 = vpop.permute.xlu2 %4237 }
 0x63e   :  { %v5025_v13 = vsel %vm9967_vm9, %v5023_v49, %v4238_v14  ;;  %vm9973_vm9 = vcmask 752640  }
 0x63f   :  { %v5027_v11 = vsel %vm4642_vm15, %v5025_v13, %v8211_v55  ;;  %v9987_v13 = vld [vmem:[#allocation340_spill] sm:$0xff] }
 0x640   :  { %v5029_v18 = vsel %vm9970_vm11, %v5027_v11, %v8221_v3  ;;  %vm9976_vm11 = vmmov %vm9974_vm8 }
 0x643   :  { %4381 = vrot.lane.b32.xlu2 %v8111_v33, %s5284_s16  ;;  %v2517_v33 = vrot.slane %v8154_v22, 4  ;;  %v1304_v22 = vsel %vm169_vm0, 0.0, %v1303_v4  ;;  %v4412_v49 = vpop.permute.xlu1 %4411  ;;  %s5173_s16 = sshll.u32 %s9408_s1, 4  ;;  %s10582_s1 = smov 128   ;;  %s5174_s16 = int_to_ptr.hbm [resolvable:$true] %s5173_s16 }
 0x645   :  { %v4252_v52 = vpop.permute.xlu2 %4251  ;;  %v2518_v32 = vsel %vm169_vm0, 0.0, %v2517_v33 }
 0x646   :  { %v5028_v9 = vsel %vm9969_vm7, %v5026_v20, %v4252_v52  ;;  %vm9975_vm7 = vmmov %vm9973_vm9  ;;  %v9988_v52 = vld [vmem:[#allocation336_spill] sm:$0xff] }
 0x647   :  { %v5030_v58 = vsel %vm9972_vm6, %v5028_v9, %v8230_v41  ;;  %v2559_v20 = vrot.slane %v9988_v52, 4 }
 0x648   :  { %v5032_v55 = vsel %vm9973_vm9, %v5030_v58, %v8240_v21  ;;  %vm9979_vm9 = vcmask 850944   ;;  %v9989_v58 = vld [vmem:[#allocation334_spill] sm:$0xff] }
 0x649   :  { %v2560_v11 = vsel %vm169_vm0, 0.0, %v2559_v20  ;;  %v10013_v20 = vld [vmem:[#allocation22_spill] sm:$0xff] }
 0x64b   :  { %4395 = vrot.lane.b32.xlu2 %v8138_v19, %s5286_s18 }
 0x64d   :  { %v4262_v8 = vpop.permute.xlu2 %4261 }
 0x64e   :  { %v5031_v48 = vsel %vm9971_vm10, %v5029_v18, %v4262_v8  ;;  %vm9977_vm10 = vcmask 818176   ;;  %v4422_v8 = vpop.permute.xlu1 %4421 }
 0x64f   :  { %v5033_v3 = vsel %vm9975_vm7, %v5031_v48, %v8252_v54  ;;  %vm9978_vm6 = vmmov %vm9977_vm10 }
 0x650   :  { %v5035_v60 = vsel %vm9976_vm11, %v5033_v3, %v8266_v28  ;;  %vm9981_vm7 = vmmov %vm9979_vm9 }
 0x653   :  { %4405 = vrot.lane.b32.xlu2 %v2518_v32, %s5287_s19  ;;  %v1345_v32 = vrot.slane %v9989_v58, 4  ;;  %v10018_v58 = vld [vmem:[#allocation28_spill] sm:$0xff] }
 0x655   :  { %v4276_v57 = vpop.permute.xlu2 %4275 }
 0x656   :  { %v5034_v19 = vsel %vm9974_vm8, %v5032_v55, %v4276_v57  ;;  %vm9980_vm8 = vcmask 883712  }
 0x657   :  { %v5036_v21 = vsel %vm9978_vm6, %v5034_v19, %v8276_v17  ;;  %vm9982_vm11 = vmmov %vm9980_vm8 }
 0x658   :  { %v5038_v54 = vsel %vm9979_vm9, %v5036_v21, %v8288_v35  ;;  %vm9990_vm9 = vcmask 195584  }
 0x65b   :  { %4419 = vrot.lane.b32.xlu2 %v1304_v22, %s5289_s21  ;;  %v4436_v22 = vpop.permute.xlu1 %4435 }
 0x65d   :  { %v4286_v41 = vpop.permute.xlu2 %4285 }
 0x65e   :  { %v5037_v63 = vsel %vm9977_vm10, %v5035_v60, %v4286_v41  ;;  %vm9983_vm10 = vcmask 916480  }
 0x65f   :  { %v5039_v28 = vsel %vm9981_vm7, %v5037_v63, %v8297_v12  ;;  %vm9984_vm6 = vmmov %vm9983_vm10  ;;  %v4380_v12 = vpop.permute.xlu0 %4379  ;;  %vm9992_vm7 = vcmask 228352  }
 0x660   :  { %v5041_v17 = vsel %vm9982_vm11, %v5039_v28, %v8309_v36  ;;  %v1339_v36 = vrot.slane %v8279_v34, 4  ;;  %v9985_v34 = vld [vmem:[#allocation344_spill] sm:$0xff]  ;;  %vm9993_vm11 = vcmask 261120  }
 0x663   :  { %4429 = vrot.lane.b32.xlu2 %v8224_v59, %s9807_s20 }
 0x665   :  { %v4300_v29 = vpop.permute.xlu2 %4299 }
 0x666   :  { %v5040_v39 = vsel %vm9980_vm8, %v5038_v54, %v4300_v29  ;;  %vm9991_vm8 = vmmov %vm9990_vm9 }
 0x667   :  { %v5042_v35 = vsel %vm9984_vm6, %v5040_v39, %v8321_v53  ;;  %v1340_v53 = vsel %vm169_vm0, 0.0, %v1339_v36  ;;  %v4390_v7 = vpop.permute.xlu0 %4389  ;;  %vm9995_vm6 = vmmov %vm9993_vm11 }
 0x66b   :  { %4443 = vrot.lane.b32.xlu2 %v8244_v37, %s5295_s27  ;;  %v5044_v37 = vsel %vm4669_vm14, %v5042_v35, %v8331_v16  ;;  %v9999_v35 = vld [vmem:[#allocation11_spill] sm:$0xff] }
 0x66d   :  { %v4310_v25 = vpop.permute.xlu2 %4309 }
 0x66e   :  { %v5043_v59 = vsel %vm9983_vm10, %v5041_v17, %v4310_v25  ;;  %vm9994_vm10 = vmmov %vm9992_vm7 }
 0x66f   :  { %v5045_v2 = vsel %vm4669_vm14, %v5043_v59, %v8339_v0  ;;  %v5050_v0 = vsel %vm4585_vm1, %v9986_v10, %v9985_v34  ;;  %v4404_v14 = vpop.permute.xlu0 %4403 }
 0x670   :  { %v5047_v30 = vsel %vm4672_vm12, %v5045_v2, %v8349_v26 }
 0x673   :  { %4453 = vrot.lane.b32.xlu2 %v2524_v31, %s9748_s22 }
 0x675   :  { %v4324_v27 = vpop.permute.xlu2 %4323 }
 0x676   :  { %v8566_v23 = vsel %vm4672_vm12, %v5044_v37, %v4324_v27  ;;  %v1381_v27 = vrot.slane %v8442_v40, 4  ;;  %v10003_v37 = vld [vmem:[#allocation8_spill] sm:$0xff] }
 0x677   :  { %v4414_v9 = vpop.permute.xlu0 %4413 }
 0x67b   :  { %4467 = vrot.lane.b32.xlu2 %v1340_v53, %s9685_s2  ;;  %v10005_v53 = vld [vmem:[#allocation12_spill] sm:$0xff] }
 0x67d   :  { %v4334_v47 = vpop.permute.xlu2 %4333 }
 0x67e   :  { %v8576_v16 = vsel %vm9496_vm13, %v5047_v30, %v4334_v47  ;;  %v10006_v30 = vld [vmem:[#allocation17_spill] sm:$0xff]  ;;  %vm10028_vm13 = vcmask 293888  }
 0x67f   :  { %v4428_v55 = vpop.permute.xlu0 %4427 }
 0x683   :  { %4477 = vrot.lane.b32.xlu2 %v8312_v56, %s5304_s7 }
 0x685   :  { %v4348_v43 = vpop.permute.xlu2 %4347 }
 0x686   :  { %v5052_v24 = vsel %vm4588_vm2, %v5050_v0, %v4348_v43  ;;  %v1382_v0 = vsel %vm169_vm0, 0.0, %v1381_v27  ;;  %v10009_v43 = vld [vmem:[#allocation15_spill] sm:$0xff]  ;;  %v10040_v27 = vld [vmem:[#allocation36_spill] sm:$0xff] }
 0x687   :  { %v5054_v56 = vsel %vm4591_vm3, %v5052_v24, %v4356_v61  ;;  %v8604_v61 = vpop.permute.xlu0 %4437 }
 0x688   :  { %v5056_v48 = vsel %vm4594_vm4, %v5054_v56, %v4364_v46  ;;  %v8607_v46 = vpop.permute.xlu1 %4445 }
 0x68b   :  { %4491 = vrot.lane.b32.xlu2 %v9987_v13, %s9627_s6  ;;  %v10011_v13 = vld [vmem:[#allocation19_spill] sm:$0xff] }
 0x68d   :  { %v4358_v26 = vpop.permute.xlu2 %4357 }
 0x68e   :  { %v5055_v1 = vsel %vm4591_vm3, %v8395_v44, %v4358_v26  ;;  %v1346_v44 = vsel %vm169_vm0, 0.0, %v1345_v32 }
 0x68f   :  { %v5057_v57 = vsel %vm4594_vm4, %v5055_v1, %v4366_v45  ;;  %v4452_v28 = vpop.permute.xlu0 %4451  ;;  %v10012_v1 = vld [vmem:[#allocation18_spill] sm:$0xff] }
 0x690   :  { %v5059_v4 = vsel %vm4597_vm5, %v5057_v57, %v4374_v15  ;;  %v4460_v17 = vpop.permute.xlu1 %4459 }
 0x693   :  { %4501 = vrot.lane.b32.xlu2 %v2560_v11, %s5307_s10 }
 0x695   :  { %v4372_v18 = vpop.permute.xlu2 %4371 }
 0x696   :  { %v5058_v33 = vsel %vm4597_vm5, %v5056_v48, %v4372_v18  ;;  %v10016_v48 = vld [vmem:[#allocation20_spill] sm:$0xff] }
 0x697   :  { %v5060_v41 = vsel %vm9991_vm8, %v5058_v33, %v4380_v12  ;;  %v8635_v10 = vpop.permute.xlu0 %4461 }
 0x698   :  { %v5062_v63 = vsel %vm9992_vm7, %v5060_v41, %v4388_v38  ;;  %vm9998_vm7 = vcmask 326656   ;;  %v10004_v38 = vld [vmem:[#allocation13_spill] sm:$0xff]  ;;  %v10025_v41 = vld [vmem:[#allocation31_spill] sm:$0xff] }
 0x69b   :  { %4515 = vrot.lane.b32.xlu2 %v1346_v44, %s5309_s9  ;;  %v10021_v44 = vld [vmem:[#allocation25_spill] sm:$0xff] }
 0x69d   :  { %v4382_v19 = vpop.permute.xlu2 %4381 }
 0x69e   :  { %v5061_v3 = vsel %vm9990_vm9, %v5059_v4, %v4382_v19  ;;  %vm9996_vm9 = vcmask 293888   ;;  %v10023_v4 = vld [vmem:[#allocation32_spill] sm:$0xff] }
 0x69f   :  { %v5063_v29 = vsel %vm9994_vm10, %v5061_v3, %v4390_v7  ;;  %vm9997_vm8 = vmmov %vm9996_vm9 }
 0x6a0   :  { %v5065_v39 = vsel %vm9995_vm6, %v5063_v29, %v4398_v50  ;;  %v10007_v50 = vld [vmem:[#allocation16_spill] sm:$0xff]  ;;  %vm10008_vm10 = vmmov %vm9998_vm7  ;;  %vm10014_vm6 = vcmask 195584   ;;  %v10030_v29 = vld [vmem:[#allocation35_spill] sm:$0xff] }
 0x6a3   :  { %4525 = vrot.lane.b32.xlu2 %v8390_v5, %s5291_s23  ;;  %v2595_v5 = vrot.slane %v8422_v62, 4  ;;  %v10002_v62 = vld [vmem:[#allocation10_spill] sm:$0xff] }
 0x6a4   :  { %v4586_v36 = vsel %vm4585_vm1, %v10003_v37, %v10002_v62  ;;  %v10041_v37 = vld [vmem:[#allocation83_spill] sm:$0xff] }
 0x6a5   :  { %v4396_v60 = vpop.permute.xlu2 %4395  ;;  %v2596_v25 = vsel %vm169_vm0, 0.0, %v2595_v5  ;;  %v4589_v47 = vsel %vm4588_vm2, %v4586_v36, %v10005_v53  ;;  %v10033_v5 = vld [vmem:[#allocation137_spill] sm:$0xff] }
 0x6a6   :  { %v5064_v21 = vsel %vm9993_vm11, %v5062_v63, %v4396_v60  ;;  %vm10001_vm11 = vcmask 359424   ;;  %v4592_v34 = vsel %vm4591_vm3, %v4589_v47, %v10007_v50  ;;  %v10027_v63 = vld [vmem:[#allocation65_spill] sm:$0xff]  ;;  %v10048_v50 = vld [vmem:[#allocation140_spill] sm:$0xff] }
 0x6a7   :  { %v5066_v15 = vsel %vm9997_vm8, %v5064_v21, %v4404_v14  ;;  %v10010_v14 = vld [vmem:[#allocation14_spill] sm:$0xff]  ;;  %vm10015_vm0 = vmmov %vm10001_vm11  ;;  %vm10019_vm8 = vcmask 228352   ;;  %v10044_v47 = vld [vmem:[#allocation81_spill] sm:$0xff] }
 0x6a8   :  { %v5068_v6 = vsel %vm9998_vm7, %v5066_v15, %v4412_v49  ;;  %v4595_v49 = vsel %vm4594_vm4, %v4592_v34, %v10010_v14  ;;  %vm10020_vm7 = vcmask 392192   ;;  %v10029_v21 = vld [vmem:[#allocation78_spill] sm:$0xff]  ;;  %v10052_v14 = vld [vmem:[#allocation161_spill] sm:$0xff] }
 0x6a9   :  { %v4598_v52 = vsel %vm4597_vm5, %v4595_v49, %v10012_v1 }
 0x6ab   :  { %4539 = vrot.lane.b32.xlu2 %v8411_v42, %s5294_s26  ;;  %v10000_v42 = vld [vmem:[#allocation9_spill] sm:$0xff] }
 0x6ac   :  { %v4587_v31 = vsel %vm4585_vm1, %v10000_v42, %v9999_v35  ;;  %v10037_v35 = vld [vmem:[#allocation40_spill] sm:$0xff] }
 0x6ad   :  { %v4406_v54 = vpop.permute.xlu2 %4405  ;;  %v4590_v2 = vsel %vm4588_vm2, %v4587_v31, %v10004_v38  ;;  %v10039_v31 = vld [vmem:[#allocation80_spill] sm:$0xff]  ;;  %v8683_v38 = vpop.permute.xlu0 %4475 }
 0x6ae   :  { %v5067_v45 = vsel %vm9996_vm9, %v5065_v39, %v4406_v54  ;;  %v4593_v7 = vsel %vm4591_vm3, %v4590_v2, %v10006_v30  ;;  %vm10017_vm9 = vmmov %vm10014_vm6  ;;  %v4678_v54 = vsel %vm4585_vm1, %v10030_v29, %v10029_v21  ;;  %v10031_v39 = vld [vmem:[#allocation37_spill] sm:$0xff]  ;;  %v4679_v62 = vsel %vm4585_vm1, %v10040_v27, %v10039_v31  ;;  %v10042_v2 = vld [vmem:[#allocation43_spill] sm:$0xff] }
 0x6af   :  { %v5069_v40 = vsel %vm10008_vm10, %v5067_v45, %v4414_v9  ;;  %v4596_v24 = vsel %vm4594_vm4, %v4593_v7, %v10009_v43  ;;  %v4470_v9 = vpop.permute.xlu1 %4469  ;;  %v4601_v33 = vsel %vm10017_vm9, %v4598_v52, %v10016_v48  ;;  %vm10024_vm10 = vcmask 261120   ;;  %v10046_v7 = vld [vmem:[#allocation46_spill] sm:$0xff]  ;;  %v10056_v52 = vld [vmem:[#allocation143_spill] sm:$0xff]  ;;  %v10069_v21 = vld [vmem:[#allocation56_spill] sm:$0xff] }
 0x6b0   :  { %v4599_v26 = vsel %vm4597_vm5, %v4596_v24, %v10011_v13  ;;  %v5071_v18 = vsel %vm10015_vm0, %v5069_v40, %v4422_v8  ;;  %vm10032_vm0 = vmmov %vm10028_vm13  ;;  %v4680_v15 = vsel %vm4588_vm2, %v4678_v54, %v10033_v5  ;;  %vm10035_vm9 = vcmask 326656   ;;  %v10051_v24 = vld [vmem:[#allocation199_spill] sm:$0xff]  ;;  %v10060_v48 = vld [vmem:[#allocation86_spill] sm:$0xff] }
 0x6b1   :  { %v4602_v56 = vsel %vm10014_vm6, %v4599_v26, %v10013_v20  ;;  %vm10026_vm6 = vmmov %vm10024_vm10  ;;  %v4682_v36 = vsel %vm4591_vm3, %v4680_v15, %v10041_v37  ;;  %v4740_v49 = vsel %vm4585_vm1, %v10052_v14, %v10051_v24  ;;  %v10071_v54 = vld [vmem:[#allocation87_spill] sm:$0xff]  ;;  %v10073_v15 = vld [vmem:[#allocation146_spill] sm:$0xff] }
 0x6b2   :  { %v4605_v32 = vsel %vm10019_vm8, %v4602_v56, %v10018_v58  ;;  %v10061_v58 = vld [vmem:[#allocation144_spill] sm:$0xff]  ;;  %v10079_v31 = vld [vmem:[#allocation90_spill] sm:$0xff] }
 0x6b3   :  { %4549 = vrot.lane.b32.xlu2 %v2596_v25, %s5296_s28  ;;  %v4608_v3 = vsel %vm10024_vm10, %v4605_v32, %v10023_v4  ;;  %v10034_v25 = vld [vmem:[#allocation58_spill] sm:$0xff]  ;;  %v4742_v32 = vsel %vm4588_vm2, %v4740_v49, %v10061_v58  ;;  %v10102_v58 = vld [vmem:[#allocation67_spill] sm:$0xff] }
 0x6b4   :  { %v4611_v8 = vsel %vm10028_vm13, %v4608_v3, %v10027_v63  ;;  %vm10043_vm13 = vcmask 359424   ;;  %v10065_v3 = vld [vmem:[#allocation53_spill] sm:$0xff]  ;;  %v10068_v63 = vld [vmem:[#allocation207_spill] sm:$0xff]  ;;  %v10094_v24 = vld [vmem:[#allocation222_spill] sm:$0xff] }
 0x6b5   :  { %v4420_v59 = vpop.permute.xlu2 %4419  ;;  %vm10047_vm10 = vmmov %vm10043_vm13 }
 0x6b6   :  { %v5070_v12 = vsel %vm10001_vm11, %v5068_v6, %v4420_v59  ;;  %vm10022_vm11 = vmmov %vm10019_vm8 }
 0x6b7   :  { %v4604_v19 = vsel %vm10022_vm11, %v4601_v33, %v10021_v44  ;;  %vm10036_vm8 = vmmov %vm10020_vm7  ;;  %vm10045_vm11 = vcmask 424960   ;;  %v8700_v13 = vpop.permute.xlu1 %4483  ;;  %v10062_v44 = vld [vmem:[#allocation206_spill] sm:$0xff] }
 0x6b8   :  { %v4607_v60 = vsel %vm10026_vm6, %v4604_v19, %v10025_v41  ;;  %v5072_v6 = vsel %vm10036_vm8, %v5070_v12, %v4428_v55  ;;  %v4681_v55 = vsel %vm4588_vm2, %v4679_v62, %v10044_v47  ;;  %vm10049_vm6 = vcmask 457728   ;;  %v10066_v41 = vld [vmem:[#allocation89_spill] sm:$0xff] }
 0x6b9   :  { %v4610_v45 = vsel %vm10032_vm0, %v4607_v60, %v10031_v39  ;;  %v5074_v30 = vsel %vm10045_vm11, %v5072_v6, %v4436_v22  ;;  %v4683_v34 = vsel %vm4591_vm3, %v4681_v55, %v10048_v50  ;;  %vm10053_vm0 = vcmask 490496   ;;  %v10054_v22 = vld [vmem:[#allocation47_spill] sm:$0xff]  ;;  %v10081_v62 = vld [vmem:[#allocation205_spill] sm:$0xff] }
 0x6ba   :  { %v4613_v59 = vsel %vm10035_vm9, %v4610_v45, %v10034_v25  ;;  %v4685_v33 = vsel %vm4594_vm4, %v4683_v34, %v10060_v48  ;;  %v10072_v45 = vld [vmem:[#allocation268_spill] sm:$0xff]  ;;  %v10085_v55 = vld [vmem:[#allocation149_spill] sm:$0xff] }
 0x6bb   :  { %4563 = vrot.lane.b32.xlu2 %v1382_v0, %s5298_s30  ;;  %v4616_v53 = vsel %vm10043_vm13, %v4613_v59, %v10042_v2  ;;  %v10050_v0 = vld [vmem:[#allocation84_spill] sm:$0xff]  ;;  %vm10064_vm13 = vmmov %vm10045_vm11  ;;  %v4687_v39 = vsel %vm4597_vm5, %v4685_v33, %v10071_v54  ;;  %v10091_v34 = vld [vmem:[#allocation265_spill] sm:$0xff] }
 0x6bc   :  { %v4684_v43 = vsel %vm4594_vm4, %v4682_v36, %v10050_v0  ;;  %v8745_v36 = vpop.permute.xlu0 %4485 }
 0x6bd   :  { %v4430_v11 = vpop.permute.xlu2 %4429  ;;  %v4686_v20 = vsel %vm4597_vm5, %v4684_v43, %v10056_v52  ;;  %v10093_v43 = vld [vmem:[#allocation270_spill] sm:$0xff]  ;;  %v10099_v52 = vld [vmem:[#allocation96_spill] sm:$0xff] }
 0x6be   :  { %v5073_v57 = vsel %vm10020_vm7, %v5071_v18, %v4430_v11  ;;  %vm10038_vm7 = vmmov %vm10035_vm9  ;;  %v10058_v11 = vld [vmem:[#allocation50_spill] sm:$0xff]  ;;  %v4864_v14 = vsel %vm4585_vm1, %v10094_v24, %v10093_v43  ;;  %v10139_v24 = vld [vmem:[#allocation271_spill] sm:$0xff] }
 0x6bf   :  { %v4614_v42 = vsel %vm10038_vm7, %v4611_v8, %v10037_v35  ;;  %vm10055_vm9 = vmmov %vm10036_vm8  ;;  %vm10057_vm8 = vcmask 523264   ;;  %v5075_v4 = vsel %vm10064_vm13, %v5073_v57, %v8604_v61  ;;  %v10075_v57 = vld [vmem:[#allocation145_spill] sm:$0xff]  ;;  %v10077_v35 = vld [vmem:[#allocation59_spill] sm:$0xff]  ;;  %vm10082_vm13 = vcmask 490496   ;;  %v8776_v33 = vpop.permute.xlu1 %4493 }
 0x6c0   :  { %v4619_v1 = vsel %vm10055_vm9, %v4616_v53, %v10054_v22  ;;  %vm10059_vm7 = vmmov %vm10055_vm9  ;;  %v4744_v25 = vsel %vm4591_vm3, %v4742_v32, %v10075_v57  ;;  %vm10076_vm9 = vcmask 457728   ;;  %v10083_v53 = vld [vmem:[#allocation61_spill] sm:$0xff] }
 0x6c1   :  { %v5077_v6 = vsel %vm10076_vm9, %v5075_v4, %v8607_v46  ;;  %v4746_v37 = vsel %vm4594_vm4, %v4744_v25, %v10081_v62  ;;  %v10087_v46 = vld [vmem:[#allocation212_spill] sm:$0xff]  ;;  %v10107_v4 = vld [vmem:[#allocation213_spill] sm:$0xff]  ;;  %v10120_v25 = vld [vmem:[#allocation275_spill] sm:$0xff] }
 0x6c3   :  { %4573 = vrot.lane.b32.xlu2 %v8465_v51, %s5300_s3  ;;  %v4617_v51 = vsel %vm10047_vm10, %v4614_v42, %v10046_v7  ;;  %vm10067_vm10 = vcmask 195584  }
 0x6c4   :  { %v4620_v18 = vsel %vm10059_vm7, %v4617_v51, %v10058_v11  ;;  %v4688_v60 = vsel %vm10067_vm10, %v4686_v20, %v10066_v41  ;;  %vm10080_vm7 = vcmask 228352   ;;  %v10089_v51 = vld [vmem:[#allocation92_spill] sm:$0xff]  ;;  %v10100_v20 = vld [vmem:[#allocation150_spill] sm:$0xff] }
 0x6c5   :  { %v4444_v12 = vpop.permute.xlu2 %4443  ;;  %v4690_v27 = vsel %vm10080_vm7, %v4688_v60, %v10079_v31  ;;  %v4748_v11 = vsel %vm4597_vm5, %v4746_v37, %v10100_v20  ;;  %v10110_v60 = vld [vmem:[#allocation93_spill] sm:$0xff]  ;;  %v10126_v37 = vld [vmem:[#allocation211_spill] sm:$0xff] }
 0x6c6   :  { %v5076_v40 = vsel %vm10049_vm6, %v5074_v30, %v4444_v12  ;;  %vm10070_vm6 = vmmov %vm10045_vm11 }
 0x6c7   :  { %v5078_v26 = vsel %vm10053_vm0, %v5076_v40, %v4452_v28  ;;  %v10063_v28 = vld [vmem:[#allocation157_spill] sm:$0xff]  ;;  %v4623_v29 = vsel %vm10070_vm6, %v4620_v18, %v10069_v21  ;;  %vm10074_vm0 = vmmov %vm10067_vm10  ;;  %vm10086_vm10 = vcmask 261120   ;;  %vm10088_vm6 = vcmask 523264   ;;  %v10092_v40 = vld [vmem:[#allocation227_spill] sm:$0xff] }
 0x6c8   :  { %v8708_v56 = vsel %vm10057_vm8, %v5078_v26, %v4460_v17  ;;  %v4802_v19 = vsel %vm4585_vm1, %v10063_v28, %v10062_v44  ;;  %v4622_v17 = vsel %vm10045_vm11, %v4619_v1, %v10065_v3  ;;  %v4689_v61 = vsel %vm10074_vm0, %v4687_v39, %v10073_v15  ;;  %vm10078_vm8 = vmmov %vm10076_vm9  ;;  %v10096_v26 = vld [vmem:[#allocation64_spill] sm:$0xff]  ;;  %v10098_v1 = vld [vmem:[#allocation142_spill] sm:$0xff] }
 0x6c9   :  { %v4804_v8 = vsel %vm4588_vm2, %v4802_v19, %v10068_v63  ;;  %v4625_v42 = vsel %vm10078_vm8, %v4622_v17, %v10077_v35  ;;  %vm10084_vm11 = vmmov %vm10078_vm8  ;;  %v4692_v12 = vsel %vm10086_vm10, %v4690_v27, %v10085_v55  ;;  %v4803_v0 = vsel %vm4585_vm1, %v10092_v40, %v10091_v34  ;;  %v10101_v18 = vld [vmem:[#allocation323_spill] sm:$0xff]  ;;  %v10106_v28 = vld [vmem:[#allocation202_spill] sm:$0xff] }
 0x6ca   :  { %v4806_v5 = vsel %vm4591_vm3, %v4804_v8, %v10072_v45  ;;  %v4626_v47 = vsel %vm10084_vm11, %v4623_v29, %v10083_v53  ;;  %vm10090_vm0 = vmmov %vm10080_vm7  ;;  %vm10095_vm9 = vcmask 556032   ;;  %v4866_v48 = vsel %vm4588_vm2, %v4864_v14, %v10101_v18  ;;  %v10108_v17 = vld [vmem:[#allocation70_spill] sm:$0xff]  ;;  %v10111_v8 = vld [vmem:[#allocation209_spill] sm:$0xff] }
 0x6cb   :  { %v4808_v30 = vsel %vm4594_vm4, %v4806_v5, %v10087_v46  ;;  %v4691_v50 = vsel %vm10090_vm0, %v4689_v61, %v10089_v51  ;;  %vm10097_vm8 = vmmov %vm10082_vm13  ;;  %v4805_v21 = vsel %vm4588_vm2, %v4803_v0, %v10111_v8  ;;  %v10112_v29 = vld [vmem:[#allocation274_spill] sm:$0xff]  ;;  %v10114_v39 = vld [vmem:[#allocation73_spill] sm:$0xff] }
 0x6cc   :  { %v4628_v22 = vsel %vm10097_vm8, %v4625_v42, %v10096_v26  ;;  %vm10103_vm7 = vmmov %vm10097_vm8  ;;  %v4810_v3 = vsel %vm4597_vm5, %v4808_v30, %v10107_v4  ;;  %v4693_v63 = vsel %vm10086_vm10, %v4691_v50, %v10110_v60  ;;  %v10116_v5 = vld [vmem:[#allocation152_spill] sm:$0xff]  ;;  %v10118_v61 = vld [vmem:[#allocation151_spill] sm:$0xff] }
 0x6cd   :  { %v4454_v59 = vpop.permute.xlu2 %4453  ;;  %v4629_v32 = vsel %vm10103_vm7, %v4626_v47, %v10102_v58  ;;  %vm10109_vm11 = vmmov %vm10088_vm6  ;;  %vm10122_vm7 = vcmask 556032   ;;  %v10123_v42 = vld [vmem:[#allocation97_spill] sm:$0xff]  ;;  %v10125_v27 = vld [vmem:[#allocation147_spill] sm:$0xff] }
 0x6ce   :  { %v5079_v2 = vsel %vm10082_vm13, %v5077_v6, %v4454_v59  ;;  %vm10105_vm13 = vcmask 293888   ;;  %v4631_v41 = vsel %vm10109_vm11, %v4628_v22, %v10108_v17  ;;  %vm10115_vm0 = vmmov %vm10109_vm11  ;;  %v4868_v59 = vsel %vm4591_vm3, %v4866_v48, %v10120_v25  ;;  %v10121_v6 = vld [vmem:[#allocation76_spill] sm:$0xff]  ;;  %v10128_v47 = vld [vmem:[#allocation79_spill] sm:$0xff] }
 0x6cf   :  { %v5081_v7 = vsel %vm10088_vm6, %v5079_v2, %v8635_v10  ;;  %v4741_v10 = vsel %vm4585_vm1, %v10099_v52, %v10098_v1  ;;  %vm10113_vm6 = vcmask 195584   ;;  %v4632_v45 = vsel %vm10115_vm0, %v4629_v32, %v10114_v39  ;;  %vm10129_vm10 = vmmov %vm10122_vm7  ;;  %v10132_v30 = vld [vmem:[#allocation210_spill] sm:$0xff]  ;;  %v10137_v0 = vld [vmem:[#allocation99_spill] sm:$0xff] }
 0x6d0   :  { %v8765_v49 = vsel %vm10095_vm9, %v5081_v7, %v4470_v9  ;;  %v10104_v9 = vld [vmem:[#allocation95_spill] sm:$0xff]  ;;  %v4743_v19 = vsel %vm4588_vm2, %v4741_v10, %v10106_v28  ;;  %v4812_v54 = vsel %vm10113_vm6, %v4810_v3, %v10112_v29  ;;  %vm10117_vm9 = vmmov %vm10105_vm13  ;;  %v4634_v35 = vsel %vm10122_vm7, %v4631_v41, %v10121_v6  ;;  %v10133_v51 = vld [vmem:[#allocation218_spill] sm:$0xff] }
 0x6d1   :  { %v4694_v44 = vsel %vm10105_vm13, %v4692_v12, %v10104_v9  ;;  %v4695_v15 = vsel %vm10117_vm9, %v4693_v63, %v10116_v5  ;;  %vm10119_vm8 = vmmov %vm10113_vm6  ;;  %vm10124_vm13 = vcmask 326656   ;;  %v4745_v62 = vsel %vm4591_vm3, %v4743_v19, %v10125_v27  ;;  %v10130_v12 = vld [vmem:[#allocation155_spill] sm:$0xff]  ;;  %v10135_v34 = vld [vmem:[#allocation82_spill] sm:$0xff]  ;;  %v8837_v9 = vpop.permute.xlu0 %4499 }
 0x6d2   :  { %v4750_v57 = vsel %vm10119_vm8, %v4748_v11, %v10118_v61  ;;  %v4696_v31 = vsel %vm10124_vm13, %v4694_v44, %v10123_v42  ;;  %vm10127_vm11 = vcmask 228352   ;;  %v4635_v55 = vsel %vm10129_vm10, %v4632_v45, %v10128_v47  ;;  %vm10138_vm8 = vmmov %vm10124_vm13  ;;  %v10140_v26 = vld [vmem:[#allocation276_spill] sm:$0xff]  ;;  %v10145_v18 = vld [vmem:[#allocation223_spill] sm:$0xff] }
 0x6d3   :  { %v4752_v2 = vsel %vm10127_vm11, %v4750_v57, %v10126_v37  ;;  %vm10131_vm6 = vcmask 359424   ;;  %v4807_v7 = vsel %vm4591_vm3, %v4805_v21, %v10132_v30  ;;  %vm10134_vm0 = vmmov %vm10127_vm11  ;;  %vm10136_vm9 = vcmask 588800   ;;  %v10141_v1 = vld [vmem:[#allocation148_spill] sm:$0xff]  ;;  %v10146_v58 = vld [vmem:[#allocation33_spill] sm:$0xff] }
 0x6d4   :  { %v4698_v46 = vsel %vm10131_vm6, %v4696_v31, %v10130_v12  ;;  %v4814_v50 = vsel %vm10134_vm0, %v4812_v54, %v10133_v51  ;;  %v4637_v40 = vsel %vm10136_vm9, %v4634_v35, %v10135_v34  ;;  %v4697_v43 = vsel %vm10138_vm8, %v4695_v15, %v10137_v0  ;;  %v10142_v10 = vld [vmem:[#allocation156_spill] sm:$0xff]  ;;  %v10147_v44 = vld [vmem:[#allocation102_spill] sm:$0xff]  ;;  %v10150_v3 = vld [vmem:[#allocation273_spill] sm:$0xff]  ;;  %v8863_v31 = vpop.permute.xlu1 %4507 }
 0x6d5   :  { %v8810_v53 = vpop.permute.xlu2 %4467  ;;  %v4809_v14 = vsel %vm4594_vm4, %v4807_v7, %v10139_v24  ;;  %v4870_v22 = vsel %vm4594_vm4, %v4868_v59, %v10140_v26  ;;  %v4747_v52 = vsel %vm4594_vm4, %v4745_v62, %v10141_v1  ;;  %vm10143_vm7 = vcmask 261120   ;;  %v10144_v11 = vld [vmem:[#allocation272_spill] sm:$0xff]  ;;  %v10151_v41 = vld [vmem:[#allocation219_spill] sm:$0xff]  ;;  %v10153_v63 = vld [vmem:[#allocation85_spill] sm:$0xff] }
 0x6d6   :  { %v4754_v20 = vsel %vm10143_vm7, %v4752_v2, %v10142_v10  ;;  %v4865_v48 = vsel %vm4585_vm1, %v10145_v18, %v10144_v11  ;;  %v4872_v32 = vsel %vm4597_vm5, %v4870_v22, %v10146_v58  ;;  %vm10148_vm13 = vcmask 392192   ;;  %v10149_v19 = vld [vmem:[#allocation208_spill] sm:$0xff]  ;;  %vm10152_vm11 = vmmov %vm10143_vm7  ;;  %v10155_v21 = vld [vmem:[#allocation215_spill] sm:$0xff] }
 0x6d7   :  { %v4700_v28 = vsel %vm10148_vm13, %v4698_v46, %v10147_v44  ;;  %v4749_v4 = vsel %vm4597_vm5, %v4747_v52, %v10149_v19  ;;  %v4867_v17 = vsel %vm4588_vm2, %v4865_v48, %v10150_v3  ;;  %v4816_v60 = vsel %vm10152_vm11, %v4814_v50, %v10151_v41  ;;  %vm10154_vm10 = vmmov %vm10136_vm9  ;;  %v10156_v54 = vld [vmem:[#allocation280_spill] sm:$0xff]  ;;  %v10158_v45 = vld [vmem:[#allocation326_spill] sm:$0xff] }
 0x6d8   :  { %v4638_v8 = vsel %vm10154_vm10, %v4635_v55, %v10153_v63  ;;  %v4811_v29 = vsel %vm4597_vm5, %v4809_v14, %v10155_v21  ;;  %vm10157_vm1 = vcmask 293888   ;;  %v4869_v5 = vsel %vm4591_vm3, %v4867_v17, %v10158_v45  ;;  %v10159_v15 = vld [vmem:[#allocation88_spill] sm:$0xff]  ;;  %v10163_v59 = vld [vmem:[#allocation158_spill] sm:$0xff]  ;;  %v10165_v35 = vld [vmem:[#allocation281_spill] sm:$0xff] }
 0x6d9   :  { %v4818_v39 = vsel %vm10157_vm1, %v4816_v60, %v10156_v54  ;;  %vm10160_vm6 = vcmask 621568   ;;  %v10161_v57 = vld [vmem:[#allocation100_spill] sm:$0xff]  ;;  %vm10162_vm2 = vcmask 359424   ;;  %vm10164_vm0 = vmmov %vm10157_vm1  ;;  %vm10166_vm9 = vcmask 195584   ;;  %v10167_v27 = vld [vmem:[#allocation159_spill] sm:$0xff] }
 0x6da   :  { %v4640_v61 = vsel %vm10160_vm6, %v4637_v40, %v10159_v15  ;;  %v4699_v25 = vsel %vm10162_vm2, %v4697_v43, %v10161_v57  ;;  %v4756_v6 = vsel %vm10164_vm0, %v4754_v20, %v10163_v59  ;;  %v4874_v42 = vsel %vm10166_vm9, %v4872_v32, %v10165_v35  ;;  %vm10168_vm8 = vmmov %vm10148_vm13  ;;  %v10169_v37 = vld [vmem:[#allocation103_spill] sm:$0xff]  ;;  %v10171_v47 = vld [vmem:[#allocation153_spill] sm:$0xff] }
 0x6db   :  { %v4701_v62 = vsel %vm10168_vm8, %v4699_v25, %v10167_v27  ;;  %vm10170_vm7 = vcmask 424960   ;;  %vm10172_vm3 = vmmov %vm10166_vm9  ;;  %v10173_v12 = vld [vmem:[#allocation217_spill] sm:$0xff]  ;;  %vm10174_vm13 = vcmask 326656   ;;  %v10175_v30 = vld [vmem:[#allocation163_spill] sm:$0xff]  ;;  %vm10176_vm11 = vcmask 457728  }
 0x6dc   :  { %v4702_v2 = vsel %vm10170_vm7, %v4700_v28, %v10169_v37  ;;  %v4751_v55 = vsel %vm10172_vm3, %v4749_v4, %v10171_v47  ;;  %v4758_v46 = vsel %vm10174_vm13, %v4756_v6, %v10173_v12  ;;  %v10177_v51 = vld [vmem:[#allocation216_spill] sm:$0xff]  ;;  %vm10178_vm10 = vmmov %vm10172_vm3  ;;  %v10179_v34 = vld [vmem:[#allocation226_spill] sm:$0xff]  ;;  %vm10185_vm2 = vcmask 228352   ;;  %v8923_v47 = vpop.permute.xlu0 %4509 }
 0x6dd   :  { %v4704_v7 = vsel %vm10176_vm11, %v4702_v2, %v10175_v30  ;;  %v4813_v50 = vsel %vm10178_vm10, %v4811_v29, %v10177_v51  ;;  %vm10180_vm1 = vmmov %vm10174_vm13  ;;  %v10181_v0 = vld [vmem:[#allocation278_spill] sm:$0xff]  ;;  %v8881_v24 = vpop.permute.xlu2 %4477  ;;  %v10182_v14 = vld [vmem:[#allocation91_spill] sm:$0xff]  ;;  %vm10197_vm3 = vcmask 490496   ;;  %vm10204_vm10 = vcmask 687104  }
 0x6de   :  { %v4820_v40 = vsel %vm10180_vm1, %v4818_v39, %v10179_v34  ;;  %v4871_v43 = vsel %vm4594_vm4, %v4869_v5, %v10181_v0  ;;  %v4641_v26 = vsel %vm10160_vm6, %v4638_v8, %v10182_v14  ;;  %v10183_v22 = vld [vmem:[#allocation94_spill] sm:$0xff]  ;;  %v10184_v52 = vld [vmem:[#allocation277_spill] sm:$0xff]  ;;  %vm10187_vm0 = vmmov %vm10185_vm2  ;;  %vm10193_vm4 = vcmask 359424  }
 0x6df   :  { %v4643_v1 = vsel %vm4642_vm15, %v4640_v61, %v10183_v22  ;;  %v4815_v10 = vsel %vm10185_vm2, %v4813_v50, %v10184_v52  ;;  %v10186_v20 = vld [vmem:[#allocation282_spill] sm:$0xff]  ;;  %v10188_v18 = vld [vmem:[#allocation105_spill] sm:$0xff]  ;;  %vm10189_vm9 = vmmov %vm10170_vm7  ;;  %vm10195_vm7 = vcmask 261120   ;;  %vm10208_vm6 = vcmask 392192  }
 0x6e0   :  { %v4876_v11 = vsel %vm10187_vm0, %v4874_v42, %v10186_v20  ;;  %v4703_v48 = vsel %vm10189_vm9, %v4701_v62, %v10188_v18  ;;  %v10190_v58 = vld [vmem:[#allocation154_spill] sm:$0xff]  ;;  %vm10191_vm8 = vmmov %vm10187_vm0  ;;  %v10192_v44 = vld [vmem:[#allocation164_spill] sm:$0xff]  ;;  %vm10210_vm2 = vcmask 195584   ;;  %vm10212_vm0 = vcmask 719872  }
 0x6e1   :  { %v4753_v32 = vsel %vm10191_vm8, %v4751_v55, %v10190_v58  ;;  %v4760_v28 = vsel %vm10193_vm4, %v4758_v46, %v10192_v44  ;;  %v10194_v19 = vld [vmem:[#allocation328_spill] sm:$0xff]  ;;  %v10198_v41 = vld [vmem:[#allocation214_spill] sm:$0xff]  ;;  %vm10199_vm13 = vmmov %vm10195_vm7  ;;  %vm10214_vm9 = vcmask 457728   ;;  %vm10218_vm8 = vcmask 293888  }
 0x6e2   :  { %v4878_v4 = vsel %vm10195_vm7, %v4876_v11, %v10194_v19  ;;  %v10196_v3 = vld [vmem:[#allocation108_spill] sm:$0xff]  ;;  %v4755_v60 = vsel %vm10199_vm13, %v4753_v32, %v10198_v41  ;;  %vm10201_vm11 = vmmov %vm10193_vm4  ;;  %v10202_v21 = vld [vmem:[#allocation279_spill] sm:$0xff]  ;;  %vm10226_vm13 = vcmask 424960   ;;  %v8949_v19 = vpop.permute.xlu1 %4517 }
 0x6e3   :  { %v4706_v17 = vsel %vm10197_vm3, %v4704_v7, %v10196_v3  ;;  %v10200_v63 = vld [vmem:[#allocation228_spill] sm:$0xff]  ;;  %v4873_v29 = vsel %vm4597_vm5, %v4871_v43, %v10202_v21  ;;  %v10203_v54 = vld [vmem:[#allocation101_spill] sm:$0xff]  ;;  %vm10206_vm1 = vmmov %vm10195_vm7  ;;  %vm10222_vm7 = vcmask 523264  }
 0x6e4   :  { %v4822_v8 = vsel %vm10201_vm11, %v4820_v40, %v10200_v63  ;;  %v4646_v39 = vsel %vm10204_vm10, %v4643_v1, %v10203_v54  ;;  %v10205_v45 = vld [vmem:[#allocation221_spill] sm:$0xff]  ;;  %v10207_v15 = vld [vmem:[#allocation286_spill] sm:$0xff]  ;;  %v10209_v57 = vld [vmem:[#allocation27_spill] sm:$0xff]  ;;  %vm10228_vm11 = vcmask 556032  }
 0x6e5   :  { %v4817_v5 = vsel %vm10206_vm1, %v4815_v10, %v10205_v45  ;;  %v4824_v61 = vsel %vm10208_vm6, %v4822_v8, %v10207_v15  ;;  %v4875_v25 = vsel %vm10210_vm2, %v4873_v29, %v10209_v57  ;;  %v10211_v59 = vld [vmem:[#allocation107_spill] sm:$0xff]  ;;  %v10213_v35 = vld [vmem:[#allocation106_spill] sm:$0xff]  ;;  %v10215_v27 = vld [vmem:[#allocation165_spill] sm:$0xff]  ;;  %vm10237_vm2 = vcmask 752640  }
 0x6e6   :  { %v4649_v6 = vsel %vm10212_vm0, %v4646_v39, %v10211_v59  ;;  %v4705_v42 = vsel %vm10214_vm9, %v4703_v48, %v10213_v35  ;;  %vm10216_vm5 = vmmov %vm10208_vm6  ;;  %v10217_v37 = vld [vmem:[#allocation23_spill] sm:$0xff]  ;;  %v10219_v55 = vld [vmem:[#allocation166_spill] sm:$0xff]  ;;  %vm10234_vm6 = vcmask 228352   ;;  %vm10239_vm0 = vcmask 326656  }
 0x6e7   :  { %v4762_v62 = vsel %vm10216_vm5, %v4760_v28, %v10215_v27  ;;  %v4880_v2 = vsel %vm10218_vm8, %v4878_v4, %v10217_v37  ;;  %vm10220_vm4 = vmmov %vm10197_vm3  ;;  %v10221_v46 = vld [vmem:[#allocation109_spill] sm:$0xff]  ;;  %v10223_v7 = vld [vmem:[#allocation160_spill] sm:$0xff]  ;;  %v8951_v4 = vpop.permute.xlu2 %4491 }
 0x6e8   :  { %v4707_v12 = vsel %vm10220_vm4, %v4705_v42, %v10219_v55  ;;  %v4708_v30 = vsel %vm10222_vm7, %v4706_v17, %v10221_v46  ;;  %vm10224_vm3 = vmmov %vm10218_vm8  ;;  %v10225_v50 = vld [vmem:[#allocation225_spill] sm:$0xff]  ;;  %v10229_v43 = vld [vmem:[#allocation224_spill] sm:$0xff]  ;;  %vm10247_vm4 = vcmask 457728  }
 0x6e9   :  { %v4757_v51 = vsel %vm10224_vm3, %v4755_v60, %v10223_v7  ;;  %v4764_v34 = vsel %vm10226_vm13, %v4762_v62, %v10225_v50  ;;  %v10227_v40 = vld [vmem:[#allocation169_spill] sm:$0xff]  ;;  %vm10230_vm10 = vmmov %vm10224_vm3  ;;  %v10233_v52 = vld [vmem:[#allocation284_spill] sm:$0xff]  ;;  %vm10251_vm3 = vcmask 588800  }
 0x6ea   :  { %v4710_v0 = vsel %vm10228_vm11, %v4708_v30, %v10227_v40  ;;  %v4819_v14 = vsel %vm10230_vm10, %v4817_v5, %v10229_v43  ;;  %v10231_v22 = vld [vmem:[#allocation233_spill] sm:$0xff]  ;;  %vm10232_vm1 = vmmov %vm10226_vm13  ;;  %v4877_v10 = vsel %vm10234_vm6, %v4875_v25, %v10233_v52  ;;  %v10235_v20 = vld [vmem:[#allocation98_spill] sm:$0xff]  ;;  %vm10257_vm10 = vcmask 261120  }
 0x6eb   :  { %v4826_v1 = vsel %vm10232_vm1, %v4824_v61, %v10231_v22  ;;  %v4644_v11 = vsel %vm4642_vm15, %v4641_v26, %v10235_v20  ;;  %v10236_v18 = vld [vmem:[#allocation113_spill] sm:$0xff]  ;;  %v10238_v58 = vld [vmem:[#allocation283_spill] sm:$0xff]  ;;  %vm10241_vm9 = vmmov %vm10239_vm0  ;;  %vm10259_vm1 = vcmask 687104  }
 0x6ec   :  { %v4652_v48 = vsel %vm10237_vm2, %v4649_v6, %v10236_v18  ;;  %v4821_v32 = vsel %vm10239_vm0, %v4819_v14, %v10238_v58  ;;  %v10240_v44 = vld [vmem:[#allocation287_spill] sm:$0xff]  ;;  %vm10243_vm5 = vmmov %vm10222_vm7  ;;  %v10244_v41 = vld [vmem:[#allocation162_spill] sm:$0xff]  ;;  %vm10249_vm7 = vcmask 359424   ;;  %vm10263_vm2 = vcmask 490496  }
 0x6ed   :  { %v4882_v28 = vsel %vm10241_vm9, %v4880_v2, %v10240_v44  ;;  %v10242_v3 = vld [vmem:[#allocation111_spill] sm:$0xff]  ;;  %vm10245_vm8 = vmmov %vm10239_vm0  ;;  %v10246_v26 = vld [vmem:[#allocation170_spill] sm:$0xff]  ;;  %vm10265_vm0 = vcmask 293888   ;;  %vm10267_vm9 = vcmask 785408  }
 0x6ee   :  { %v4709_v17 = vsel %vm10243_vm5, %v4707_v12, %v10242_v3  ;;  %v4759_v60 = vsel %vm10245_vm8, %v4757_v51, %v10244_v41  ;;  %v4766_v63 = vsel %vm10247_vm4, %v4764_v34, %v10246_v26  ;;  %v10248_v8 = vld [vmem:[#allocation330_spill] sm:$0xff]  ;;  %v10252_v39 = vld [vmem:[#allocation220_spill] sm:$0xff]  ;;  %vm10253_vm13 = vmmov %vm10249_vm7  ;;  %vm10269_vm5 = vcmask 556032  }
 0x6ef   :  { %v4884_v21 = vsel %vm10249_vm7, %v4882_v28, %v10248_v8  ;;  %v10250_v29 = vld [vmem:[#allocation114_spill] sm:$0xff]  ;;  %v4761_v45 = vsel %vm10253_vm13, %v4759_v60, %v10252_v39  ;;  %vm10255_vm11 = vmmov %vm10247_vm4  ;;  %v10256_v61 = vld [vmem:[#allocation285_spill] sm:$0xff]  ;;  %vm10273_vm4 = vcmask 392192  }
 0x6f0   :  { %v4712_v54 = vsel %vm10251_vm3, %v4710_v0, %v10250_v29  ;;  %v10254_v5 = vld [vmem:[#allocation234_spill] sm:$0xff]  ;;  %v4879_v57 = vsel %vm10257_vm10, %v4877_v10, %v10256_v61  ;;  %v10258_v25 = vld [vmem:[#allocation104_spill] sm:$0xff]  ;;  %vm10261_vm6 = vmmov %vm10249_vm7 }
 0x6f1   :  { %v4828_v15 = vsel %vm10255_vm11, %v4826_v1, %v10254_v5  ;;  %v4647_v59 = vsel %vm10259_vm1, %v4644_v11, %v10258_v25  ;;  %v10260_v6 = vld [vmem:[#allocation230_spill] sm:$0xff]  ;;  %v10262_v42 = vld [vmem:[#allocation291_spill] sm:$0xff]  ;;  %v10264_v62 = vld [vmem:[#allocation329_spill] sm:$0xff]  ;;  %vm10281_vm11 = vcmask 523264   ;;  %v9019_v25 = vpop.permute.xlu2 %4501 }
 0x6f2   :  { %v4823_v35 = vsel %vm10261_vm6, %v4821_v32, %v10260_v6  ;;  %v4830_v27 = vsel %vm10263_vm2, %v4828_v15, %v10262_v42  ;;  %v4881_v37 = vsel %vm10265_vm0, %v4879_v57, %v10264_v62  ;;  %v10266_v2 = vld [vmem:[#allocation60_spill] sm:$0xff]  ;;  %v10270_v30 = vld [vmem:[#allocation171_spill] sm:$0xff]  ;;  %vm10271_vm8 = vmmov %vm10263_vm2  ;;  %vm10288_vm6 = vcmask 326656  }
 0x6f3   :  { %v4655_v55 = vsel %vm10267_vm9, %v4652_v48, %v10266_v2  ;;  %v10268_v12 = vld [vmem:[#allocation112_spill] sm:$0xff]  ;;  %v4768_v7 = vsel %vm10271_vm8, %v4766_v63, %v10270_v30  ;;  %vm10275_vm7 = vmmov %vm10251_vm3  ;;  %v10276_v0 = vld [vmem:[#allocation115_spill] sm:$0xff]  ;;  %vm10277_vm3 = vcmask 621568   ;;  %vm10290_vm2 = vcmask 719872  }
 0x6f4   :  { %v4711_v46 = vsel %vm10269_vm5, %v4709_v17, %v10268_v12  ;;  %v10272_v51 = vld [vmem:[#allocation292_spill] sm:$0xff]  ;;  %v4714_v43 = vsel %vm10277_vm3, %v4712_v54, %v10276_v0  ;;  %v10278_v14 = vld [vmem:[#allocation167_spill] sm:$0xff]  ;;  %vm10279_vm13 = vmmov %vm10273_vm4  ;;  %vm10292_vm0 = vcmask 818176   ;;  %vm10294_vm9 = vcmask 424960  }
 0x6f5   :  { %v4886_v50 = vsel %vm10273_vm4, %v4884_v21, %v10272_v51  ;;  %v10274_v34 = vld [vmem:[#allocation172_spill] sm:$0xff]  ;;  %v4763_v22 = vsel %vm10279_vm13, %v4761_v45, %v10278_v14  ;;  %v10282_v10 = vld [vmem:[#allocation175_spill] sm:$0xff]  ;;  %vm10284_vm10 = vmmov %vm10273_vm4  ;;  %v9009_v21 = vpop.permute.xlu0 %4523  ;;  %vm10306_vm13 = vcmask 687104  }
 0x6f6   :  { %v4713_v40 = vsel %vm10275_vm7, %v4711_v46, %v10274_v34  ;;  %v10280_v1 = vld [vmem:[#allocation232_spill] sm:$0xff]  ;;  %v4716_v20 = vsel %vm4642_vm15, %v4714_v43, %v10282_v10  ;;  %v10283_v11 = vld [vmem:[#allocation231_spill] sm:$0xff]  ;;  %vm10286_vm1 = vmmov %vm10281_vm11  ;;  %vm10302_vm7 = vcmask 556032  }
 0x6f7   :  { %v4770_v52 = vsel %vm10281_vm11, %v4768_v7, %v10280_v1  ;;  %v4825_v18 = vsel %vm10284_vm10, %v4823_v35, %v10283_v11  ;;  %v10285_v48 = vld [vmem:[#allocation239_spill] sm:$0xff]  ;;  %v10287_v32 = vld [vmem:[#allocation289_spill] sm:$0xff]  ;;  %v10289_v28 = vld [vmem:[#allocation110_spill] sm:$0xff] }
 0x6f8   :  { %v4832_v58 = vsel %vm10286_vm1, %v4830_v27, %v10285_v48  ;;  %v4883_v44 = vsel %vm10288_vm6, %v4881_v37, %v10287_v32  ;;  %v4650_v3 = vsel %vm10290_vm2, %v4647_v59, %v10289_v28  ;;  %v10291_v17 = vld [vmem:[#allocation63_spill] sm:$0xff]  ;;  %v10293_v60 = vld [vmem:[#allocation288_spill] sm:$0xff]  ;;  %v10295_v63 = vld [vmem:[#allocation293_spill] sm:$0xff]  ;;  %vm10312_vm1 = vcmask 359424  }
 0x6f9   :  { %v4658_v41 = vsel %vm10292_vm0, %v4655_v55, %v10291_v17  ;;  %v4827_v26 = vsel %vm10294_vm9, %v4825_v18, %v10293_v60  ;;  %vm10296_vm5 = vmmov %vm10294_vm9  ;;  %v10297_v29 = vld [vmem:[#allocation117_spill] sm:$0xff]  ;;  %v10299_v39 = vld [vmem:[#allocation168_spill] sm:$0xff]  ;;  %vm10314_vm6 = vcmask 752640   ;;  %vm10318_vm0 = vcmask 588800  }
 0x6fa   :  { %v4888_v8 = vsel %vm10296_vm5, %v4886_v50, %v10295_v63  ;;  %vm10298_vm8 = vmmov %vm10277_vm3  ;;  %v10301_v5 = vld [vmem:[#allocation176_spill] sm:$0xff]  ;;  %v10303_v61 = vld [vmem:[#allocation30_spill] sm:$0xff]  ;;  %vm10304_vm3 = vcmask 457728   ;;  %vm10320_vm9 = vcmask 392192  }
 0x6fb   :  { %v4715_v54 = vsel %vm10298_vm8, %v4713_v40, %v10297_v29  ;;  %vm10300_vm4 = vmmov %vm10296_vm5  ;;  %v4772_v15 = vsel %vm10302_vm7, %v4770_v52, %v10301_v5  ;;  %v4890_v57 = vsel %vm10304_vm3, %v4888_v8, %v10303_v61  ;;  %v10305_v59 = vld [vmem:[#allocation120_spill] sm:$0xff]  ;;  %v10307_v35 = vld [vmem:[#allocation229_spill] sm:$0xff]  ;;  %v9037_v40 = vpop.permute.xlu1 %4531  ;;  %vm10322_vm5 = vcmask 785408  }
 0x6fc   :  { %v4765_v45 = vsel %vm10300_vm4, %v4763_v22, %v10299_v39  ;;  %v4718_v6 = vsel %vm10306_vm13, %v4716_v20, %v10305_v59  ;;  %vm10308_vm11 = vmmov %vm10304_vm3  ;;  %v10309_v27 = vld [vmem:[#allocation240_spill] sm:$0xff]  ;;  %v10311_v37 = vld [vmem:[#allocation290_spill] sm:$0xff]  ;;  %vm10327_vm4 = vcmask 490496  }
 0x6fd   :  { %v4767_v42 = vsel %vm10308_vm11, %v4765_v45, %v10307_v35  ;;  %vm10310_vm10 = vmmov %vm10302_vm7  ;;  %v4885_v2 = vsel %vm10312_vm1, %v4883_v44, %v10311_v37  ;;  %v10313_v55 = vld [vmem:[#allocation116_spill] sm:$0xff]  ;;  %v10317_v7 = vld [vmem:[#allocation297_spill] sm:$0xff]  ;;  %vm10335_vm11 = vcmask 621568  }
 0x6fe   :  { %v4834_v62 = vsel %vm10310_vm10, %v4832_v58, %v10309_v27  ;;  %v4653_v12 = vsel %vm10314_vm6, %v4650_v3, %v10313_v55  ;;  %v10315_v46 = vld [vmem:[#allocation236_spill] sm:$0xff]  ;;  %vm10316_vm2 = vmmov %vm10304_vm3  ;;  %v10319_v50 = vld [vmem:[#allocation38_spill] sm:$0xff]  ;;  %vm10331_vm3 = vcmask 719872  }
 0x6ff   :  { %v4829_v30 = vsel %vm10316_vm2, %v4827_v26, %v10315_v46  ;;  %v4836_v51 = vsel %vm10318_vm0, %v4834_v62, %v10317_v7  ;;  %v4887_v34 = vsel %vm10320_vm9, %v4885_v2, %v10319_v50  ;;  %v10321_v0 = vld [vmem:[#allocation119_spill] sm:$0xff]  ;;  %v10323_v14 = vld [vmem:[#allocation118_spill] sm:$0xff]  ;;  %v10324_v1 = vld [vmem:[#allocation177_spill] sm:$0xff]  ;;  %vm10343_vm2 = vcmask 424960  }
 0x700   :  { %v4656_v43 = vsel %vm10322_vm5, %v4653_v12, %v10321_v0  ;;  %v4717_v22 = vsel %vm4642_vm15, %v4715_v54, %v10323_v14  ;;  %vm10325_vm8 = vmmov %vm10318_vm0  ;;  %v10326_v10 = vld [vmem:[#allocation298_spill] sm:$0xff]  ;;  %v10330_v48 = vld [vmem:[#allocation121_spill] sm:$0xff]  ;;  %vm10345_vm0 = vcmask 818176   ;;  %vm10347_vm9 = vcmask 850944   ;;  %v9087_v14 = vpop.permute.xlu2 %4515 }
 0x701   :  { %v4774_v52 = vsel %vm10325_vm8, %v4772_v15, %v10324_v1  ;;  %v4892_v20 = vsel %vm10327_vm4, %v4890_v57, %v10326_v10  ;;  %v10328_v11 = vld [vmem:[#allocation178_spill] sm:$0xff]  ;;  %vm10329_vm7 = vmmov %vm10306_vm13  ;;  %v4720_v58 = vsel %vm10331_vm3, %v4718_v6, %v10330_v48  ;;  %v10332_v32 = vld [vmem:[#allocation173_spill] sm:$0xff]  ;;  %vm10349_vm5 = vcmask 523264  }
 0x702   :  { %v4719_v18 = vsel %vm10329_vm7, %v4717_v22, %v10328_v11  ;;  %vm10333_vm13 = vmmov %vm10327_vm4  ;;  %v10334_v28 = vld [vmem:[#allocation238_spill] sm:$0xff]  ;;  %v10336_v17 = vld [vmem:[#allocation181_spill] sm:$0xff] }
 0x703   :  { %v4769_v44 = vsel %vm10333_vm13, %v4767_v42, %v10332_v32  ;;  %v4776_v3 = vsel %vm10335_vm11, %v4774_v52, %v10334_v28  ;;  %vm10337_vm10 = vmmov %vm10314_vm6  ;;  %v10338_v26 = vld [vmem:[#allocation237_spill] sm:$0xff]  ;;  %v10342_v54 = vld [vmem:[#allocation295_spill] sm:$0xff]  ;;  %vm10360_vm13 = vcmask 785408  }
 0x704   :  { %v4722_v60 = vsel %vm10337_vm10, %v4720_v58, %v10336_v17  ;;  %vm10339_vm1 = vmmov %vm10327_vm4  ;;  %v10340_v8 = vld [vmem:[#allocation245_spill] sm:$0xff]  ;;  %v4889_v39 = vsel %vm10343_vm2, %v4887_v34, %v10342_v54  ;;  %v10344_v45 = vld [vmem:[#allocation122_spill] sm:$0xff]  ;;  %vm10365_vm10 = vcmask 457728   ;;  %vm10371_vm2 = vcmask 687104   ;;  %v9097_v58 = vpop.permute.xlu0 %4533 }
 0x705   :  { %v4831_v63 = vsel %vm10339_vm1, %v4829_v30, %v10338_v26  ;;  %vm10341_vm6 = vmmov %vm10335_vm11  ;;  %v4659_v5 = vsel %vm10345_vm0, %v4656_v43, %v10344_v45  ;;  %v10346_v15 = vld [vmem:[#allocation66_spill] sm:$0xff]  ;;  %v10350_v6 = vld [vmem:[#allocation299_spill] sm:$0xff]  ;;  %vm10373_vm0 = vcmask 490496  }
 0x706   :  { %v4838_v29 = vsel %vm10341_vm6, %v4836_v51, %v10340_v8  ;;  %v4661_v61 = vsel %vm10347_vm9, %v4658_v41, %v10346_v15  ;;  %v10348_v57 = vld [vmem:[#allocation294_spill] sm:$0xff]  ;;  %vm10351_vm8 = vmmov %vm10349_vm5  ;;  %v10352_v42 = vld [vmem:[#allocation123_spill] sm:$0xff] }
 0x707   :  { %v4833_v59 = vsel %vm10349_vm5, %v4831_v63, %v10348_v57  ;;  %v4894_v35 = vsel %vm10351_vm8, %v4892_v20, %v10350_v6  ;;  %vm10353_vm4 = vmmov %vm10331_vm3  ;;  %v10354_v62 = vld [vmem:[#allocation174_spill] sm:$0xff]  ;;  %v10357_v12 = vld [vmem:[#allocation332_spill] sm:$0xff]  ;;  %vm10358_vm3 = vcmask 556032  }
 0x708   :  { %v4721_v27 = vsel %vm10353_vm4, %v4719_v18, %v10352_v42  ;;  %vm10355_vm7 = vmmov %vm10349_vm5  ;;  %v10356_v2 = vld [vmem:[#allocation182_spill] sm:$0xff]  ;;  %v4896_v46 = vsel %vm10358_vm3, %v4894_v35, %v10357_v12  ;;  %v10361_v7 = vld [vmem:[#allocation235_spill] sm:$0xff]  ;;  %vm10377_vm5 = vcmask 752640   ;;  %vm10381_vm4 = vcmask 588800  }
 0x709   :  { %v4771_v37 = vsel %vm10355_vm7, %v4769_v44, %v10354_v62  ;;  %v4778_v55 = vsel %vm4642_vm15, %v4776_v3, %v10356_v2  ;;  %v10359_v30 = vld [vmem:[#allocation126_spill] sm:$0xff]  ;;  %vm10362_vm11 = vmmov %vm10358_vm3  ;;  %v10364_v0 = vld [vmem:[#allocation296_spill] sm:$0xff]  ;;  %v9123_v2 = vpop.permute.xlu1 %4541 }
 0x70a   :  { %v4724_v41 = vsel %vm10360_vm13, %v4722_v60, %v10359_v30  ;;  %v4773_v51 = vsel %vm10362_vm11, %v4771_v37, %v10361_v7  ;;  %v10363_v50 = vld [vmem:[#allocation246_spill] sm:$0xff]  ;;  %v4891_v43 = vsel %vm10365_vm10, %v4889_v39, %v10364_v0  ;;  %v10366_v22 = vld [vmem:[#allocation68_spill] sm:$0xff]  ;;  %vm10367_vm1 = vmmov %vm10347_vm9  ;;  %vm10375_vm9 = vcmask 883712  }
 0x70b   :  { %v4840_v34 = vsel %vm4642_vm15, %v4838_v29, %v10363_v50  ;;  %v4662_v1 = vsel %vm10367_vm1, %v4659_v5, %v10366_v22  ;;  %v10368_v52 = vld [vmem:[#allocation242_spill] sm:$0xff]  ;;  %vm10369_vm6 = vmmov %vm10358_vm3  ;;  %v10370_v20 = vld [vmem:[#allocation301_spill] sm:$0xff]  ;;  %vm10385_vm3 = vcmask 818176   ;;  %vm10389_vm11 = vcmask 719872  }
 0x70c   :  { %v4835_v10 = vsel %vm10369_vm6, %v4833_v59, %v10368_v52  ;;  %v4842_v11 = vsel %vm10371_vm2, %v4840_v34, %v10370_v20  ;;  %v10372_v18 = vld [vmem:[#allocation331_spill] sm:$0xff]  ;;  %v10374_v32 = vld [vmem:[#allocation125_spill] sm:$0xff]  ;;  %v10376_v28 = vld [vmem:[#allocation124_spill] sm:$0xff] }
 0x70d   :  { %v4893_v48 = vsel %vm10373_vm0, %v4891_v43, %v10372_v18  ;;  %v4664_v44 = vsel %vm10375_vm9, %v4661_v61, %v10374_v32  ;;  %v4723_v3 = vsel %vm10377_vm5, %v4721_v27, %v10376_v28  ;;  %v10378_v17 = vld [vmem:[#allocation183_spill] sm:$0xff]  ;;  %vm10379_vm8 = vmmov %vm10371_vm2  ;;  %v10380_v26 = vld [vmem:[#allocation302_spill] sm:$0xff]  ;;  %vm10397_vm2 = vcmask 523264  }
 0x70e   :  { %v4780_v60 = vsel %vm10379_vm8, %v4778_v55, %v10378_v17  ;;  %v4898_v63 = vsel %vm10381_vm4, %v4896_v46, %v10380_v26  ;;  %v10382_v8 = vld [vmem:[#allocation184_spill] sm:$0xff]  ;;  %vm10383_vm7 = vmmov %vm10360_vm13  ;;  %v10384_v54 = vld [vmem:[#allocation127_spill] sm:$0xff]  ;;  %vm10399_vm0 = vcmask 916480   ;;  %vm10401_vm9 = vcmask 621568  }
 0x70f   :  { %v4725_v29 = vsel %vm10383_vm7, %v4723_v3, %v10382_v8  ;;  %v4726_v39 = vsel %vm10385_vm3, %v4724_v41, %v10384_v54  ;;  %v10386_v45 = vld [vmem:[#allocation179_spill] sm:$0xff]  ;;  %vm10387_vm13 = vmmov %vm10381_vm4  ;;  %v10388_v15 = vld [vmem:[#allocation244_spill] sm:$0xff]  ;;  %vm10404_vm8 = vcmask 556032   ;;  %v9158_v54 = vpop.permute.xlu2 %4525 }
 0x710   :  { %v4775_v5 = vsel %vm10387_vm13, %v4773_v51, %v10386_v45  ;;  %v4782_v61 = vsel %vm10389_vm11, %v4780_v60, %v10388_v15  ;;  %v10390_v57 = vld [vmem:[#allocation187_spill] sm:$0xff]  ;;  %vm10391_vm10 = vmmov %vm10367_vm1  ;;  %v10396_v62 = vld [vmem:[#allocation300_spill] sm:$0xff]  ;;  %v5082_v51 = vsel %vm10404_vm8, %v8708_v56, %v8810_v53  ;;  %vm10413_vm13 = vcmask 883712  }
 0x711   :  { %v4728_v59 = vsel %vm10391_vm10, %v4726_v39, %v10390_v57  ;;  %v10392_v6 = vld [vmem:[#allocation243_spill] sm:$0xff]  ;;  %vm10393_vm1 = vmmov %vm10381_vm4  ;;  %v4895_v37 = vsel %vm10397_vm2, %v4893_v48, %v10396_v62  ;;  %v10400_v46 = vld [vmem:[#allocation26_spill] sm:$0xff] }
 0x712   :  { %v4837_v35 = vsel %vm10393_vm1, %v4835_v10, %v10392_v6  ;;  %v10394_v42 = vld [vmem:[#allocation251_spill] sm:$0xff]  ;;  %vm10395_vm6 = vmmov %vm10389_vm11  ;;  %v10405_v50 = vld [vmem:[#allocation129_spill] sm:$0xff]  ;;  %vm10421_vm1 = vcmask 785408  }
 0x713   :  { %v4844_v27 = vsel %vm10395_vm6, %v4842_v11, %v10394_v42  ;;  %v10398_v55 = vld [vmem:[#allocation71_spill] sm:$0xff]  ;;  %v4839_v30 = vsel %vm10401_vm9, %v4837_v35, %v10400_v46  ;;  %vm10403_vm5 = vmmov %vm10401_vm9  ;;  %v10407_v0 = vld [vmem:[#allocation180_spill] sm:$0xff]  ;;  %vm10423_vm6 = vcmask 588800  }
 0x714   :  { %v4667_v12 = vsel %vm10399_vm0, %v4664_v44, %v10398_v55  ;;  %v10402_v41 = vld [vmem:[#allocation303_spill] sm:$0xff]  ;;  %vm10406_vm4 = vmmov %vm10385_vm3  ;;  %v10409_v22 = vld [vmem:[#allocation188_spill] sm:$0xff]  ;;  %vm10410_vm3 = vcmask 752640  }
 0x715   :  { %v4900_v7 = vsel %vm10403_vm5, %v4898_v63, %v10402_v41  ;;  %v4727_v34 = vsel %vm10406_vm4, %v4725_v29, %v10405_v50  ;;  %vm10408_vm7 = vmmov %vm10403_vm5  ;;  %v4784_v52 = vsel %vm10410_vm3, %v4782_v61, %v10409_v22  ;;  %v10411_v10 = vld [vmem:[#allocation41_spill] sm:$0xff]  ;;  %v10412_v11 = vld [vmem:[#allocation132_spill] sm:$0xff]  ;;  %vm10431_vm5 = vcmask 687104   ;;  %v9182_v50 = vpop.permute.xlu0 %4547 }
 0x716   :  { %v4777_v43 = vsel %vm10408_vm7, %v4775_v5, %v10407_v0  ;;  %v4902_v20 = vsel %vm4642_vm15, %v4900_v7, %v10411_v10  ;;  %v4730_v18 = vsel %vm10413_vm13, %v4728_v59, %v10412_v11  ;;  %v10414_v48 = vld [vmem:[#allocation241_spill] sm:$0xff]  ;;  %v10415_v44 = vld [vmem:[#allocation252_spill] sm:$0xff]  ;;  %vm10416_vm11 = vmmov %vm10410_vm3  ;;  %vm10435_vm4 = vcmask 916480  }
 0x717   :  { %v4779_v32 = vsel %vm4642_vm15, %v4777_v43, %v10414_v48  ;;  %v4846_v56 = vsel %vm10416_vm11, %v4844_v27, %v10415_v44  ;;  %v10417_v53 = vld [vmem:[#allocation21_spill] sm:$0xff]  ;;  %vm10418_vm10 = vmmov %vm10404_vm8  ;;  %v10419_v3 = vld [vmem:[#allocation248_spill] sm:$0xff]  ;;  %vm10433_vm8 = vcmask 850944   ;;  %vm10439_vm3 = vcmask 818176  }
 0x718   :  { %v4897_v28 = vsel %vm10418_vm10, %v4895_v37, %v10417_v53  ;;  %v4841_v17 = vsel %vm4642_vm15, %v4839_v30, %v10419_v3  ;;  %v10420_v60 = vld [vmem:[#allocation307_spill] sm:$0xff]  ;;  %v10422_v63 = vld [vmem:[#allocation333_spill] sm:$0xff]  ;;  %vm10424_vm2 = vmmov %vm10423_vm6  ;;  %vm10445_vm10 = vcmask 621568  }
 0x719   :  { %v4848_v26 = vsel %vm10421_vm1, %v4846_v56, %v10420_v60  ;;  %v4899_v8 = vsel %vm10423_vm6, %v4897_v28, %v10422_v63  ;;  %v5084_v29 = vsel %vm10424_vm2, %v5082_v51, %v8683_v38  ;;  %v10425_v39 = vld [vmem:[#allocation69_spill] sm:$0xff]  ;;  %vm10426_vm0 = vmmov %vm10413_vm13  ;;  %v10427_v5 = vld [vmem:[#allocation72_spill] sm:$0xff]  ;;  %vm10450_vm2 = vcmask 719872  }
 0x71a   :  { %v4665_v45 = vsel %vm10426_vm0, %v4662_v1, %v10425_v39  ;;  %v4670_v15 = vsel %vm4669_vm14, %v4667_v12, %v10427_v5  ;;  %v10428_v61 = vld [vmem:[#allocation189_spill] sm:$0xff]  ;;  %vm10429_vm9 = vmmov %vm10421_vm1  ;;  %v10430_v59 = vld [vmem:[#allocation308_spill] sm:$0xff] }
 0x71b   :  { %v4786_v57 = vsel %vm10429_vm9, %v4784_v52, %v10428_v61  ;;  %v4904_v6 = vsel %vm10431_vm5, %v4902_v20, %v10430_v59  ;;  %v10432_v35 = vld [vmem:[#allocation130_spill] sm:$0xff]  ;;  %v10434_v27 = vld [vmem:[#allocation133_spill] sm:$0xff]  ;;  %vm10437_vm7 = vmmov %vm10431_vm5 }
 0x71c   :  { %v4729_v42 = vsel %vm10433_vm8, %v4727_v34, %v10432_v35  ;;  %v4732_v38 = vsel %vm10435_vm4, %v4730_v18, %v10434_v27  ;;  %v10436_v62 = vld [vmem:[#allocation185_spill] sm:$0xff]  ;;  %v10438_v55 = vld [vmem:[#allocation250_spill] sm:$0xff]  ;;  %vm10441_vm13 = vmmov %vm10431_vm5  ;;  %vm10459_vm4 = vcmask 588800  }
 0x71d   :  { %v4781_v37 = vsel %vm10437_vm7, %v4779_v32, %v10436_v62  ;;  %v4788_v1 = vsel %vm10439_vm3, %v4786_v57, %v10438_v55  ;;  %v10440_v46 = vld [vmem:[#allocation249_spill] sm:$0xff]  ;;  %vm10443_vm11 = vmmov %vm10439_vm3  ;;  %v10447_v0 = vld [vmem:[#allocation190_spill] sm:$0xff]  ;;  %v5085_v53 = vsel %vm10459_vm4, %v8765_v49, %v8881_v24  ;;  %v4540_v55 = vpop.permute.xlu2 %4539 }
 0x71e   :  { %v4843_v12 = vsel %vm10441_vm13, %v4841_v17, %v10440_v46  ;;  %v10442_v30 = vld [vmem:[#allocation257_spill] sm:$0xff]  ;;  %vm10446_vm1 = vmmov %vm10445_vm10  ;;  %v10449_v22 = vld [vmem:[#allocation304_spill] sm:$0xff] }
 0x71f   :  { %v4850_v41 = vsel %vm10443_vm11, %v4848_v26, %v10442_v30  ;;  %v10444_v7 = vld [vmem:[#allocation305_spill] sm:$0xff]  ;;  %v5086_v34 = vsel %vm10446_vm1, %v5084_v29, %v8700_v13  ;;  %vm10448_vm6 = vmmov %vm10426_vm0  ;;  %v4845_v52 = vsel %vm10450_vm2, %v4843_v12, %v10449_v22  ;;  %v10453_v18 = vld [vmem:[#allocation186_spill] sm:$0xff]  ;;  %v9211_v29 = vpop.permute.xlu1 %4555 }
 0x720   :  { %v4901_v51 = vsel %vm10445_vm10, %v4899_v8, %v10444_v7  ;;  %v4731_v43 = vsel %vm10448_vm6, %v4729_v42, %v10447_v0  ;;  %v10451_v10 = vld [vmem:[#allocation309_spill] sm:$0xff]  ;;  %vm10452_vm0 = vmmov %vm10450_vm2  ;;  %v5088_v11 = vsel %vm4642_vm15, %v5086_v34, %v8951_v4  ;;  %v10455_v32 = vld [vmem:[#allocation194_spill] sm:$0xff]  ;;  %vm10471_vm10 = vcmask 687104  }
 0x721   :  { %v4906_v20 = vsel %vm10452_vm0, %v4904_v6, %v10451_v10  ;;  %vm10454_vm9 = vmmov %vm10452_vm0  ;;  %v10457_v56 = vld [vmem:[#allocation335_spill] sm:$0xff]  ;;  %v10460_v28 = vld [vmem:[#allocation193_spill] sm:$0xff]  ;;  %vm10478_vm0 = vcmask 785408  }
 0x722   :  { %v4783_v48 = vsel %vm10454_vm9, %v4781_v37, %v10453_v18  ;;  %vm10456_vm5 = vmmov %vm10433_vm8  ;;  %vm10458_vm8 = vcmask 752640   ;;  %v4734_v3 = vsel %vm4669_vm14, %v4732_v38, %v10460_v28  ;;  %v10461_v17 = vld [vmem:[#allocation247_spill] sm:$0xff]  ;;  %v10463_v4 = vld [vmem:[#allocation258_spill] sm:$0xff]  ;;  %vm10479_vm9 = vcmask 621568  }
 0x723   :  { %v4790_v44 = vsel %vm10456_vm5, %v4788_v1, %v10455_v32  ;;  %v4908_v13 = vsel %vm10458_vm8, %v4906_v20, %v10457_v56  ;;  %vm10462_vm7 = vmmov %vm10458_vm8  ;;  %v10465_v63 = vld [vmem:[#allocation306_spill] sm:$0xff]  ;;  %v10468_v61 = vld [vmem:[#allocation313_spill] sm:$0xff]  ;;  %v5087_v37 = vsel %vm10479_vm9, %v5085_v53, %v8745_v36  ;;  %vm10504_vm9 = vcmask 850944  }
 0x724   :  { %v4785_v60 = vsel %vm10462_vm7, %v4783_v48, %v10461_v17  ;;  %vm10464_vm3 = vmmov %vm10456_vm5  ;;  %v4903_v8 = vsel %vm4642_vm15, %v4901_v51, %v10465_v63  ;;  %v10466_v39 = vld [vmem:[#allocation254_spill] sm:$0xff]  ;;  %v10473_v6 = vld [vmem:[#allocation128_spill] sm:$0xff]  ;;  %v5089_v48 = vsel %vm4642_vm15, %v5087_v37, %v8776_v33 }
 0x725   :  { %v4852_v26 = vsel %vm10464_vm3, %v4850_v41, %v10463_v4  ;;  %vm10467_vm13 = vmmov %vm10462_vm7  ;;  %v10470_v24 = vld [vmem:[#allocation34_spill] sm:$0xff]  ;;  %v10475_v42 = vld [vmem:[#allocation195_spill] sm:$0xff] }
 0x726   :  { %v4847_v5 = vsel %vm10467_vm13, %v4845_v52, %v10466_v39  ;;  %vm10469_vm11 = vmmov %vm10448_vm6  ;;  %v4905_v57 = vsel %vm10471_vm10, %v4903_v8, %v10470_v24  ;;  %vm10474_vm6 = vcmask 916480   ;;  %v10477_v38 = vld [vmem:[#allocation314_spill] sm:$0xff]  ;;  %v10480_v1 = vld [vmem:[#allocation135_spill] sm:$0xff]  ;;  %vm10492_vm13 = vcmask 719872   ;;  %v9271_v39 = vpop.permute.xlu0 %4557 }
 0x727   :  { %v4854_v49 = vsel %vm10469_vm11, %v4852_v26, %v10468_v61  ;;  %vm10472_vm1 = vmmov %vm10471_vm10  ;;  %v9223_v35 = vsel %vm10474_vm6, %v4665_v45, %v10473_v6  ;;  %v4910_v62 = vsel %vm10478_vm0, %v4908_v13, %v10477_v38  ;;  %v10482_v12 = vld [vmem:[#allocation138_spill] sm:$0xff]  ;;  %v10483_v30 = vld [vmem:[#allocation191_spill] sm:$0xff]  ;;  %vm10495_vm10 = vcmask 818176  }
 0x728   :  { %v5090_v59 = vsel %vm10472_vm1, %v5088_v11, %v8837_v9  ;;  %vm10476_vm2 = vmmov %vm10469_vm11  ;;  %v4736_v9 = vsel %vm4672_vm12, %v4734_v3, %v10482_v12  ;;  %v10485_v41 = vld [vmem:[#allocation256_spill] sm:$0xff]  ;;  %v10487_v51 = vld [vmem:[#allocation255_spill] sm:$0xff] }
 0x729   :  { %v4792_v27 = vsel %vm10476_vm2, %v4790_v44, %v10475_v42  ;;  %vm10481_vm5 = vmmov %vm10474_vm6  ;;  %v10489_v0 = vld [vmem:[#allocation263_spill] sm:$0xff]  ;;  %v10494_v10 = vld [vmem:[#allocation310_spill] sm:$0xff]  ;;  %vm10498_vm6 = vcmask 752640   ;;  %vm10500_vm2 = vcmask 1014784  }
 0x72a   :  { %v4733_v46 = vsel %vm10481_vm5, %v4731_v43, %v10480_v1  ;;  %vm10484_vm8 = vmmov %vm10478_vm0  ;;  %v10491_v36 = vld [vmem:[#allocation311_spill] sm:$0xff]  ;;  %v10496_v11 = vld [vmem:[#allocation29_spill] sm:$0xff] }
 0x72b   :  { %v4787_v45 = vsel %vm10484_vm8, %v4785_v60, %v10483_v30  ;;  %vm10486_vm4 = vmmov %vm10481_vm5  ;;  %v4907_v52 = vsel %vm10492_vm13, %v4905_v57, %v10491_v36  ;;  %v10499_v44 = vld [vmem:[#allocation139_spill] sm:$0xff]  ;;  %v10501_v13 = vld [vmem:[#allocation192_spill] sm:$0xff]  ;;  %vm10505_vm5 = vcmask 687104  }
 0x72c   :  { %v4794_v7 = vsel %vm10486_vm4, %v4792_v27, %v10485_v41  ;;  %vm10488_vm7 = vmmov %vm10478_vm0  ;;  %v4738_v56 = vsel %vm10500_vm2, %v4736_v9, %v10499_v44  ;;  %v10503_v28 = vld [vmem:[#allocation341_spill] sm:$0xff]  ;;  %v5091_v3 = vsel %vm10505_vm5, %v5089_v48, %v9019_v25  ;;  %v10508_v4 = vld [vmem:[#allocation200_spill] sm:$0xff]  ;;  %v9293_v41 = vpop.permute.xlu1 %4565  ;;  %vm10531_vm5 = vcmask 916480  }
 0x72d   :  { %v4849_v34 = vsel %vm10488_vm7, %v4847_v5, %v10487_v51  ;;  %vm10490_vm3 = vmmov %vm10486_vm4  ;;  %v10506_v17 = vld [vmem:[#allocation253_spill] sm:$0xff]  ;;  %v4796_v33 = vsel %vm4669_vm14, %v4794_v7, %v10508_v4  ;;  %v10509_v26 = vld [vmem:[#allocation264_spill] sm:$0xff]  ;;  %v5128_v37 = vrot.slane %v4738_v56, 7 }
 0x72e   :  { %v4856_v22 = vsel %vm10490_vm3, %v4854_v49, %v10489_v0  ;;  %vm10493_vm11 = vmmov %vm10492_vm13  ;;  %v4851_v20 = vsel %vm10495_vm10, %v4849_v34, %v10494_v10  ;;  %v10510_v63 = vld [vmem:[#allocation312_spill] sm:$0xff]  ;;  %v10514_v49 = vld [vmem:[#allocation317_spill] sm:$0xff]  ;;  %vm5142_vm13 = vcmask 1040384  }
 0x72f   :  { %v5092_v43 = vsel %vm10493_vm11, %v5090_v59, %v8863_v31  ;;  %vm10497_vm1 = vmmov %vm10495_vm10  ;;  %v10512_v5 = vld [vmem:[#allocation260_spill] sm:$0xff]  ;;  %v10515_v24 = vld [vmem:[#allocation338_spill] sm:$0xff]  ;;  %vm10519_vm11 = vcmask 883712   ;;  %vm10520_vm10 = vcmask 719872  }
 0x730   :  { %v4912_v18 = vsel %vm10497_vm1, %v4910_v62, %v10496_v11  ;;  %v5094_v32 = vsel %vm10498_vm6, %v5092_v43, %v9087_v14  ;;  %vm10502_vm0 = vmmov %vm10497_vm1  ;;  %v4858_v14 = vsel %vm4669_vm14, %v4856_v22, %v10509_v26  ;;  %v10517_v6 = vld [vmem:[#allocation131_spill] sm:$0xff]  ;;  %v10518_v27 = vld [vmem:[#allocation318_spill] sm:$0xff]  ;;  %v5093_v62 = vsel %vm10520_vm10, %v5091_v3, %v8923_v47 }
 0x731   :  { %v4789_v53 = vsel %vm10502_vm0, %v4787_v45, %v10501_v13  ;;  %v4914_v31 = vsel %vm10504_vm9, %v4912_v18, %v10503_v28  ;;  %vm10507_vm8 = vmmov %vm10504_vm9  ;;  %v4860_v25 = vsel %vm4672_vm12, %v4858_v14, %v10514_v49  ;;  %v4673_v42 = vsel %vm4672_vm12, %v4670_v15, %v10517_v6  ;;  %v10521_v1 = vld [vmem:[#allocation136_spill] sm:$0xff]  ;;  %v10522_v9 = vld [vmem:[#allocation197_spill] sm:$0xff]  ;;  %v4550_v15 = vpop.permute.xlu2 %4549 }
 0x732   :  { %v4791_v60 = vsel %vm10507_vm8, %v4789_v53, %v10506_v17  ;;  %vm10511_vm15 = vmmov %vm10498_vm6  ;;  %v4916_v38 = vsel %vm10519_vm11, %v4914_v31, %v10518_v27  ;;  %v4735_v12 = vsel %vm4669_vm14, %v4733_v46, %v10521_v1  ;;  %v10524_v45 = vld [vmem:[#allocation201_spill] sm:$0xff]  ;;  %v10528_v47 = vld [vmem:[#allocation315_spill] sm:$0xff] }
 0x733   :  { %v4909_v8 = vsel %vm10511_vm15, %v4907_v52, %v10510_v63  ;;  %vm10513_vm4 = vmmov %vm10507_vm8  ;;  %v10525_v7 = vld [vmem:[#allocation261_spill] sm:$0xff]  ;;  %v10530_v36 = vld [vmem:[#allocation24_spill] sm:$0xff] }
 0x734   :  { %v4853_v61 = vsel %vm10513_vm4, %v4851_v20, %v10512_v5  ;;  %v4911_v57 = vsel %vm10488_vm7, %v4909_v8, %v10515_v24  ;;  %vm10516_vm3 = vmmov %vm10488_vm7  ;;  %v10527_v34 = vld [vmem:[#allocation269_spill] sm:$0xff]  ;;  %v10532_v43 = vld [vmem:[#allocation319_spill] sm:$0xff]  ;;  %v5095_v20 = vsel %vm10511_vm15, %v5093_v62, %v8949_v19 }
 0x735   :  { %v5096_v59 = vsel %vm10516_vm3, %v5094_v32, %v9009_v21  ;;  %vm10523_vm1 = vmmov %vm10519_vm11  ;;  %v4798_v21 = vsel %vm4672_vm12, %v4796_v33, %v10524_v45  ;;  %v4862_v0 = vsel %vm10500_vm2, %v4860_v25, %v10527_v34  ;;  %v4913_v22 = vsel %vm10502_vm0, %v4911_v57, %v10528_v47  ;;  %v10534_v18 = vld [vmem:[#allocation198_spill] sm:$0xff]  ;;  %v10540_v53 = vld [vmem:[#allocation196_spill] sm:$0xff] }
 0x736   :  { %v4793_v30 = vsel %vm10523_vm1, %v4791_v60, %v10522_v9  ;;  %vm10526_vm6 = vmmov %vm10523_vm1  ;;  %v10536_v32 = vld [vmem:[#allocation262_spill] sm:$0xff]  ;;  %vm10539_vm11 = vcmask 785408   ;;  %v4737_v28 = vsel %vm4672_vm12, %v4735_v12, %v10540_v53  ;;  %v10541_v31 = vld [vmem:[#allocation259_spill] sm:$0xff]  ;;  %v5130_v3 = vrot.slane %v4862_v0, 5 }
 0x737   :  { %v4855_v51 = vsel %vm10526_vm6, %v4853_v61, %v10525_v7  ;;  %vm10529_vm9 = vmmov %vm10502_vm0  ;;  %v10538_v56 = vld [vmem:[#allocation346_spill] sm:$0xff]  ;;  %v5097_v13 = vsel %vm10539_vm11, %v5095_v20, %v9158_v54  ;;  %vm5144_vm1 = vcmask 1042434   ;;  %v10545_v33 = vld [vmem:[#allocation44_spill] sm:$0xff] }
 0x738   :  { %v5098_v46 = vsel %vm10529_vm9, %v5096_v59, %v9037_v40  ;;  %v4857_v52 = vsel %vm10531_vm5, %v4855_v51, %v10530_v36  ;;  %vm10533_vm8 = vmmov %vm10531_vm5  ;;  %v10544_v60 = vld [vmem:[#allocation266_spill] sm:$0xff]  ;;  %v10547_v14 = vld [vmem:[#allocation77_spill] sm:$0xff]  ;;  %v5099_v49 = vsel %vm10529_vm9, %v5097_v13, %v9097_v58  ;;  %vm5152_vm9 = vcmask 1045508  }
 0x739   :  { %v4918_v10 = vsel %vm10533_vm8, %v4916_v38, %v10532_v43  ;;  %v5100_v11 = vsel %vm10513_vm4, %v5098_v46, %v4540_v55  ;;  %vm10535_vm7 = vmmov %vm10531_vm5  ;;  %v10542_v55 = vld [vmem:[#allocation316_spill] sm:$0xff]  ;;  %v4859_v4 = vsel %vm4669_vm14, %v4857_v52, %v10544_v60  ;;  %v10550_v24 = vld [vmem:[#allocation141_spill] sm:$0xff]  ;;  %vm5146_vm8 = vcmask 1041408   ;;  %v4564_v12 = vpop.permute.xlu2 %4563 }
 0x73a   :  { %v4795_v48 = vsel %vm10535_vm7, %v4793_v30, %v10534_v18  ;;  %vm10537_vm3 = vmmov %vm10500_vm2  ;;  %v4920_v40 = vsel %vm4669_vm14, %v4918_v10, %v10538_v56  ;;  %v10549_v5 = vld [vmem:[#allocation324_spill] sm:$0xff]  ;;  %v10552_v59 = vld [vmem:[#allocation203_spill] sm:$0xff] }
 0x73b   :  { %v4800_v44 = vsel %vm10537_vm3, %v4798_v21, %v10536_v32  ;;  %v4797_v19 = vsel %vm4669_vm14, %v4795_v48, %v10541_v31  ;;  %vm10543_vm10 = vmmov %vm10513_vm4  ;;  %v4922_v61 = vsel %vm4672_vm12, %v4920_v40, %v10549_v5  ;;  %v10554_v62 = vld [vmem:[#allocation321_spill] sm:$0xff]  ;;  %v10559_v30 = vld [vmem:[#allocation342_spill] sm:$0xff] }
 0x73c   :  { %v4915_v17 = vsel %vm10543_vm10, %v4913_v22, %v10542_v55  ;;  %vm10546_vm2 = vmmov %vm10526_vm6  ;;  %v5129_v8 = vrot.slane %v4800_v44, 6  ;;  %v4799_v6 = vsel %vm4672_vm12, %v4797_v19, %v10552_v59  ;;  %v10562_v51 = vld [vmem:[#allocation320_spill] sm:$0xff]  ;;  %v10564_v0 = vld [vmem:[#allocation49_spill] sm:$0xff]  ;;  %v4580_v22 = vpop.permute.xlu1 %4579  ;;  %v5140_v59 = vrot.slane %v8576_v16, 2 }
 0x73d   :  { %v4917_v26 = vsel %vm10526_vm6, %v4915_v17, %v10545_v33  ;;  %v5102_v54 = vsel %vm10546_vm2, %v5100_v11, %v9182_v50  ;;  %vm10548_vm0 = vmmov %vm10537_vm3  ;;  %v4572_v50 = vpop.permute.xlu0 %4571  ;;  %v5132_v47 = vrot.slane %v10564_v0, 3  ;;  %v10566_v36 = vld [vmem:[#allocation322_spill] sm:$0xff]  ;;  %v10567_v43 = vld [vmem:[#allocation357_spill] sm:$0xff] }
 0x73e   :  { %v4676_v63 = vsel %vm10548_vm0, %v4673_v42, %v10547_v14  ;;  %vm10551_vm5 = vmmov %vm10548_vm0  ;;  %v5145_v27 = vsel %vm5144_vm1, %v5129_v8, %v5130_v3  ;;  %v10553_v42 = vld [vmem:[#allocation267_spill] sm:$0xff]  ;;  %v10569_v48 = vld [vmem:[#allocation350_spill] sm:$0xff] }
 0x73f   :  { %v5143_v25 = vsel %vm5142_vm13, %v4676_v63, %v5128_v37  ;;  %v4739_v57 = vsel %vm10551_vm5, %v4737_v28, %v10550_v24  ;;  %v4861_v38 = vsel %vm4672_vm12, %v4859_v4, %v10553_v42  ;;  %vm10555_vm15 = vmmov %vm10535_vm7  ;;  %v10557_v37 = vld [vmem:[#allocation325_spill] sm:$0xff]  ;;  %vm5148_vm5 = vcmask 1044484   ;;  %v10571_v44 = vld [vmem:[#allocation204_spill] sm:$0xff] }
 0x740   :  { %v4919_v1 = vsel %vm10555_vm15, %v4917_v26, %v10554_v62  ;;  %vm10556_vm4 = vmmov %vm10535_vm7  ;;  %v10573_v40 = vld [vmem:[#allocation358_spill] sm:$0xff]  ;;  %v5147_v55 = vsel %vm5146_vm8, %v5143_v25, %v5145_v27  ;;  %v10576_v17 = vld [vmem:[#allocation327_spill] sm:$0xff] }
 0x741   :  { %v5104_v58 = vsel %vm10556_vm4, %v5102_v54, %v9211_v29  ;;  %vm10558_vm7 = vmmov %vm10548_vm0  ;;  %v4921_v52 = vsel %vm4669_vm14, %v4919_v1, %v10566_v36  ;;  %v10575_v31 = vld [vmem:[#allocation74_spill] sm:$0xff]  ;;  %v4574_v4 = vpop.permute.xlu2 %4573  ;;  %v5135_v54 = vrot.slane %v4739_v57, 7  ;;  %v10578_v5 = vld [vmem:[#allocation75_spill] sm:$0xff] }
 0x742   :  { %v4924_v9 = vsel %vm10558_vm7, %v4922_v61, %v10557_v37  ;;  %vm10560_vm3 = vmmov %vm10548_vm0  ;;  %v5106_v7 = vsel %vm4669_vm14, %v5104_v58, %v4564_v12  ;;  %v4923_v32 = vsel %vm4672_vm12, %v4921_v52, %v10569_v48  ;;  %v4671_v19 = vsel %vm4669_vm14, %v9223_v35, %v10575_v31  ;;  %v10580_v57 = vld [vmem:[#allocation134_spill] sm:$0xff] }
 0x743   :  { %v5048_v45 = vsel %vm10560_vm3, %v8566_v23, %v10559_v30  ;;  %vm10561_vm11 = vmmov %vm10543_vm10  ;;  %v5108_v46 = vsel %vm4672_vm12, %v5106_v7, %v4572_v50  ;;  %v10568_v23 = vld [vmem:[#allocation54_spill] sm:$0xff]  ;;  %v5131_v20 = vrot.slane %v4924_v9, 4  ;;  %v4674_v61 = vsel %vm4672_vm12, %v4671_v19, %v10578_v5 }
 0x744   :  { %v5101_v21 = vsel %vm10561_vm11, %v5099_v49, %v9123_v2  ;;  %vm10563_vm10 = vmmov %vm10548_vm0  ;;  %v4985_v10 = vsel %vm4672_vm12, %v10568_v23, %v10567_v43  ;;  %v5110_v2 = vsel %vm10548_vm0, %v5108_v46, %v4580_v22  ;;  %v5133_v11 = vrot.slane %v5048_v45, 2 }
 0x745   :  { %v4863_v34 = vsel %vm10563_vm10, %v4861_v38, %v10562_v51  ;;  %vm10565_vm6 = vmmov %vm10546_vm2  ;;  %vm5150_vm2 = vcmask 1046534   ;;  %v5134_v18 = vrot.slane %v5110_v2, 1  ;;  %v5149_v53 = vsel %vm5148_vm5, %v5131_v20, %v5132_v47  ;;  %v4582_v8 = vpop.permute.xlu0 %4581 }
 0x746   :  { %v5103_v29 = vsel %vm10565_vm6, %v5101_v21, %v4550_v15  ;;  %vm10570_vm15 = vmmov %vm10556_vm4  ;;  %vm5154_vm4 = vcmask 1043456   ;;  %v5137_v3 = vrot.slane %v4863_v34, 5 }
 0x747   :  { %v5105_v15 = vsel %vm10570_vm15, %v5103_v29, %v9271_v39  ;;  %vm10572_vm7 = vmmov %vm10548_vm0  ;;  %v5151_v28 = vsel %vm5150_vm2, %v5133_v11, %v5134_v18 }
 0x748   :  { %v4801_v56 = vsel %vm10572_vm7, %v4799_v6, %v10571_v44  ;;  %vm10574_vm3 = vmmov %vm10548_vm0  ;;  %v5153_v39 = vsel %vm5152_vm9, %v5149_v53, %v5151_v28  ;;  %v5107_v33 = vsel %vm4669_vm14, %v5105_v15, %v9293_v41 }
 0x749   :  { %v4987_v13 = vsel %vm10574_vm3, %v4985_v10, %v10573_v40  ;;  %vm10577_vm11 = vmmov %vm10548_vm0  ;;  %v5155_v26 = vsel %vm5154_vm4, %v5147_v55, %v5153_v39  ;;  %v5136_v14 = vrot.slane %v4801_v56, 6  ;;  %v5109_v35 = vsel %vm4672_vm12, %v5107_v33, %v4574_v4 }
 0x74a   :  { %v4925_v60 = vsel %vm10577_vm11, %v4923_v32, %v10576_v17  ;;  %v5139_v63 = vrot.slane %v4987_v13, 3  ;;  %5165 = vst [vmem:[#allocation5] sm:$0xff] %v5155_v26  ;;  %vm10579_vm10 = vmmov %vm10548_vm0 }
 0x74b   :  { %v5111_v49 = vsel %vm10579_vm10, %v5109_v35, %v4582_v8  ;;  %v5157_v25 = vsel %vm5144_vm1, %v5136_v14, %v5137_v3  ;;  %v5138_v24 = vrot.slane %v4925_v60, 4  ;;  %vm10581_vm14 = vmmov %vm10548_vm0 }
 0x74c   :  { %v5141_v41 = vrot.slane %v5111_v49, 1  ;;  %v4677_v6 = vsel %vm10581_vm14, %v4674_v61, %v10580_v57 }
 0x74d   :  { %v5156_v50 = vsel %vm5142_vm13, %v4677_v6, %v5135_v54  ;;  %v5159_v27 = vsel %vm5148_vm5, %v5138_v24, %v5139_v63 }
 0x74e   :  { %v5160_v42 = vsel %vm5150_vm2, %v5140_v59, %v5141_v41  ;;  %v5158_v38 = vsel %vm5146_vm8, %v5156_v50, %v5157_v25 }
 0x74f   :  { %v5161_v16 = vsel %vm5152_vm9, %v5159_v27, %v5160_v42 }
 0x750   :  { %v5162_v62 = vsel %vm5154_vm4, %v5158_v38, %v5161_v16 }
 0x751   :  { %5166 = vst [vmem:[#allocation5 + $0x8] sm:$0xff] %v5162_v62 }
 0x752   :  { %5179 = dma.vmem_to_hbm [thread:$0]  %s5172_s13, 256, %s5174_s16, [#allocation4], %s10582_s1, %s10582_s1, %s5277_s12  }
 0x753   :  { %5273 = dma.done.wait [#allocation4], 256  }
 0x754   :  { %5274 = vsyncadd [#allocation4], 4294967040 }
 0x755   :  { %5184 = vsyncpa [#allocation3], 1 }
 0x756   :  { %5185 = vsyncpa [#allocation4], 1 }

</bundles_post_ra>
